<compile_context>
chip_gen: v7x
topology: tpu7x:2x2x1
jax: 0.10.0
libtpu: 0.0.40
codegen_flags: <defaults>
</compile_context>

<pallas_src>
import functools

import jax
import jax.numpy as jnp
from jax.experimental import pallas as pl
from jax.experimental.pallas import tpu as pltpu


# ----------------------------------------------------------------------------- GELU
# PyTorch nn.GELU() default is the exact erf form.  erf is evaluated in-kernel with
# the Abramowitz & Stegun 7.1.26 polynomial (|abs err| <= 1.5e-7, i.e. exact at f32
# working precision) using only ops with guaranteed Mosaic lowerings (exp, mul, add).
_ERF_P = 0.3275911
_ERF_A = (0.254829592, -0.284496736, 1.421413741, -1.453152027, 1.061405429)


def _erf_poly(x):
    a1, a2, a3, a4, a5 = _ERF_A
    s = jnp.where(x >= 0.0, 1.0, -1.0)
    ax = jnp.abs(x)
    t = 1.0 / (1.0 + _ERF_P * ax)
    poly = ((((a5 * t + a4) * t + a3) * t + a2) * t + a1) * t
    return s * (1.0 - poly * jnp.exp(-ax * ax))


def _gelu_erf(x):
    return 0.5 * x * (1.0 + _erf_poly(x * 0.7071067811865476))


# --------------------------------------------------------------------------- kernel
def decoder_block_kernel(x_ref, mask_ref, g1_ref, b1_ref, wqkv_ref, bqkv_ref,
                         wproj_ref, bproj_ref, g2_ref, b2_ref,
                         wfc1_ref, bfc1_ref, wfc2_ref, bfc2_ref,
                         out_ref, *, n_heads, scale, eps, matmul_dtype):
    BN, T, D = x_ref.shape
    H = n_heads
    hd = D // H
    mmd = matmul_dtype

    # Fold the BN samples of this block into the row (sublane) dim: one lane-dense
    # operand for every dense matmul in the block.
    x = x_ref[...].reshape(BN * T, D)                       # (BN*T, D) f32
    masked = mask_ref[...] == 0.0                           # (T, T) bool

    def layer_norm(z, g, b):
        mu = jnp.mean(z, axis=-1, keepdims=True)
        zc = z - mu
        var = jnp.mean(zc * zc, axis=-1, keepdims=True)
        return zc * jax.lax.rsqrt(var + eps) * g + b        # rsqrt -> EUP

    # ---------------- attention branch:  x + proj(MHA(LN1(x), mask)) -------------
    xn = layer_norm(x, g1_ref[...], b1_ref[...])
    # QKV projection: single (BN*T, D) x (D, 3D) MXU matmul, weight pre-transposed.
    qkv = jnp.dot(xn.astype(mmd), wqkv_ref[...],
                  preferred_element_type=jnp.float32) + bqkv_ref[...]   # (BN*T, 3D)

    def head_major(base):
        # Gather the per-head column groups into a leading head axis: (H, BN*T, hd).
        return jnp.stack(
            [qkv[:, base + h * hd: base + (h + 1) * hd] for h in range(H)], axis=0)

    q_hm, k_hm, v_hm = head_major(0), head_major(D), head_major(2 * D)

    # BN is a small static block size; heads are batched inside each iteration.
    wa_blocks = []
    for b in range(BN):
        r0, r1 = b * T, (b + 1) * T
        q_b = q_hm[:, r0:r1, :].astype(mmd)                 # (H, T, hd)
        k_b = k_hm[:, r0:r1, :].astype(mmd)
        v_b = v_hm[:, r0:r1, :].astype(mmd)

        # Head-batched scores; softmax kept in f32 (v5e VPU/EUP have no bf16 path).
        s = jnp.einsum("hqd,hkd->hqk", q_b, k_b,
                       preferred_element_type=jnp.float32) * scale      # (H, T, T)
        s = jnp.where(masked[None], -10000.0, s)            # masked_fill(mask==0,-1e4)
        m = jnp.max(s, axis=-1, keepdims=True)
        e = jnp.exp(s - m)
        denom = jnp.sum(e, axis=-1, keepdims=True)
        p = e * pl.reciprocal(denom, approx=True)           # EUP reciprocal, VPU freed
        # attn_drop has p = 0.0 -> identity
        wa_b = jnp.einsum("hqk,hkd->hqd", p.astype(mmd), v_b,
                          preferred_element_type=jnp.float32)           # (H, T, hd)

        # Merge heads in-register: (H, T, hd) -> (T, D)   (== transpose + flatten)
        wa_blocks.append(jnp.concatenate([wa_b[h] for h in range(H)], axis=-1))

    wa = jnp.concatenate(wa_blocks, axis=0)                 # (BN*T, D) f32

    attn_out = jnp.dot(wa.astype(mmd), wproj_ref[...],
                       preferred_element_type=jnp.float32) + bproj_ref[...]
    # proj_drop has p = 0.0 -> identity
    x1 = x + attn_out                                        # residual 1 (f32)

    # ---------------- MLP branch:  x1 + fc2(GELU(fc1(LN2(x1)))) ------------------
    xn2 = layer_norm(x1, g2_ref[...], b2_ref[...])
    h1 = jnp.dot(xn2.astype(mmd), wfc1_ref[...],
                 preferred_element_type=jnp.float32) + bfc1_ref[...]     # (BN*T, Hid)
    h1 = _gelu_erf(h1)                                       # exact-erf GELU (f32)
    y = jnp.dot(h1.astype(mmd), wfc2_ref[...],
                preferred_element_type=jnp.float32) + bfc2_ref[...]      # (BN*T, D)

    out_ref[...] = (x1 + y).reshape(BN, T, D).astype(out_ref.dtype)


# -------------------------------------------------------------------------- wrapper
def _full(shape):
    return pl.BlockSpec(shape, lambda i: (0, 0))


def decoder_block(x, mask, params, *, n_heads, block_n=None,
                  matmul_dtype=jnp.float32):
    """Fused DecoderBlock forward.  `params` uses PyTorch Linear conventions."""
    N, T, D = x.shape
    H = n_heads
    assert D % H == 0
    hd = D // H
    scale = float(hd ** -0.5)
    hidden = params["w_fc1"].shape[0]
    eps = 1e-6

    x = x.astype(jnp.float32)
    if mask is None:
        mask = jnp.ones((T, T), dtype=jnp.float32)
    mask = mask.astype(jnp.float32)
    assert mask.shape == (T, T)

    # Several samples per grid step (amortize ~0.35us/step + DMA ramp) while keeping
    # >= 2 grid steps where possible so both v7x TensorCores get parallel work.
    if block_n is None:
        block_n = max((d for d in range(1, N + 1) if N % d == 0 and N // d >= 2),
                      default=N)
    assert N % block_n == 0
    grid = (N // block_n,)

    f32 = jnp.float32
    mmd = matmul_dtype
    # Pre-transpose weights once in the wrapper -> no in-kernel `.T` relayouts.
    g1 = params["ln1_g"].reshape(1, D).astype(f32)
    b1 = params["ln1_b"].reshape(1, D).astype(f32)
    g2 = params["ln2_g"].reshape(1, D).astype(f32)
    b2 = params["ln2_b"].reshape(1, D).astype(f32)
    wqkv_t = params["w_qkv"].T.astype(mmd)                  # (D, 3D)
    bqkv = params["b_qkv"].reshape(1, 3 * D).astype(f32)
    wproj_t = params["w_proj"].T.astype(mmd)                # (D, D)
    bproj = params["b_proj"].reshape(1, D).astype(f32)
    wfc1_t = params["w_fc1"].T.astype(mmd)                  # (D, hidden)
    bfc1 = params["b_fc1"].reshape(1, hidden).astype(f32)
    wfc2_t = params["w_fc2"].T.astype(mmd)                  # (hidden, D)
    bfc2 = params["b_fc2"].reshape(1, D).astype(f32)

    operands = (x, mask, g1, b1, wqkv_t, bqkv, wproj_t, bproj, g2, b2,
                wfc1_t, bfc1, wfc2_t, bfc2)

    cost = pl.CostEstimate(
        flops=int(N * (8 * T * D * D + 4 * T * T * D + 4 * T * D * hidden)),
        transcendentals=int(N * (H * T * T + T * hidden)),
        bytes_accessed=int(sum(int(a.size) * a.dtype.itemsize for a in operands)
                           + N * T * D * 4),
    )

    kernel = functools.partial(decoder_block_kernel, n_heads=H, scale=scale,
                               eps=eps, matmul_dtype=mmd)

    return pl.pallas_call(
        kernel,
        out_shape=jax.ShapeDtypeStruct((N, T, D), jnp.float32),
        grid_spec=pltpu.PrefetchScalarGridSpec(
            num_scalar_prefetch=0,
            grid=grid,
            in_specs=[
                pl.BlockSpec((block_n, T, D), lambda i: (i, 0, 0)),   # x
                _full((T, T)),                                        # mask
                _full((1, D)), _full((1, D)),                         # LN1 gamma/beta
                _full((D, 3 * D)), _full((1, 3 * D)),                 # W_qkv^T, b_qkv
                _full((D, D)), _full((1, D)),                         # W_proj^T, b_proj
                _full((1, D)), _full((1, D)),                         # LN2 gamma/beta
                _full((D, hidden)), _full((1, hidden)),               # W_fc1^T, b_fc1
                _full((hidden, D)), _full((1, D)),                    # W_fc2^T, b_fc2
            ],
            out_specs=pl.BlockSpec((block_n, T, D), lambda i: (i, 0, 0)),
        ),
        compiler_params=pltpu.CompilerParams(
            dimension_semantics=("parallel",),
            vmem_limit_bytes=32 * 1024 * 1024,   # explicit budget, safe on all chips
        ),
        cost_estimate=cost,
    )(*operands)


# ------------------------------------------------------------------ pure-JAX reference
def decoder_block_ref(x, mask, params, *, n_heads):
    """Mirrors the PyTorch DecoderBlock forward exactly."""
    eps = 1e-6
    N, T, D = x.shape
    H = n_heads
    hd = D // H
    scale = hd ** -0.5

    def ln(z, g, b):
        mu = z.mean(axis=-1, keepdims=True)
        var = ((z - mu) ** 2).mean(axis=-1, keepdims=True)
        return (z - mu) / jnp.sqrt(var + eps) * g + b

    xn = ln(x, params["ln1_g"], params["ln1_b"])
    qkv = xn @ params["w_qkv"].T + params["b_qkv"]          # (N, T, 3D)
    qkv = qkv.reshape(N, T, 3, H, hd)
    qkv = jnp.transpose(qkv, (2, 0, 3, 1, 4))               # (3, N, H, T, hd)
    q, k, v = qkv[0], qkv[1], qkv[2]
    dp = jnp.einsum("nhqd,nhkd->nhqk", q, k) * scale
    if mask is not None:
        dp = jnp.where(mask[None, None] == 0, -10000.0, dp)
    attn = jax.nn.softmax(dp, axis=-1)
    wa = jnp.einsum("nhqk,nhkd->nhqd", attn, v)
    wa = jnp.transpose(wa, (0, 2, 1, 3)).reshape(N, T, D)
    x = x + (wa @ params["w_proj"].T + params["b_proj"])
    xn2 = ln(x, params["ln2_g"], params["ln2_b"])
    h = xn2 @ params["w_fc1"].T + params["b_fc1"]
    h = jax.nn.gelu(h, approximate=False)                   # PyTorch nn.GELU() (erf)
    return x + (h @ params["w_fc2"].T + params["b_fc2"])


# ----------------------------------------------------------------------------- test
if __name__ == "__main__":
    # Small but lane-dense shapes: D = 128 keeps every matmul operand/output a full
    # 128-lane vreg row (no masked partial stores anywhere in the block).
    N, T, D, H = 4, 16, 128, 4
    hidden = int(D * 4.0)                                   # mlp_ratio = 4.0

    key = jax.random.PRNGKey(0)
    keys = jax.random.split(key, 12)

    x = jax.random.normal(keys[0], (N, T, D), dtype=jnp.float32)
    mask = jnp.tril(jnp.ones((T, T), dtype=jnp.float32))    # causal decoder mask

    params = {
        "ln1_g": 1.0 + 0.1 * jax.random.normal(keys[1], (D,), jnp.float32),
        "ln1_b": 0.1 * jax.random.normal(keys[2], (D,), jnp.float32),
        "w_qkv": 0.06 * jax.random.normal(keys[3], (3 * D, D), jnp.float32),
        "b_qkv": 0.05 * jax.random.normal(keys[4], (3 * D,), jnp.float32),
        "w_proj": 0.06 * jax.random.normal(keys[5], (D, D), jnp.float32),
        "b_proj": 0.05 * jax.random.normal(keys[6], (D,), jnp.float32),
        "ln2_g": 1.0 + 0.1 * jax.random.normal(keys[7], (D,), jnp.float32),
        "ln2_b": 0.1 * jax.random.normal(keys[8], (D,), jnp.float32),
        "w_fc1": 0.06 * jax.random.normal(keys[9], (hidden, D), jnp.float32),
        "b_fc1": 0.05 * jax.random.normal(keys[10], (hidden,), jnp.float32),
        "w_fc2": 0.06 * jax.random.normal(keys[11], (D, hidden), jnp.float32),
        "b_fc2": jnp.zeros((D,), jnp.float32),
    }

    ref = decoder_block_ref(x, mask, params, n_heads=H)

    # f32 MXU path.  Only approximations vs the reference: the EUP approximate
    # reciprocal in the softmax and the 1.5e-7 erf polynomial, hence 2e-2 tolerance
    # (with an exact divide the match is ~1e-6).
    out = decoder_block(x, mask, params, n_heads=H)
    out = jax.block_until_ready(out)
    assert out.shape == (N, T, D)
    assert jnp.allclose(out, ref, atol=2e-2, rtol=2e-2), (
        f"f32 path max abs err = {jnp.max(jnp.abs(out - ref))}")

    # bf16 MXU-operand path (weights + matmul inputs bf16, softmax/LN/GELU in f32).
    out_bf16 = decoder_block(x, mask, params, n_heads=H, matmul_dtype=jnp.bfloat16)
    out_bf16 = jax.block_until_ready(out_bf16)
    assert jnp.allclose(out_bf16, ref, atol=3e-1, rtol=1e-1), (
        f"bf16 path max abs err = {jnp.max(jnp.abs(out_bf16 - ref))}")

    print("KERNEL_OK")
</pallas_src>

<mosaic_0001>
module attributes {stable_mosaic.version = 11 : i64} {
  func.func @decoder_block_kernel(%arg0: i32, %arg1: memref<2x16x128xf32, #tpu.memory_space<vmem>>, %arg2: memref<16x16xf32, #tpu.memory_space<vmem>>, %arg3: memref<1x128xf32, #tpu.memory_space<vmem>>, %arg4: memref<1x128xf32, #tpu.memory_space<vmem>>, %arg5: memref<128x384xf32, #tpu.memory_space<vmem>>, %arg6: memref<1x384xf32, #tpu.memory_space<vmem>>, %arg7: memref<128x128xf32, #tpu.memory_space<vmem>>, %arg8: memref<1x128xf32, #tpu.memory_space<vmem>>, %arg9: memref<1x128xf32, #tpu.memory_space<vmem>>, %arg10: memref<1x128xf32, #tpu.memory_space<vmem>>, %arg11: memref<128x512xf32, #tpu.memory_space<vmem>>, %arg12: memref<1x512xf32, #tpu.memory_space<vmem>>, %arg13: memref<512x128xf32, #tpu.memory_space<vmem>>, %arg14: memref<1x128xf32, #tpu.memory_space<vmem>>, %arg15: memref<2x16x128xf32, #tpu.memory_space<vmem>>) attributes {dimension_semantics = [#tpu.dimension_semantics<parallel>], iteration_bounds = array<i64: 2>, scalar_prefetch = 0 : i64, scratch_operands = 0 : i64, tpu.core_type = #tpu.core_type<tc>, window_params = [{transform_indices = @transform_0, window_bounds = array<i64: 2, 16, 128>}, {pipeline_mode = #tpu.pipeline_mode<synchronous>, transform_indices = @transform_1, window_bounds = array<i64: 16, 16>}, {pipeline_mode = #tpu.pipeline_mode<synchronous>, transform_indices = @transform_2, window_bounds = array<i64: 1, 128>}, {pipeline_mode = #tpu.pipeline_mode<synchronous>, transform_indices = @transform_3, window_bounds = array<i64: 1, 128>}, {pipeline_mode = #tpu.pipeline_mode<synchronous>, transform_indices = @transform_4, window_bounds = array<i64: 128, 384>}, {pipeline_mode = #tpu.pipeline_mode<synchronous>, transform_indices = @transform_5, window_bounds = array<i64: 1, 384>}, {pipeline_mode = #tpu.pipeline_mode<synchronous>, transform_indices = @transform_6, window_bounds = array<i64: 128, 128>}, {pipeline_mode = #tpu.pipeline_mode<synchronous>, transform_indices = @transform_7, window_bounds = array<i64: 1, 128>}, {pipeline_mode = #tpu.pipeline_mode<synchronous>, transform_indices = @transform_8, window_bounds = array<i64: 1, 128>}, {pipeline_mode = #tpu.pipeline_mode<synchronous>, transform_indices = @transform_9, window_bounds = array<i64: 1, 128>}, {pipeline_mode = #tpu.pipeline_mode<synchronous>, transform_indices = @transform_10, window_bounds = array<i64: 128, 512>}, {pipeline_mode = #tpu.pipeline_mode<synchronous>, transform_indices = @transform_11, window_bounds = array<i64: 1, 512>}, {pipeline_mode = #tpu.pipeline_mode<synchronous>, transform_indices = @transform_12, window_bounds = array<i64: 512, 128>}, {pipeline_mode = #tpu.pipeline_mode<synchronous>, transform_indices = @transform_13, window_bounds = array<i64: 1, 128>}, {transform_indices = @transform_14, window_bounds = array<i64: 2, 16, 128>}]} {
    %c0 = arith.constant 0 : index
    %c0_0 = arith.constant 0 : index
    %c0_1 = arith.constant 0 : index
    %0 = vector.load %arg1[%c0, %c0_0, %c0_1] : memref<2x16x128xf32, #tpu.memory_space<vmem>>, vector<2x16x128xf32>
    %1 = vector.shape_cast %0 : vector<2x16x128xf32> to vector<32x128xf32>
    %c0_2 = arith.constant 0 : index
    %c0_3 = arith.constant 0 : index
    %2 = vector.load %arg2[%c0_2, %c0_3] : memref<16x16xf32, #tpu.memory_space<vmem>>, vector<16x16xf32>
    %cst = arith.constant 0.000000e+00 : f32
    %3 = vector.broadcast %cst : f32 to vector<16x16xf32>
    %4 = arith.cmpf oeq, %2, %3 : vector<16x16xf32>
    %c0_4 = arith.constant 0 : index
    %c0_5 = arith.constant 0 : index
    %5 = vector.load %arg3[%c0_4, %c0_5] : memref<1x128xf32, #tpu.memory_space<vmem>>, vector<1x128xf32>
    %c0_6 = arith.constant 0 : index
    %c0_7 = arith.constant 0 : index
    %6 = vector.load %arg4[%c0_6, %c0_7] : memref<1x128xf32, #tpu.memory_space<vmem>>, vector<1x128xf32>
    %cst_8 = arith.constant dense<0.000000e+00> : vector<32xf32>
    %7 = vector.multi_reduction <add>, %1, %cst_8 [1] : vector<32x128xf32> to vector<32xf32>
    %8 = vector.shape_cast %7 : vector<32xf32> to vector<32x1xf32>
    %cst_9 = arith.constant 1.280000e+02 : f32
    %9 = vector.broadcast %cst_9 : f32 to vector<32x1xf32>
    %10 = arith.divf %8, %9 : vector<32x1xf32>
    %11 = vector.broadcast %10 : vector<32x1xf32> to vector<32x128xf32>
    %12 = arith.subf %1, %11 : vector<32x128xf32>
    %13 = arith.mulf %12, %12 : vector<32x128xf32>
    %cst_10 = arith.constant dense<0.000000e+00> : vector<32xf32>
    %14 = vector.multi_reduction <add>, %13, %cst_10 [1] : vector<32x128xf32> to vector<32xf32>
    %15 = vector.shape_cast %14 : vector<32xf32> to vector<32x1xf32>
    %cst_11 = arith.constant 1.280000e+02 : f32
    %16 = vector.broadcast %cst_11 : f32 to vector<32x1xf32>
    %17 = arith.divf %15, %16 : vector<32x1xf32>
    %cst_12 = arith.constant 9.99999997E-7 : f32
    %18 = vector.broadcast %cst_12 : f32 to vector<32x1xf32>
    %19 = arith.addf %17, %18 : vector<32x1xf32>
    %20 = math.rsqrt %19 : vector<32x1xf32>
    %21 = vector.broadcast %20 : vector<32x1xf32> to vector<32x128xf32>
    %22 = arith.mulf %12, %21 : vector<32x128xf32>
    %23 = vector.broadcast %5 : vector<1x128xf32> to vector<32x128xf32>
    %24 = arith.mulf %22, %23 : vector<32x128xf32>
    %25 = vector.broadcast %6 : vector<1x128xf32> to vector<32x128xf32>
    %26 = arith.addf %24, %25 : vector<32x128xf32>
    %c0_13 = arith.constant 0 : index
    %c0_14 = arith.constant 0 : index
    %27 = vector.load %arg5[%c0_13, %c0_14] : memref<128x384xf32, #tpu.memory_space<vmem>>, vector<128x384xf32>
    %cst_15 = arith.constant dense<0.000000e+00> : vector<32x384xf32>
    %28 = tpu.matmul %26, %27, %cst_15 {dimension_numbers = #tpu.dot_dimension_numbers<[1], [0], [0], [1], [0, 0, 1, 1], [], []>} : vector<32x128xf32>, vector<128x384xf32>, vector<32x384xf32> -> vector<32x384xf32>
    %c0_16 = arith.constant 0 : index
    %c0_17 = arith.constant 0 : index
    %29 = vector.load %arg6[%c0_16, %c0_17] : memref<1x384xf32, #tpu.memory_space<vmem>>, vector<1x384xf32>
    %30 = vector.broadcast %29 : vector<1x384xf32> to vector<32x384xf32>
    %31 = arith.addf %28, %30 : vector<32x384xf32>
    %32 = vector.extract_strided_slice %31 {offsets = [0, 0], sizes = [32, 32], strides = [1, 1]} : vector<32x384xf32> to vector<32x32xf32>
    %33 = vector.extract_strided_slice %31 {offsets = [0, 32], sizes = [32, 32], strides = [1, 1]} : vector<32x384xf32> to vector<32x32xf32>
    %34 = vector.extract_strided_slice %31 {offsets = [0, 64], sizes = [32, 32], strides = [1, 1]} : vector<32x384xf32> to vector<32x32xf32>
    %35 = vector.extract_strided_slice %31 {offsets = [0, 96], sizes = [32, 32], strides = [1, 1]} : vector<32x384xf32> to vector<32x32xf32>
    %36 = vector.shape_cast %32 : vector<32x32xf32> to vector<1x32x32xf32>
    %37 = vector.shape_cast %33 : vector<32x32xf32> to vector<1x32x32xf32>
    %38 = vector.shape_cast %34 : vector<32x32xf32> to vector<1x32x32xf32>
    %39 = vector.shape_cast %35 : vector<32x32xf32> to vector<1x32x32xf32>
    %40 = tpu.concatenate %36, %37, %38, %39 in 0 : vector<1x32x32xf32>, vector<1x32x32xf32>, vector<1x32x32xf32>, vector<1x32x32xf32> -> vector<4x32x32xf32>
    %41 = vector.extract_strided_slice %31 {offsets = [0, 128], sizes = [32, 32], strides = [1, 1]} : vector<32x384xf32> to vector<32x32xf32>
    %42 = vector.extract_strided_slice %31 {offsets = [0, 160], sizes = [32, 32], strides = [1, 1]} : vector<32x384xf32> to vector<32x32xf32>
    %43 = vector.extract_strided_slice %31 {offsets = [0, 192], sizes = [32, 32], strides = [1, 1]} : vector<32x384xf32> to vector<32x32xf32>
    %44 = vector.extract_strided_slice %31 {offsets = [0, 224], sizes = [32, 32], strides = [1, 1]} : vector<32x384xf32> to vector<32x32xf32>
    %45 = vector.shape_cast %41 : vector<32x32xf32> to vector<1x32x32xf32>
    %46 = vector.shape_cast %42 : vector<32x32xf32> to vector<1x32x32xf32>
    %47 = vector.shape_cast %43 : vector<32x32xf32> to vector<1x32x32xf32>
    %48 = vector.shape_cast %44 : vector<32x32xf32> to vector<1x32x32xf32>
    %49 = tpu.concatenate %45, %46, %47, %48 in 0 : vector<1x32x32xf32>, vector<1x32x32xf32>, vector<1x32x32xf32>, vector<1x32x32xf32> -> vector<4x32x32xf32>
    %50 = vector.extract_strided_slice %31 {offsets = [0, 256], sizes = [32, 32], strides = [1, 1]} : vector<32x384xf32> to vector<32x32xf32>
    %51 = vector.extract_strided_slice %31 {offsets = [0, 288], sizes = [32, 32], strides = [1, 1]} : vector<32x384xf32> to vector<32x32xf32>
    %52 = vector.extract_strided_slice %31 {offsets = [0, 320], sizes = [32, 32], strides = [1, 1]} : vector<32x384xf32> to vector<32x32xf32>
    %53 = vector.extract_strided_slice %31 {offsets = [0, 352], sizes = [32, 32], strides = [1, 1]} : vector<32x384xf32> to vector<32x32xf32>
    %54 = vector.shape_cast %50 : vector<32x32xf32> to vector<1x32x32xf32>
    %55 = vector.shape_cast %51 : vector<32x32xf32> to vector<1x32x32xf32>
    %56 = vector.shape_cast %52 : vector<32x32xf32> to vector<1x32x32xf32>
    %57 = vector.shape_cast %53 : vector<32x32xf32> to vector<1x32x32xf32>
    %58 = tpu.concatenate %54, %55, %56, %57 in 0 : vector<1x32x32xf32>, vector<1x32x32xf32>, vector<1x32x32xf32>, vector<1x32x32xf32> -> vector<4x32x32xf32>
    %59 = vector.extract_strided_slice %40 {offsets = [0, 0, 0], sizes = [4, 16, 32], strides = [1, 1, 1]} : vector<4x32x32xf32> to vector<4x16x32xf32>
    %60 = vector.extract_strided_slice %49 {offsets = [0, 0, 0], sizes = [4, 16, 32], strides = [1, 1, 1]} : vector<4x32x32xf32> to vector<4x16x32xf32>
    %61 = vector.extract_strided_slice %58 {offsets = [0, 0, 0], sizes = [4, 16, 32], strides = [1, 1, 1]} : vector<4x32x32xf32> to vector<4x16x32xf32>
    "tpu.trace_start"() <{level = 10 : i32, message = "hqd,hkd->hqk"}> : () -> ()
    %cst_18 = arith.constant dense<0.000000e+00> : vector<4x16x16xf32>
    %62 = tpu.matmul %59, %60, %cst_18 {dimension_numbers = #tpu.dot_dimension_numbers<[2], [2], [1], [1], [0, 0, 0, 1, 1, 1], [0], [0]>} : vector<4x16x32xf32>, vector<4x16x32xf32>, vector<4x16x16xf32> -> vector<4x16x16xf32>
    "tpu.trace_stop"() : () -> ()
    %cst_19 = arith.constant 0.176776692 : f32
    %63 = vector.broadcast %cst_19 : f32 to vector<4x16x16xf32>
    %64 = arith.mulf %62, %63 : vector<4x16x16xf32>
    %65 = vector.shape_cast %4 : vector<16x16xi1> to vector<1x16x16xi1>
    %cst_20 = arith.constant -1.000000e+04 : f32
    %66 = vector.shape_cast %65 : vector<1x16x16xi1> to vector<1x16x16xi1>
    %67 = vector.broadcast %66 : vector<1x16x16xi1> to vector<4x16x16xi1>
    %68 = vector.broadcast %cst_20 : f32 to vector<4x16x16xf32>
    %69 = arith.select %67, %68, %64 : vector<4x16x16xi1>, vector<4x16x16xf32>
    %cst_21 = arith.constant dense<0xFF800000> : vector<4x16xf32>
    %70 = vector.multi_reduction <maximumf>, %69, %cst_21 [2] : vector<4x16x16xf32> to vector<4x16xf32>
    %71 = vector.shape_cast %70 : vector<4x16xf32> to vector<4x16x1xf32>
    %72 = vector.broadcast %71 : vector<4x16x1xf32> to vector<4x16x16xf32>
    %73 = arith.subf %69, %72 : vector<4x16x16xf32>
    %74 = math.exp %73 : vector<4x16x16xf32>
    %cst_22 = arith.constant dense<0.000000e+00> : vector<4x16xf32>
    %75 = vector.multi_reduction <add>, %74, %cst_22 [2] : vector<4x16x16xf32> to vector<4x16xf32>
    %76 = vector.shape_cast %75 : vector<4x16xf32> to vector<4x16x1xf32>
    %77 = tpu.reciprocal %76 {approx = true} : vector<4x16x1xf32> -> vector<4x16x1xf32>
    %78 = vector.broadcast %77 : vector<4x16x1xf32> to vector<4x16x16xf32>
    %79 = arith.mulf %74, %78 : vector<4x16x16xf32>
    "tpu.trace_start"() <{level = 10 : i32, message = "hqk,hkd->hqd"}> : () -> ()
    %cst_23 = arith.constant dense<0.000000e+00> : vector<4x16x32xf32>
    %80 = tpu.matmul %79, %61, %cst_23 {dimension_numbers = #tpu.dot_dimension_numbers<[2], [1], [1], [2], [0, 0, 0, 1, 1, 2], [0], [0]>} : vector<4x16x16xf32>, vector<4x16x32xf32>, vector<4x16x32xf32> -> vector<4x16x32xf32>
    "tpu.trace_stop"() : () -> ()
    %81 = vector.extract_strided_slice %80 {offsets = [0, 0, 0], sizes = [1, 16, 32], strides = [1, 1, 1]} : vector<4x16x32xf32> to vector<1x16x32xf32>
    %82 = vector.shape_cast %81 : vector<1x16x32xf32> to vector<16x32xf32>
    %83 = vector.extract_strided_slice %80 {offsets = [1, 0, 0], sizes = [1, 16, 32], strides = [1, 1, 1]} : vector<4x16x32xf32> to vector<1x16x32xf32>
    %84 = vector.shape_cast %83 : vector<1x16x32xf32> to vector<16x32xf32>
    %85 = vector.extract_strided_slice %80 {offsets = [2, 0, 0], sizes = [1, 16, 32], strides = [1, 1, 1]} : vector<4x16x32xf32> to vector<1x16x32xf32>
    %86 = vector.shape_cast %85 : vector<1x16x32xf32> to vector<16x32xf32>
    %87 = vector.extract_strided_slice %80 {offsets = [3, 0, 0], sizes = [1, 16, 32], strides = [1, 1, 1]} : vector<4x16x32xf32> to vector<1x16x32xf32>
    %88 = vector.shape_cast %87 : vector<1x16x32xf32> to vector<16x32xf32>
    %89 = tpu.concatenate %82, %84, %86, %88 in 1 : vector<16x32xf32>, vector<16x32xf32>, vector<16x32xf32>, vector<16x32xf32> -> vector<16x128xf32>
    %90 = vector.extract_strided_slice %40 {offsets = [0, 16, 0], sizes = [4, 16, 32], strides = [1, 1, 1]} : vector<4x32x32xf32> to vector<4x16x32xf32>
    %91 = vector.extract_strided_slice %49 {offsets = [0, 16, 0], sizes = [4, 16, 32], strides = [1, 1, 1]} : vector<4x32x32xf32> to vector<4x16x32xf32>
    %92 = vector.extract_strided_slice %58 {offsets = [0, 16, 0], sizes = [4, 16, 32], strides = [1, 1, 1]} : vector<4x32x32xf32> to vector<4x16x32xf32>
    "tpu.trace_start"() <{level = 10 : i32, message = "hqd,hkd->hqk"}> : () -> ()
    %cst_24 = arith.constant dense<0.000000e+00> : vector<4x16x16xf32>
    %93 = tpu.matmul %90, %91, %cst_24 {dimension_numbers = #tpu.dot_dimension_numbers<[2], [2], [1], [1], [0, 0, 0, 1, 1, 1], [0], [0]>} : vector<4x16x32xf32>, vector<4x16x32xf32>, vector<4x16x16xf32> -> vector<4x16x16xf32>
    "tpu.trace_stop"() : () -> ()
    %cst_25 = arith.constant 0.176776692 : f32
    %94 = vector.broadcast %cst_25 : f32 to vector<4x16x16xf32>
    %95 = arith.mulf %93, %94 : vector<4x16x16xf32>
    %96 = vector.shape_cast %4 : vector<16x16xi1> to vector<1x16x16xi1>
    %cst_26 = arith.constant -1.000000e+04 : f32
    %97 = vector.shape_cast %96 : vector<1x16x16xi1> to vector<1x16x16xi1>
    %98 = vector.broadcast %97 : vector<1x16x16xi1> to vector<4x16x16xi1>
    %99 = vector.broadcast %cst_26 : f32 to vector<4x16x16xf32>
    %100 = arith.select %98, %99, %95 : vector<4x16x16xi1>, vector<4x16x16xf32>
    %cst_27 = arith.constant dense<0xFF800000> : vector<4x16xf32>
    %101 = vector.multi_reduction <maximumf>, %100, %cst_27 [2] : vector<4x16x16xf32> to vector<4x16xf32>
    %102 = vector.shape_cast %101 : vector<4x16xf32> to vector<4x16x1xf32>
    %103 = vector.broadcast %102 : vector<4x16x1xf32> to vector<4x16x16xf32>
    %104 = arith.subf %100, %103 : vector<4x16x16xf32>
    %105 = math.exp %104 : vector<4x16x16xf32>
    %cst_28 = arith.constant dense<0.000000e+00> : vector<4x16xf32>
    %106 = vector.multi_reduction <add>, %105, %cst_28 [2] : vector<4x16x16xf32> to vector<4x16xf32>
    %107 = vector.shape_cast %106 : vector<4x16xf32> to vector<4x16x1xf32>
    %108 = tpu.reciprocal %107 {approx = true} : vector<4x16x1xf32> -> vector<4x16x1xf32>
    %109 = vector.broadcast %108 : vector<4x16x1xf32> to vector<4x16x16xf32>
    %110 = arith.mulf %105, %109 : vector<4x16x16xf32>
    "tpu.trace_start"() <{level = 10 : i32, message = "hqk,hkd->hqd"}> : () -> ()
    %cst_29 = arith.constant dense<0.000000e+00> : vector<4x16x32xf32>
    %111 = tpu.matmul %110, %92, %cst_29 {dimension_numbers = #tpu.dot_dimension_numbers<[2], [1], [1], [2], [0, 0, 0, 1, 1, 2], [0], [0]>} : vector<4x16x16xf32>, vector<4x16x32xf32>, vector<4x16x32xf32> -> vector<4x16x32xf32>
    "tpu.trace_stop"() : () -> ()
    %112 = vector.extract_strided_slice %111 {offsets = [0, 0, 0], sizes = [1, 16, 32], strides = [1, 1, 1]} : vector<4x16x32xf32> to vector<1x16x32xf32>
    %113 = vector.shape_cast %112 : vector<1x16x32xf32> to vector<16x32xf32>
    %114 = vector.extract_strided_slice %111 {offsets = [1, 0, 0], sizes = [1, 16, 32], strides = [1, 1, 1]} : vector<4x16x32xf32> to vector<1x16x32xf32>
    %115 = vector.shape_cast %114 : vector<1x16x32xf32> to vector<16x32xf32>
    %116 = vector.extract_strided_slice %111 {offsets = [2, 0, 0], sizes = [1, 16, 32], strides = [1, 1, 1]} : vector<4x16x32xf32> to vector<1x16x32xf32>
    %117 = vector.shape_cast %116 : vector<1x16x32xf32> to vector<16x32xf32>
    %118 = vector.extract_strided_slice %111 {offsets = [3, 0, 0], sizes = [1, 16, 32], strides = [1, 1, 1]} : vector<4x16x32xf32> to vector<1x16x32xf32>
    %119 = vector.shape_cast %118 : vector<1x16x32xf32> to vector<16x32xf32>
    %120 = tpu.concatenate %113, %115, %117, %119 in 1 : vector<16x32xf32>, vector<16x32xf32>, vector<16x32xf32>, vector<16x32xf32> -> vector<16x128xf32>
    %121 = tpu.concatenate %89, %120 in 0 : vector<16x128xf32>, vector<16x128xf32> -> vector<32x128xf32>
    %c0_30 = arith.constant 0 : index
    %c0_31 = arith.constant 0 : index
    %122 = vector.load %arg7[%c0_30, %c0_31] : memref<128x128xf32, #tpu.memory_space<vmem>>, vector<128x128xf32>
    %cst_32 = arith.constant dense<0.000000e+00> : vector<32x128xf32>
    %123 = tpu.matmul %121, %122, %cst_32 {dimension_numbers = #tpu.dot_dimension_numbers<[1], [0], [0], [1], [0, 0, 1, 1], [], []>} : vector<32x128xf32>, vector<128x128xf32>, vector<32x128xf32> -> vector<32x128xf32>
    %c0_33 = arith.constant 0 : index
    %c0_34 = arith.constant 0 : index
    %124 = vector.load %arg8[%c0_33, %c0_34] : memref<1x128xf32, #tpu.memory_space<vmem>>, vector<1x128xf32>
    %125 = vector.broadcast %124 : vector<1x128xf32> to vector<32x128xf32>
    %126 = arith.addf %123, %125 : vector<32x128xf32>
    %127 = arith.addf %1, %126 : vector<32x128xf32>
    %c0_35 = arith.constant 0 : index
    %c0_36 = arith.constant 0 : index
    %128 = vector.load %arg9[%c0_35, %c0_36] : memref<1x128xf32, #tpu.memory_space<vmem>>, vector<1x128xf32>
    %c0_37 = arith.constant 0 : index
    %c0_38 = arith.constant 0 : index
    %129 = vector.load %arg10[%c0_37, %c0_38] : memref<1x128xf32, #tpu.memory_space<vmem>>, vector<1x128xf32>
    %cst_39 = arith.constant dense<0.000000e+00> : vector<32xf32>
    %130 = vector.multi_reduction <add>, %127, %cst_39 [1] : vector<32x128xf32> to vector<32xf32>
    %131 = vector.shape_cast %130 : vector<32xf32> to vector<32x1xf32>
    %cst_40 = arith.constant 1.280000e+02 : f32
    %132 = vector.broadcast %cst_40 : f32 to vector<32x1xf32>
    %133 = arith.divf %131, %132 : vector<32x1xf32>
    %134 = vector.broadcast %133 : vector<32x1xf32> to vector<32x128xf32>
    %135 = arith.subf %127, %134 : vector<32x128xf32>
    %136 = arith.mulf %135, %135 : vector<32x128xf32>
    %cst_41 = arith.constant dense<0.000000e+00> : vector<32xf32>
    %137 = vector.multi_reduction <add>, %136, %cst_41 [1] : vector<32x128xf32> to vector<32xf32>
    %138 = vector.shape_cast %137 : vector<32xf32> to vector<32x1xf32>
    %cst_42 = arith.constant 1.280000e+02 : f32
    %139 = vector.broadcast %cst_42 : f32 to vector<32x1xf32>
    %140 = arith.divf %138, %139 : vector<32x1xf32>
    %cst_43 = arith.constant 9.99999997E-7 : f32
    %141 = vector.broadcast %cst_43 : f32 to vector<32x1xf32>
    %142 = arith.addf %140, %141 : vector<32x1xf32>
    %143 = math.rsqrt %142 : vector<32x1xf32>
    %144 = vector.broadcast %143 : vector<32x1xf32> to vector<32x128xf32>
    %145 = arith.mulf %135, %144 : vector<32x128xf32>
    %146 = vector.broadcast %128 : vector<1x128xf32> to vector<32x128xf32>
    %147 = arith.mulf %145, %146 : vector<32x128xf32>
    %148 = vector.broadcast %129 : vector<1x128xf32> to vector<32x128xf32>
    %149 = arith.addf %147, %148 : vector<32x128xf32>
    %c0_44 = arith.constant 0 : index
    %c0_45 = arith.constant 0 : index
    %150 = vector.load %arg11[%c0_44, %c0_45] : memref<128x512xf32, #tpu.memory_space<vmem>>, vector<128x512xf32>
    %cst_46 = arith.constant dense<0.000000e+00> : vector<32x512xf32>
    %151 = tpu.matmul %149, %150, %cst_46 {dimension_numbers = #tpu.dot_dimension_numbers<[1], [0], [0], [1], [0, 0, 1, 1], [], []>} : vector<32x128xf32>, vector<128x512xf32>, vector<32x512xf32> -> vector<32x512xf32>
    %c0_47 = arith.constant 0 : index
    %c0_48 = arith.constant 0 : index
    %152 = vector.load %arg12[%c0_47, %c0_48] : memref<1x512xf32, #tpu.memory_space<vmem>>, vector<1x512xf32>
    %153 = vector.broadcast %152 : vector<1x512xf32> to vector<32x512xf32>
    %154 = arith.addf %151, %153 : vector<32x512xf32>
    %cst_49 = arith.constant 5.000000e-01 : f32
    %155 = vector.broadcast %cst_49 : f32 to vector<32x512xf32>
    %156 = arith.mulf %155, %154 : vector<32x512xf32>
    %cst_50 = arith.constant 0.707106769 : f32
    %157 = vector.broadcast %cst_50 : f32 to vector<32x512xf32>
    %158 = arith.mulf %154, %157 : vector<32x512xf32>
    %cst_51 = arith.constant 0.000000e+00 : f32
    %159 = vector.broadcast %cst_51 : f32 to vector<32x512xf32>
    %160 = arith.cmpf oge, %158, %159 : vector<32x512xf32>
    %cst_52 = arith.constant 1.000000e+00 : f32
    %cst_53 = arith.constant -1.000000e+00 : f32
    %161 = vector.broadcast %cst_52 : f32 to vector<32x512xf32>
    %162 = vector.broadcast %cst_53 : f32 to vector<32x512xf32>
    %163 = arith.select %160, %161, %162 : vector<32x512xi1>, vector<32x512xf32>
    %164 = math.absf %158 : vector<32x512xf32>
    %cst_54 = arith.constant 0.327591091 : f32
    %165 = vector.broadcast %cst_54 : f32 to vector<32x512xf32>
    %166 = arith.mulf %165, %164 : vector<32x512xf32>
    %cst_55 = arith.constant 1.000000e+00 : f32
    %167 = vector.broadcast %cst_55 : f32 to vector<32x512xf32>
    %168 = arith.addf %167, %166 : vector<32x512xf32>
    %cst_56 = arith.constant 1.000000e+00 : f32
    %169 = vector.broadcast %cst_56 : f32 to vector<32x512xf32>
    %170 = arith.divf %169, %168 : vector<32x512xf32>
    %cst_57 = arith.constant 1.06140542 : f32
    %171 = vector.broadcast %cst_57 : f32 to vector<32x512xf32>
    %172 = arith.mulf %171, %170 : vector<32x512xf32>
    %cst_58 = arith.constant -1.45315206 : f32
    %173 = vector.broadcast %cst_58 : f32 to vector<32x512xf32>
    %174 = arith.addf %172, %173 : vector<32x512xf32>
    %175 = arith.mulf %174, %170 : vector<32x512xf32>
    %cst_59 = arith.constant 1.42141378 : f32
    %176 = vector.broadcast %cst_59 : f32 to vector<32x512xf32>
    %177 = arith.addf %175, %176 : vector<32x512xf32>
    %178 = arith.mulf %177, %170 : vector<32x512xf32>
    %cst_60 = arith.constant -0.284496725 : f32
    %179 = vector.broadcast %cst_60 : f32 to vector<32x512xf32>
    %180 = arith.addf %178, %179 : vector<32x512xf32>
    %181 = arith.mulf %180, %170 : vector<32x512xf32>
    %cst_61 = arith.constant 0.254829586 : f32
    %182 = vector.broadcast %cst_61 : f32 to vector<32x512xf32>
    %183 = arith.addf %181, %182 : vector<32x512xf32>
    %184 = arith.mulf %183, %170 : vector<32x512xf32>
    %cst_62 = arith.constant 0.000000e+00 : f32
    %185 = vector.broadcast %cst_62 : f32 to vector<32x512xf32>
    %186 = arith.subf %185, %164 : vector<32x512xf32>
    %187 = arith.mulf %186, %164 : vector<32x512xf32>
    %188 = math.exp %187 : vector<32x512xf32>
    %189 = arith.mulf %184, %188 : vector<32x512xf32>
    %cst_63 = arith.constant 1.000000e+00 : f32
    %190 = vector.broadcast %cst_63 : f32 to vector<32x512xf32>
    %191 = arith.subf %190, %189 : vector<32x512xf32>
    %192 = arith.mulf %163, %191 : vector<32x512xf32>
    %cst_64 = arith.constant 1.000000e+00 : f32
    %193 = vector.broadcast %cst_64 : f32 to vector<32x512xf32>
    %194 = arith.addf %193, %192 : vector<32x512xf32>
    %195 = arith.mulf %156, %194 : vector<32x512xf32>
    %c0_65 = arith.constant 0 : index
    %c0_66 = arith.constant 0 : index
    %196 = vector.load %arg13[%c0_65, %c0_66] : memref<512x128xf32, #tpu.memory_space<vmem>>, vector<512x128xf32>
    %cst_67 = arith.constant dense<0.000000e+00> : vector<32x128xf32>
    %197 = tpu.matmul %195, %196, %cst_67 {dimension_numbers = #tpu.dot_dimension_numbers<[1], [0], [0], [1], [0, 0, 1, 1], [], []>} : vector<32x512xf32>, vector<512x128xf32>, vector<32x128xf32> -> vector<32x128xf32>
    %c0_68 = arith.constant 0 : index
    %c0_69 = arith.constant 0 : index
    %198 = vector.load %arg14[%c0_68, %c0_69] : memref<1x128xf32, #tpu.memory_space<vmem>>, vector<1x128xf32>
    %199 = vector.broadcast %198 : vector<1x128xf32> to vector<32x128xf32>
    %200 = arith.addf %197, %199 : vector<32x128xf32>
    %201 = arith.addf %127, %200 : vector<32x128xf32>
    %202 = vector.shape_cast %201 : vector<32x128xf32> to vector<2x16x128xf32>
    %c0_70 = arith.constant 0 : index
    %c0_71 = arith.constant 0 : index
    %c0_72 = arith.constant 0 : index
    %203 = vector.load %arg15[%c0_70, %c0_71, %c0_72] : memref<2x16x128xf32, #tpu.memory_space<vmem>>, vector<2x16x128xf32>
    tpu.vector_store %arg15[%c0_70, %c0_71, %c0_72], %202 {strides = array<i32>} : memref<2x16x128xf32, #tpu.memory_space<vmem>>, vector<2x16x128xf32>,
    return
  }
  func.func @transform_0(%arg0: i32) -> (i32, i32, i32) {
    %c0_i32 = arith.constant 0 : i32
    %c0_i32_0 = arith.constant 0 : i32
    %c0_i32_1 = arith.constant 0 : i32
    return %arg0, %c0_i32, %c0_i32_0 : i32, i32, i32
  }
  func.func @transform_1(%arg0: i32) -> (i32, i32) {
    %c0_i32 = arith.constant 0 : i32
    %c0_i32_0 = arith.constant 0 : i32
    %c0_i32_1 = arith.constant 0 : i32
    return %c0_i32, %c0_i32_0 : i32, i32
  }
  func.func @transform_2(%arg0: i32) -> (i32, i32) {
    %c0_i32 = arith.constant 0 : i32
    %c0_i32_0 = arith.constant 0 : i32
    %c0_i32_1 = arith.constant 0 : i32
    return %c0_i32, %c0_i32_0 : i32, i32
  }
  func.func @transform_3(%arg0: i32) -> (i32, i32) {
    %c0_i32 = arith.constant 0 : i32
    %c0_i32_0 = arith.constant 0 : i32
    %c0_i32_1 = arith.constant 0 : i32
    return %c0_i32, %c0_i32_0 : i32, i32
  }
  func.func @transform_4(%arg0: i32) -> (i32, i32) {
    %c0_i32 = arith.constant 0 : i32
    %c0_i32_0 = arith.constant 0 : i32
    %c0_i32_1 = arith.constant 0 : i32
    return %c0_i32, %c0_i32_0 : i32, i32
  }
  func.func @transform_5(%arg0: i32) -> (i32, i32) {
    %c0_i32 = arith.constant 0 : i32
    %c0_i32_0 = arith.constant 0 : i32
    %c0_i32_1 = arith.constant 0 : i32
    return %c0_i32, %c0_i32_0 : i32, i32
  }
  func.func @transform_6(%arg0: i32) -> (i32, i32) {
    %c0_i32 = arith.constant 0 : i32
    %c0_i32_0 = arith.constant 0 : i32
    %c0_i32_1 = arith.constant 0 : i32
    return %c0_i32, %c0_i32_0 : i32, i32
  }
  func.func @transform_7(%arg0: i32) -> (i32, i32) {
    %c0_i32 = arith.constant 0 : i32
    %c0_i32_0 = arith.constant 0 : i32
    %c0_i32_1 = arith.constant 0 : i32
    return %c0_i32, %c0_i32_0 : i32, i32
  }
  func.func @transform_8(%arg0: i32) -> (i32, i32) {
    %c0_i32 = arith.constant 0 : i32
    %c0_i32_0 = arith.constant 0 : i32
    %c0_i32_1 = arith.constant 0 : i32
    return %c0_i32, %c0_i32_0 : i32, i32
  }
  func.func @transform_9(%arg0: i32) -> (i32, i32) {
    %c0_i32 = arith.constant 0 : i32
    %c0_i32_0 = arith.constant 0 : i32
    %c0_i32_1 = arith.constant 0 : i32
    return %c0_i32, %c0_i32_0 : i32, i32
  }
  func.func @transform_10(%arg0: i32) -> (i32, i32) {
    %c0_i32 = arith.constant 0 : i32
    %c0_i32_0 = arith.constant 0 : i32
    %c0_i32_1 = arith.constant 0 : i32
    return %c0_i32, %c0_i32_0 : i32, i32
  }
  func.func @transform_11(%arg0: i32) -> (i32, i32) {
    %c0_i32 = arith.constant 0 : i32
    %c0_i32_0 = arith.constant 0 : i32
    %c0_i32_1 = arith.constant 0 : i32
    return %c0_i32, %c0_i32_0 : i32, i32
  }
  func.func @transform_12(%arg0: i32) -> (i32, i32) {
    %c0_i32 = arith.constant 0 : i32
    %c0_i32_0 = arith.constant 0 : i32
    %c0_i32_1 = arith.constant 0 : i32
    return %c0_i32, %c0_i32_0 : i32, i32
  }
  func.func @transform_13(%arg0: i32) -> (i32, i32) {
    %c0_i32 = arith.constant 0 : i32
    %c0_i32_0 = arith.constant 0 : i32
    %c0_i32_1 = arith.constant 0 : i32
    return %c0_i32, %c0_i32_0 : i32, i32
  }
  func.func @transform_14(%arg0: i32) -> (i32, i32, i32) {
    %c0_i32 = arith.constant 0 : i32
    %c0_i32_0 = arith.constant 0 : i32
    %c0_i32_1 = arith.constant 0 : i32
    return %arg0, %c0_i32, %c0_i32_0 : i32, i32, i32
  }
}

</mosaic_0001>

<bundles_post_ra>
// kernel: tpu_custom_call.1
= control target key start
LH: loop header
LB: loop body
LE: loop exit
PB: predicated region body
PF: predicated region fallthrough
CT: control target
= control target key end

     0   :  { %s6379_s0 = inlined_call_operand.hbm [shape: f32[4,16,128], index: 0, kind: input, shape index: {}]   ;;  %s6380_s1 = inlined_call_operand.hbm [shape: f32[16,16], index: 1, kind: input, shape index: {}]   ;;  %s6381_s2 = inlined_call_operand.hbm [shape: f32[1,128], index: 2, kind: input, shape index: {}]   ;;  %s6382_s3 = inlined_call_operand.vmem [shape: f32[1,128], index: 3, kind: input, shape index: {}]   ;;  %s6383_s4 = inlined_call_operand.hbm [shape: f32[128,384], index: 4, kind: input, shape index: {}]   ;;  %s6384_s5 = inlined_call_operand.vmem [shape: f32[1,384], index: 5, kind: input, shape index: {}]   ;;  %s6385_s6 = inlined_call_operand.hbm [shape: f32[128,128], index: 6, kind: input, shape index: {}]   ;;  %s6386_s7 = inlined_call_operand.vmem [shape: f32[1,128], index: 7, kind: input, shape index: {}]   ;;  %s6387_s8 = inlined_call_operand.vmem [shape: f32[1,128], index: 8, kind: input, shape index: {}]   ;;  %s6388_s9 = inlined_call_operand.vmem [shape: f32[1,128], index: 9, kind: input, shape index: {}]   ;;  %s6389_s10 = inlined_call_operand.hbm [shape: f32[128,512], index: 10, kind: input, shape index: {}]   ;;  %s6390_s11 = inlined_call_operand.vmem [shape: f32[1,512], index: 11, kind: input, shape index: {}]   ;;  %s6391_s12 = inlined_call_operand.hbm [shape: f32[512,128], index: 12, kind: input, shape index: {}]   ;;  %s6392_s13 = inlined_call_operand.vmem [shape: f32[1,128], index: 13, kind: input, shape index: {}]   ;;  %s6393_s14 = inlined_call_operand.hbm [shape: f32[4,16,128], index: 14, kind: output, shape index: {}]  }
   0x1   :  { %6402 = sst [smem:[#allocation20_spill]] %s6380_s1 }
   0x2   :  { %6403 = sst [smem:[#allocation21_spill]] %s6383_s4 }
   0x3   :  { %6404 = sst [smem:[#allocation22_spill]] %s6386_s7 }
   0x4   :  { %6405 = sst [smem:[#allocation23_spill]] %s6387_s8 }
   0x5   :  { %6406 = sst [smem:[#allocation24_spill]] %s6388_s9 }
   0x6   :  { %6407 = sst [smem:[#allocation25_spill]] %s6390_s11 }
   0x7   :  { %6408 = sst [smem:[#allocation26_spill]] %s6392_s13 }
   0x8   :  { %6409 = sst [smem:[#allocation27_spill]] %s6393_s14 }
   0x9   :  { %19 = vsyncpa [#allocation3], 0 }
   0xa   :  { %21 = vsyncpa [#allocation3 + $0x1], 0 }
   0xb   :  { %22 = vsyncpa [#allocation6], 0 }
   0xc   :  { %23 = vsyncpa [#allocation9], 0 }
   0xd   :  { %24 = vsyncpa [#allocation12], 0 }
   0xe   :  { %25 = vsyncpa [#allocation4], 0 }
   0xf   :  { %27 = vsyncpa [#allocation4 + $0x1], 0  ;;  %s5342_s29 = smov 0   ;;  %s5344_s30 = smov 0  }
  0x10   :  { %s5346_s15 = smov 0   ;;  %s5348_s16 = smov 0  }
  0x11 LB: > { %s5246_s17 = smov [#allocation5]   ;;  %s5363_s19 = sadd.s32 4294967295, %s5244_s16   ;;  %s5244_s16 = sphi %s5348_s16, %s6444_s16   ;;  %s5240_s15 = sphi %s5346_s15, %s6443_s15   ;;  %s5236_s30 = sphi %s5344_s30, %s6442_s30   ;;  %s5232_s29 = sphi %s5342_s29, %s6441_s29  }
  0x12   : > { %s375_s18 = sshll.u32 %s5246_s17, 4  ;;  %p3841_p0 = scmp.ge.s32.totalorder %s5244_s16, 1  ;;  %s5368_s18 = int_to_ptr.vmem [resolvable:$true] %s375_s18 }
  0x13   : > { %p6397_p1 = scmp.eq.s32.totalorder %s5363_s19, 0  ;;  %p363_p2 = scmp.lt.s32.totalorder %s5244_s16, 3 }
  0x14   : > { %s5247_s21 = smov [#allocation8]   ;;  %s5248_s24 = smov [#allocation11]  }
  0x15   : > { %p5370_p3 = pnand %p3841_p0, %p363_p2  ;;  %s402_s22 = sshll.u32 %s5247_s21, 4  ;;  %s5383_s22 = int_to_ptr.vmem [resolvable:$true] %s402_s22 }
  0x16   : > { %s5385_s25 = sshll.u32 %s5248_s24, 4  ;;  %s6412_s1 = sld [smem:[#allocation20_spill]]  ;;  %s441_s25 = int_to_ptr.vmem [resolvable:$true] %s5385_s25 }
  0x17   : > { %s6410_s20 = scalar_select %p5370_p3, 1, 0 }
  0x18   : > { %p4638_p5 = pneg %p5370_p3 }
  0x1a   : > { %p5379_p6 = pnand %p4638_p5, %p6397_p1 }
  0x1c   : > { %s4968_s28 = scalar_lea.hbm %s6412_s1, 256  ;;  %p5395_p8 = pneg %p5379_p6 }
  0x1d   : > { %p4969_p7 = scmp.ne.s32.totalorder %s6412_s1, %s4968_s28  ;;  %p4975_p11 = scmp.lt.u32.totalorder %s4968_s28, %s6412_s1 }
  0x1f   : > { %p4971_p9 = pnand %p5395_p8, %p4969_p7 }
  0x21   : > { %p4972_p10 = pneg %p4971_p9 }
  0x23   : > { %p4977_p12 = pnand %p4975_p11, %p4972_p10 }
  0x25   : > { %4980 = shalt.err (!%p4977_p12)
}
  0x26   : > { %s4981_s14 = scalar_lea.vmem %s5368_s18, 256  ;;  %p4989_p5 = scmp.lt.s32.totalorder %s5368_s18, %s5368_s18 }
  0x27   : > { %p4982_p13 = scmp.ne.s32.totalorder %s5368_s18, %s4981_s14  ;;  %p4990_p4 = scmp.lt.s32.totalorder %s4981_s14, %s4981_s14 }
  0x29   : > { %p4984_p0 = pnand %p4982_p13, %p5395_p8  ;;  %p4991_p7 = por %p4990_p4, %p4989_p5 }
  0x2b   : > { %p4985_p2 = pneg %p4984_p0 }
  0x2d   : > { %p4992_p9 = pnand %p4991_p7, %p4985_p2 }
  0x2f   : > { %4995 = shalt.err (!%p4992_p9)
}
  0x30   : > { %s6395_s26 = smov 128   ;;  %s6399_s13 = smov 8  }
  0x31   : > { %4641 = dma.hbm_to_vmem [thread:$0]  (!%p5379_p6), %s6412_s1, 256, %s5368_s18, [#allocation6], %s6395_s26, %s6395_s26, %s6399_s13  }
  0x32   : > { %s6414_s4 = sld [smem:[#allocation21_spill]] }
  0x38   : > { %s4996_s14 = scalar_lea.hbm %s6414_s4, 6144 }
  0x39   : > { %p4997_p4 = scmp.ne.s32.totalorder %s6414_s4, %s4996_s14  ;;  %p5003_p12 = scmp.lt.u32.totalorder %s4996_s14, %s6414_s4 }
  0x3b   : > { %p4999_p10 = pnand %p4997_p4, %p5395_p8 }
  0x3d   : > { %p5000_p11 = pneg %p4999_p10 }
  0x3f   : > { %p5005_p13 = pnand %p5003_p12, %p5000_p11 }
  0x41   : > { %5008 = shalt.err (!%p5005_p13)
}
  0x42   : > { %s5009_s18 = scalar_lea.vmem %s5383_s22, 6144  ;;  %p5017_p7 = scmp.lt.s32.totalorder %s5383_s22, %s5383_s22 }
  0x43   : > { %p5010_p0 = scmp.ne.s32.totalorder %s5383_s22, %s5009_s18  ;;  %p5018_p9 = scmp.lt.s32.totalorder %s5009_s18, %s5009_s18 }
  0x45   : > { %p5012_p2 = pnand %p5010_p0, %p5395_p8  ;;  %p5019_p4 = por %p5018_p9, %p5017_p7 }
  0x47   : > { %p5013_p5 = pneg %p5012_p2 }
  0x49   : > { %p5020_p10 = pnand %p5019_p4, %p5013_p5 }
  0x4b   : > { %5023 = shalt.err (!%p5020_p10)
}
  0x4c   : > { %s5251_s9 = smov 384   ;;  %s5252_s7 = smov 24  }
  0x4d   : > { %4647 = dma.hbm_to_vmem [thread:$0]  (!%p5379_p6), %s6414_s4, 6144, %s5383_s22, [#allocation9], %s5251_s9, %s5251_s9, %s5252_s7  }
  0x4e   : > { %s5024_s17 = scalar_lea.hbm %s6389_s10, 8192 }
  0x4f   : > { %p5025_p11 = scmp.ne.s32.totalorder %s6389_s10, %s5024_s17  ;;  %p5031_p0 = scmp.lt.u32.totalorder %s5024_s17, %s6389_s10 }
  0x51   : > { %p5027_p12 = pnand %p5025_p11, %p5395_p8 }
  0x53   : > { %p5028_p13 = pneg %p5027_p12 }
  0x55   : > { %p5033_p2 = pnand %p5031_p0, %p5028_p13 }
  0x57   : > { %5036 = shalt.err (!%p5033_p2)
}
  0x58   : > { %s5037_s8 = scalar_lea.vmem %s441_s25, 8192  ;;  %p5045_p4 = scmp.lt.s32.totalorder %s441_s25, %s441_s25 }
  0x59   : > { %p5038_p5 = scmp.ne.s32.totalorder %s441_s25, %s5037_s8  ;;  %p5046_p10 = scmp.lt.s32.totalorder %s5037_s8, %s5037_s8 }
  0x5b   : > { %p5040_p7 = pnand %p5038_p5, %p5395_p8  ;;  %p5047_p1 = por %p5046_p10, %p5045_p4 }
  0x5d   : > { %p5041_p9 = pneg %p5040_p7 }
  0x5f   : > { %p5048_p3 = pnand %p5047_p1, %p5041_p9 }
  0x61   : > { %5051 = shalt.err (!%p5048_p3)
}
  0x62   : > { %s5253_s22 = smov 512   ;;  %s5254_s9 = smov 32  }
  0x63   : > { %4653 = dma.hbm_to_vmem [thread:$0]  (!%p5379_p6), %s6389_s10, 8192, %s441_s25, [#allocation12], %s5253_s22, %s5253_s22, %s5254_s9  }
  0x64   : > { %s5255_s11 = smov [#allocation7]   ;;  %s5256_s28 = smov [#allocation10]  }
  0x65   : > { %s389_s27 = sshll.u32 %s5255_s11, 4  ;;  %s418_s17 = sshll.u32 %s5256_s28, 4  ;;  %s390_s27 = int_to_ptr.vmem [resolvable:$true] %s389_s27  ;;  %s419_s17 = int_to_ptr.vmem [resolvable:$true] %s418_s17 }
  0x66   : > { %s5052_s18 = scalar_lea.hbm %s6381_s2, 16 }
  0x67   : > { %p5053_p1 = scmp.ne.s32.totalorder %s6381_s2, %s5052_s18  ;;  %p5059_p12 = scmp.lt.u32.totalorder %s5052_s18, %s6381_s2 }
  0x69   : > { %p5055_p3 = pnand %p5053_p1, %p5395_p8 }
  0x6b   : > { %p5056_p11 = pneg %p5055_p3 }
  0x6d   : > { %p5061_p13 = pnand %p5059_p12, %p5056_p11 }
  0x6f   : > { %5064 = shalt.err (!%p5061_p13)
}
  0x70   : > { %s5065_s25 = scalar_lea.vmem %s390_s27, 16  ;;  %s5072_s22 = scalar_lea.vmem %s390_s27, 32 }
  0x71   : > { %p5066_p0 = scmp.ne.s32.totalorder %s390_s27, %s5065_s25  ;;  %p5073_p7 = scmp.lt.s32.totalorder %s390_s27, %s390_s27 }
  0x72   : > { %p5074_p9 = scmp.lt.s32.totalorder %s5072_s22, %s5065_s25 }
  0x73   : > { %p5068_p2 = pnand %p5066_p0, %p5395_p8 }
  0x74   : > { %p5075_p4 = por %p5074_p9, %p5073_p7 }
  0x75   : > { %p5069_p5 = pneg %p5068_p2 }
  0x77   : > { %p5076_p10 = pnand %p5075_p4, %p5069_p5 }
  0x79   : > { %5079 = shalt.err (!%p5076_p10)
}
  0x7a   : > { %4644 = dma.hbm_to_vmem [thread:$0]  (!%p5379_p6), %s6381_s2, 16, %s390_s27, [#allocation6]  }
  0x7b   : > { %s5080_s26 = scalar_lea.hbm %s6385_s6, 2048 }
  0x7c   : > { %p5081_p1 = scmp.ne.s32.totalorder %s6385_s6, %s5080_s26  ;;  %p5087_p12 = scmp.lt.u32.totalorder %s5080_s26, %s6385_s6 }
  0x7e   : > { %p5083_p3 = pnand %p5081_p1, %p5395_p8 }
  0x80   : > { %p5084_p11 = pneg %p5083_p3 }
  0x82   : > { %p5089_p13 = pnand %p5087_p12, %p5084_p11 }
  0x84   : > { %5092 = shalt.err (!%p5089_p13)
}
  0x85   : > { %s5093_s14 = scalar_lea.vmem %s419_s17, 2048  ;;  %p5101_p7 = scmp.lt.s32.totalorder %s419_s17, %s419_s17 }
  0x86   : > { %p5094_p0 = scmp.ne.s32.totalorder %s419_s17, %s5093_s14  ;;  %p5102_p9 = scmp.lt.s32.totalorder %s5093_s14, %s5093_s14 }
  0x88   : > { %p5096_p2 = pnand %p5094_p0, %p5395_p8  ;;  %p5103_p4 = por %p5102_p9, %p5101_p7 }
  0x8a   : > { %p5097_p5 = pneg %p5096_p2 }
  0x8c   : > { %p5104_p10 = pnand %p5103_p4, %p5097_p5 }
  0x8e   : > { %5107 = shalt.err (!%p5104_p10)
}
  0x8f   : > { %s6415_s27 = smov 8   ;;  %s6416_s18 = smov 128  }
  0x90   : > { %4650 = dma.hbm_to_vmem [thread:$0]  (!%p5379_p6), %s6385_s6, 2048, %s419_s17, [#allocation9], %s6416_s18, %s6416_s18, %s6415_s27  }
  0x91   : > { %s5257_s22 = smov [#allocation13]   ;;  %s5108_s4 = scalar_lea.hbm %s6391_s12, 8192 }
  0x92   : > { %s456_s13 = sshll.u32 %s5257_s22, 4  ;;  %p5109_p1 = scmp.ne.s32.totalorder %s6391_s12, %s5108_s4  ;;  %s457_s13 = int_to_ptr.vmem [resolvable:$true] %s456_s13 }
  0x93   : > { %p5115_p12 = scmp.lt.u32.totalorder %s5108_s4, %s6391_s12 }
  0x94   : > { %p5111_p3 = pnand %p5109_p1, %p5395_p8 }
  0x96   : > { %p5112_p11 = pneg %p5111_p3 }
  0x98   : > { %p5117_p13 = pnand %p5115_p12, %p5112_p11 }
  0x9a   : > { %5120 = shalt.err (!%p5117_p13)
}
  0x9b   : > { %s5121_s17 = scalar_lea.vmem %s457_s13, 8192  ;;  %p5129_p7 = scmp.lt.s32.totalorder %s457_s13, %s457_s13 }
  0x9c   : > { %p5122_p0 = scmp.ne.s32.totalorder %s457_s13, %s5121_s17  ;;  %p5130_p9 = scmp.lt.s32.totalorder %s5121_s17, %s5121_s17 }
  0x9e   : > { %p5124_p2 = pnand %p5122_p0, %p5395_p8  ;;  %p5131_p4 = por %p5130_p9, %p5129_p7 }
  0xa0   : > { %p5125_p5 = pneg %p5124_p2 }
  0xa2   : > { %p5132_p10 = pnand %p5131_p4, %p5125_p5 }
  0xa4   : > { %5135 = shalt.err (!%p5132_p10)
}
  0xa5   : > { %4656 = dma.hbm_to_vmem [thread:$0]  (!%p5379_p6), %s6391_s12, 8192, %s457_s13, [#allocation12], %s6416_s18, %s6416_s18, %s6415_s27  }
  0xa6   : > { %s3840_s23 = sadd.s32 4294967294, %s5244_s16   ;;  %s5523_s21 = sadd.s32 1, %s5244_s16  }
  0xa7   : > { %s37_s8 = ssub.s32 %s5244_s16, %s5523_s21  ;;  %s40_s25 = sadd.s32 1, %s5240_s15 }
  0xa8   : > { %p38_p8 = scmp.eq.s32.totalorder %s37_s8, 0  ;;  %p47_p1 = scmp.ne.s32.totalorder %s5240_s15, %s5236_s30 }
  0xa9   : > { %p48_p3 = scmp.eq.s32.totalorder %s5244_s16, 0  ;;  %p53_p11 = scmp.ne.s32.totalorder %s5236_s30, %s5232_s29 }
  0xaa   : > { %s5534_s22 = scalar_select %p38_p8, %s5240_s15, %s40_s25  }
  0xab   : > { %p5536_p12 = por %p48_p3, %p47_p1  ;;  %p6418_p13 = scmp.eq.s32.totalorder %s5363_s19, 0 }
  0xac   : > { %p350_p0 = scmp.eq.s32.totalorder %s5363_s19, 1  ;;  %p356_p2 = scmp.eq.s32.totalorder %s3840_s23, 1 }
  0xad   : > { %p5542_p6 = por %p6418_p13, %p53_p11  ;;  %p4671_p5 = scmp.lt.s32.totalorder %s5244_s16, 2 }
  0xae   : > { %s473_s1 = sand.u32 1, %s5240_s15   ;;  %p5549_p7 = por %p350_p0, %p47_p1 }
  0xaf   : > { %p5553_p9 = por %p356_p2, %p53_p11  ;;  %s3849_s7 = sshll.u32 %s473_s1, 5 }
  0xb0   : > { %s6420_s4 = scalar_select %p5549_p7, 1, 0 }
  0xb1   : > { %s6421_s26 = scalar_select %p5553_p9, 1, 0 }
  0xb2   : > { %s3923_s11 = sshll.u32 %s5244_s16, 9  ;;  %s477_s14 = scalar_lea.vmem [#allocation2], %s3849_s7 }
  0xb3   : > { %s5561_s24 = scalar_lea.hbm %s6379_s0, %s3923_s11  ;;  %s485_s23 = sshll.u32 %s477_s14, 4  ;;  %s5563_s23 = int_to_ptr.vmem [resolvable:$true] %s485_s23 }
  0xb4   : > { %p5567_p4 = pnand %p4671_p5, %p5536_p12  ;;  %s5571_s25 = scalar_lea.sflag [#allocation3], %s473_s1 }
  0xb5   : > { %s5136_s28 = scalar_lea.hbm %s5561_s24, 512  ;;  %s5141_s9 = scalar_lea.hbm %s6379_s0, 1024 }
  0xb6   : > { %p5137_p10 = scmp.ne.s32.totalorder %s5561_s24, %s5136_s28  ;;  %p5138_p8 = pneg %p5567_p4 }
  0xb7   : > { %p5142_p11 = scmp.lt.u32.totalorder %s5561_s24, %s6379_s0  ;;  %p5143_p12 = scmp.lt.u32.totalorder %s5141_s9, %s5136_s28 }
  0xb8   : > { %p5139_p1 = pnand %p5138_p8, %p5137_p10  ;;  %p5145_p0 = scmp.lt.u32.totalorder %s5136_s28, %s5561_s24 }
  0xb9   : > { %p5144_p13 = por %p5143_p12, %p5142_p11 }
  0xba   : > { %p5140_p3 = pneg %p5139_p1 }
  0xbb   : > { %p5146_p2 = por %p5145_p0, %p5144_p13 }
  0xbd   : > { %p5147_p5 = pnand %p5146_p2, %p5140_p3 }
  0xbf   : > { %5150 = shalt.err (!%p5147_p5)
}
  0xc0   : > { %s5151_s1 = scalar_lea.vmem %s5563_s23, 512  ;;  %s5258_s7 = smov [#allocation2]  }
  0xc1   : > { %p5152_p10 = scmp.ne.s32.totalorder %s5563_s23, %s5151_s1  ;;  %s5156_s11 = sshll.u32 %s5258_s7, 4  ;;  %s5157_s11 = int_to_ptr.vmem [resolvable:$false] %s5156_s11 }
  0xc2   : > { %s5158_s17 = scalar_lea.vmem %s5157_s11, 1024  ;;  %p5159_p7 = scmp.lt.s32.totalorder %s5563_s23, %s5157_s11 }
  0xc3   : > { %p5154_p1 = pnand %p5152_p10, %p5138_p8  ;;  %p5160_p11 = scmp.lt.s32.totalorder %s5158_s17, %s5151_s1 }
  0xc5   : > { %p5155_p9 = pneg %p5154_p1  ;;  %p5161_p12 = por %p5160_p11, %p5159_p7 }
  0xc7   : > { %p5162_p13 = pnand %p5161_p12, %p5155_p9 }
  0xc9   : > { %5165 = shalt.err (!%p5162_p13)
}
  0xca   : > { %4660 = dma.hbm_to_vmem [thread:$0]  (!%p5567_p4), %s5561_s24, 512, %s5563_s23, %s5571_s25, %s6416_s18, %s6416_s18, %s6415_s27  }
  0xcb   : > { %p6423_p8 = scmp.ne.s32.totalorder %s6410_s20, 0 }
  0xcc   : > { %s5605_s28 = sand.u32 (!%p6423_p8), 1, %s5236_s30  }
  0xcd   : > { %497 = sbr.rel (%p6423_p8) target bundleno = 3430 (0xd66), region = 76  ;;  %s3854_s9 = sshll.u32 (!%p6423_p8), %s5605_s28, 5 }
  0xce   : > { %s500_s14 = scalar_lea.sflag (!%p6423_p8), [#allocation3], %s5605_s28  ;;  %s5611_s8 = scalar_lea.vmem (!%p6423_p8), [#allocation2], %s3854_s9 }
  0xd4   : > { %5211 = dma.done.wait (%p5542_p6), %s500_s14, 512  }
  0xd5   : > { %5213 = vsyncadd (%p5542_p6), %s500_s14, 4294966784  ;;  %p6424_p7 = scmp.eq.s32.totalorder %s5363_s19, 0 }
  0xd7   : > { %5215 = dma.done.wait (%p6424_p7), [#allocation6], 272   ;;  %p6425_p9 = pmov %p6424_p7 }
  0xd8   : > { %p6426_p4 = pmov %p6424_p7 }
  0xd9   : > { %5217 = vsyncadd (%p6425_p9), [#allocation6], 4294967024 }
  0xda   : > { %5219 = dma.done.wait (%p6426_p4), [#allocation9], 8192   ;;  %p6427_p3 = pmov %p6426_p4 }
  0xdc   : > { %5221 = vsyncadd (%p6427_p3), [#allocation9], 4294959104  ;;  %p6428_p0 = pmov %p6427_p3 }
  0xde   : > { %5223 = dma.done.wait (%p6428_p0), [#allocation12], 16384   ;;  %p6429_p2 = pmov %p6428_p0 }
  0xdf   : > { %v574_v0 = vld [vmem:[%s5611_s8] sm:$0xff]  ;;  %v575_v1 = vld [vmem:[%s5611_s8 + $0x8] sm:$0xff]  ;;  %v5632_v2 = vld [vmem:[%s5611_s8 + $0x10] sm:$0xff]  ;;  %vm984_vm0 = vcmask 261120   ;;  %s5260_s24 = smov 96   ;;  %s5261_s23 = smov 32  }
  0xe0   : > { %5225 = vsyncadd (%p6429_p2), [#allocation12], 4294950912  ;;  %584 = vadd.xlane.f32.xlu0 %v574_v0  ;;  %v650_v3 = vld [vmem:[#allocation8 + $0x8] sm:$0xff]  ;;  %v653_v4 = vld [vmem:[#allocation8 + $0x20] sm:$0xff]  ;;  %s5262_s25 = smov 64   ;;  %vm1337_vm3 = vcmask 130048  }
  0xe1   : > { %v649_v5 = vld [vmem:[#allocation8] sm:$0xff]  ;;  %v4306_v6 = vpack.c.bf16 %v653_v4, %v650_v3  ;;  %v652_v7 = vld [vmem:[#allocation8 + $0x18] sm:$0xff]  ;;  %v659_v9 = vld [vmem:[#allocation8 + $0x50] sm:$0xff]  ;;  %vm1776_vm5 = vcmask 523264   ;;  %vm1779_vm6 = vcmask 785408   ;;  %s6432_s11 = sld [smem:[#allocation22_spill]] }
  0xe2   : > { %v656_v8 = vld [vmem:[#allocation8 + $0x38] sm:$0xff]  ;;  %v4308_v10 = vpack.c.bf16 %v652_v7, %v649_v5  ;;  %v651_v12 = vld [vmem:[#allocation8 + $0x10] sm:$0xff]  ;;  %v654_v13 = vld [vmem:[#allocation8 + $0x28] sm:$0xff]  ;;  %v5259_v7 = vmov 0.0   ;;  %s6433_s20 = sld [smem:[#allocation23_spill]]  ;;  %s6434_s13 = sld [smem:[#allocation24_spill]] }
  0xe3   : > { %v4310_v11 = vpack.c.bf16 %v659_v9, %v656_v8  ;;  %v655_v14 = vld [vmem:[#allocation8 + $0x30] sm:$0xff]  ;;  %4307 = vmatprep.subr.bf16.mxu0 %v4306_v6  ;;  %v4338_v15 = vpack.c.bf16 %v654_v13, %v651_v12  ;;  %v658_v16 = vld [vmem:[#allocation8 + $0x48] sm:$0xff]  ;;  %v665_v18 = vld [vmem:[#allocation8 + $0x80] sm:$0xff]  ;;  %778 = vmatprep.mubr.f32.mxu0 %v5259_v7  ;;  %s6436_s7 = sld [smem:[#allocation26_spill]]  ;;  %s3925_s17 = sshll.u32 %s5363_s19, 9 }
  0xe4   : > { %586 = vadd.xlane.f32.xlu0 %v575_v1  ;;  %v662_v17 = vld [vmem:[#allocation8 + $0x68] sm:$0xff]  ;;  %4309 = vmatpush1.bf16.msra.mxu0 %v4308_v10  ;;  %v4312_v19 = vpack.c.bf16 %v658_v16, %v655_v14  ;;  %v657_v20 = vld [vmem:[#allocation8 + $0x40] sm:$0xff]  ;;  %v660_v21 = vld [vmem:[#allocation8 + $0x58] sm:$0xff]  ;;  %s6437_s27 = sld [smem:[#allocation27_spill]]  ;;  %p6438_p5 = scmp.ne.s32.totalorder %s6420_s4, 0 }
  0xe5   : > { %4311 = vmatprep.subr.bf16.mxu0 %v4310_v11  ;;  %4339 = vmatprep.subr.bf16.mxu1 %v4338_v15  ;;  %v4314_v22 = vpack.c.bf16 %v665_v18, %v662_v17  ;;  %v4342_v23 = vpack.c.bf16 %v660_v21, %v657_v20  ;;  %v661_v24 = vld [vmem:[#allocation8 + $0x60] sm:$0xff]  ;;  %v664_v25 = vld [vmem:[#allocation8 + $0x78] sm:$0xff]  ;;  %v671_v37 = vld [vmem:[#allocation8 + $0xb0] sm:$0xff]  ;;  %s5264_s19 = smov [#allocation14]  }
  0xe6   : > { %4341 = vmatpush3.bf16.msra.mxu1 %v4338_v15  ;;  %v4316_v26 = vpack.c.bf16 %v664_v25, %v661_v24  ;;  %v5644_v35 = vld [vmem:[%s5611_s8 + $0x18] sm:$0xff]  ;;  %v668_v36 = vld [vmem:[#allocation8 + $0x98] sm:$0xff]  ;;  %v663_v38 = vld [vmem:[#allocation8 + $0x70] sm:$0xff] }
  0xe7   : > { %4343 = vmatprep.subr.bf16.mxu1 %v4342_v23  ;;  %v4318_v39 = vpack.c.bf16 %v671_v37, %v668_v36  ;;  %v666_v40 = vld [vmem:[#allocation8 + $0x88] sm:$0xff]  ;;  %v667_v41 = vld [vmem:[#allocation8 + $0x90] sm:$0xff]  ;;  %v677_v46 = vld [vmem:[#allocation8 + $0xe0] sm:$0xff] }
  0xe8   : > { %588 = vadd.xlane.f32.xlu0 %v5632_v2  ;;  %4313 = vmatpush1.bf16.msra.mxu0 %v4312_v19  ;;  %v670_v42 = vld [vmem:[#allocation8 + $0xa8] sm:$0xff]  ;;  %v4346_v43 = vpack.c.bf16 %v666_v40, %v663_v38  ;;  %v669_v47 = vld [vmem:[#allocation8 + $0xa0] sm:$0xff]  ;;  %v672_v49 = vld [vmem:[#allocation8 + $0xb8] sm:$0xff] }
  0xe9   : > { %4315 = vmatprep.subr.bf16.mxu0 %v4314_v22  ;;  %v4320_v44 = vpack.c.bf16 %v670_v42, %v667_v41  ;;  %v674_v45 = vld [vmem:[#allocation8 + $0xc8] sm:$0xff]  ;;  %v673_v50 = vld [vmem:[#allocation8 + $0xc0] sm:$0xff]  ;;  %v676_v51 = vld [vmem:[#allocation8 + $0xd8] sm:$0xff]  ;;  %v4350_v52 = vpack.c.bf16 %v672_v49, %v669_v47 }
  0xea   : > { %4345 = vmatpush3.bf16.msra.mxu1 %v4342_v23  ;;  %v4322_v48 = vpack.c.bf16 %v677_v46, %v674_v45  ;;  %v4324_v53 = vpack.c.bf16 %v676_v51, %v673_v50  ;;  %v680_v54 = vld [vmem:[#allocation8 + $0xf8] sm:$0xff]  ;;  %v683_v55 = vld [vmem:[#allocation8 + $0x110] sm:$0xff]  ;;  %v678_v58 = vld [vmem:[#allocation8 + $0xe8] sm:$0xff]  ;;  %s6333_s18 = scalar_lea.hbm %s6437_s27, %s3925_s17 }
  0xeb   : > { %4347 = vmatprep.subr.bf16.mxu1 %v4346_v43  ;;  %v675_v56 = vld [vmem:[#allocation8 + $0xd0] sm:$0xff]  ;;  %v4326_v57 = vpack.c.bf16 %v683_v55, %v680_v54  ;;  %v682_v60 = vld [vmem:[#allocation8 + $0x108] sm:$0xff]  ;;  %v684_v4 = vld [vmem:[#allocation8 + $0x118] sm:$0xff] }
  0xec   : > { %4317 = vmatpush1.bf16.msra.mxu0 %v4316_v26  ;;  %v679_v59 = vld [vmem:[#allocation8 + $0xf0] sm:$0xff]  ;;  %v4354_v61 = vpack.c.bf16 %v678_v58, %v675_v56  ;;  %v686_v63 = vld [vmem:[#allocation8 + $0x128] sm:$0xff]  ;;  %v685_v5 = vld [vmem:[#allocation8 + $0x120] sm:$0xff] }
  0xed   : > { %4319 = vmatprep.subr.bf16.mxu0 %v4318_v39  ;;  %v4328_v62 = vpack.c.bf16 %v682_v60, %v679_v59  ;;  %v688_v6 = vld [vmem:[#allocation8 + $0x138] sm:$0xff]  ;;  %v695_v11 = vld [vmem:[#allocation8 + $0x170] sm:$0xff]  ;;  %v690_v14 = vld [vmem:[#allocation8 + $0x148] sm:$0xff]  ;;  %v699_v59 = vlaneseq }
  0xee   : > { %4349 = vmatpush3.bf16.msra.mxu1 %v4346_v43  ;;  %v4332_v9 = vpack.c.bf16 %v688_v6, %v685_v5  ;;  %v692_v10 = vld [vmem:[#allocation8 + $0x158] sm:$0xff]  ;;  %v687_v12 = vld [vmem:[#allocation8 + $0x130] sm:$0xff]  ;;  %v694_v16 = vld [vmem:[#allocation8 + $0x168] sm:$0xff] }
  0xef   : > { %4351 = vmatprep.subr.bf16.mxu1 %v4350_v52  ;;  %v4334_v13 = vpack.c.bf16 %v695_v11, %v692_v10  ;;  %v691_v15 = vld [vmem:[#allocation8 + $0x150] sm:$0xff]  ;;  %v4362_v17 = vpack.c.bf16 %v690_v14, %v687_v12  ;;  %v693_v19 = vld [vmem:[#allocation8 + $0x160] sm:$0xff]  ;;  %v696_v20 = vld [vmem:[#allocation8 + $0x178] sm:$0xff]  ;;  %v5658_v60 = vshrl.u32 %v699_v59, 7 }
  0xf0   : > { %4321 = vmatpush1.bf16.msra.mxu0 %v4320_v44  ;;  %v4336_v18 = vpack.c.bf16 %v694_v16, %v691_v15  ;;  %v4366_v21 = vpack.c.bf16 %v696_v20, %v693_v19  ;;  %v3862_v40 = vld [vmem:[#allocation7] ss:$0 sm:$0xff]  ;;  %v3863_v41 = vld [vmem:[%s6382_s3] ss:$0 sm:$0xff]  ;;  %vm5687_vm1 = vmpackc.low %vm984_vm0, %vm984_vm0 }
  0xf1   : > { %4323 = vmatprep.subr.bf16.mxu0 %v4322_v48 }
  0xf2   : > { %4353 = vmatpush3.bf16.msra.mxu1 %v4350_v52 }
  0xf3   : > { %4355 = vmatprep.subr.bf16.mxu1 %v4354_v61 }
  0xf4   : > { %4325 = vmatpush1.bf16.msra.mxu0 %v4324_v53 }
  0xf5   : > { %4327 = vmatprep.subr.bf16.mxu0 %v4326_v57 }
  0xf6   : > { %4357 = vmatpush3.bf16.msra.mxu1 %v4354_v61  ;;  %v701_v61 = vsub.s32 0, %v5658_v60 }
  0xf8   : > { %4329 = vmatpush1.bf16.msra.mxu0 %v4328_v62  ;;  %v697_v62 = vld [vmem:[%s6384_s5] sm:$0x7] }
 0x16d   : > { %v585_v27 = vpop.xlane.xlu0 %584 }
 0x16e   : > { %v593_v28 = vmul.f32 0.0078125, %v585_v27 }
 0x170   : > { %v5635_v29 = vsub.f32 %v574_v0, %v593_v28  ;;  %v689_v0 = vld [vmem:[#allocation8 + $0x140] sm:$0xff] }
 0x171   : > { %v587_v30 = vpop.xlane.xlu0 %586  ;;  %v4330_v3 = vpack.c.bf16 %v689_v0, %v686_v63  ;;  %v5666_v63 = vrot.slane %v697_v62, %v701_v61  ;;  %v709_v0 = vsub.s32 2, %v5658_v60 }
 0x172   : > { %v594_v31 = vmul.f32 0.0078125, %v587_v30  ;;  %v601_v32 = vmul.f32 %v5635_v29, %v5635_v29 }
 0x173   : > { %4331 = vmatprep.subr.bf16.mxu0 %v4330_v3  ;;  %v5673_v6 = vrot.slane %v697_v62, %v709_v0 }
 0x174   : > { %v5639_v33 = vsub.f32 %v575_v1, %v594_v31  ;;  %605 = vadd.xlane.f32.xlu1 %v601_v32  ;;  %v681_v1 = vld [vmem:[#allocation8 + $0x100] sm:$0xff]  ;;  %4333 = vmatpush1.bf16.msra.mxu0 %v4332_v9 }
 0x175   : > { %v4358_v8 = vpack.c.bf16 %v684_v4, %v681_v1  ;;  %4335 = vmatprep.subr.bf16.mxu0 %v4334_v13  ;;  %v589_v22 = vpop.xlane.xlu0 %588  ;;  %v705_v1 = vsub.s32 1, %v5658_v60 }
 0x176   : > { %v602_v34 = vmul.f32 %v5639_v33, %v5639_v33  ;;  %v595_v23 = vmul.f32 0.0078125, %v589_v22 }
 0x177   : > { %4359 = vmatprep.subr.bf16.mxu1 %v4358_v8 }
 0x178   : > { %607 = vadd.xlane.f32.xlu1 %v602_v34  ;;  %4361 = vmatpush3.bf16.msra.mxu1 %v4358_v8  ;;  %v599_v24 = vsub.f32 %v5632_v2, %v595_v23  ;;  %v5677_v8 = vrot.slane %v697_v62, %v705_v1 }
 0x179   : > { %4363 = vmatprep.subr.bf16.mxu1 %v4362_v17  ;;  %4337 = vmatpush1.bf16.msra.mxu0 %v4336_v18 }
 0x17a   : > { %v603_v25 = vmul.f32 %v599_v24, %v599_v24 }
 0x17c   : > { %590 = vadd.xlane.f32.xlu1 %v5644_v35  ;;  %4365 = vmatpush3.bf16.msra.mxu1 %v4362_v17 }
 0x17d   : > { %4367 = vmatprep.subr.bf16.mxu1 %v4366_v21  ;;  %609 = vadd.xlane.f32.xlu0 %v603_v25 }
 0x180   : > { %4369 = vmatpush3.bf16.msra.mxu1 %v4366_v21 }
 0x201   : > { %v606_v26 = vpop.xlane.xlu1 %605 }
 0x202   : > { %v613_v27 = vmul.f32 0.0078125, %v606_v26 }
 0x204   : > { %v617_v28 = vadd.f32 1e-06, %v613_v27 }
 0x205   : > { %v608_v30 = vpop.xlane.xlu1 %607 }
 0x206   : > { %4820 = vrsqrt.f32 %v617_v28  ;;  %v614_v31 = vmul.f32 0.0078125, %v608_v30 }
 0x208   : > { %v618_v32 = vadd.f32 1e-06, %v614_v31 }
 0x209   : > { %v591_v34 = vpop.xlane.xlu1 %590 }
 0x20a   : > { %4822 = vrsqrt.f32 %v618_v32  ;;  %v596_v36 = vmul.f32 0.0078125, %v591_v34 }
 0x20c   : > { %v600_v37 = vsub.f32 %v5644_v35, %v596_v36 }
 0x20e   : > { %v604_v38 = vmul.f32 %v600_v37, %v600_v37 }
 0x210   : > { %v4821_v39 = vpop.eup %4820  ;;  %611 = vadd.xlane.f32.xlu1 %v604_v38 }
 0x211   : > { %v625_v2 = vmul.f32 %v4821_v39, %v5635_v29  ;;  %v610_v29 = vpop.xlane.xlu0 %609 }
 0x212   : > { %v615_v47 = vmul.f32 0.0078125, %v610_v29 }
 0x213   : > { %v635_v42 = vmul.f32 %v3862_v40, %v625_v2 }
 0x214   : > { %v4823_v43 = vpop.eup %4822  ;;  %v619_v48 = vadd.f32 1e-06, %v615_v47 }
 0x215   : > { %v645_v44 = vadd.f32 %v3863_v41, %v635_v42  ;;  %v626_v45 = vmul.f32 %v4823_v43, %v5639_v33 }
 0x216   : > { %4824 = vrsqrt.f32 %v619_v48 }
 0x217   : > { %779 = vmatmul.mubr.f32.vlgmr.msra.gmra.mrb[0].mxu0 %v645_v44  ;;  %4150 = vmatprep.mubr.f32.mxu1 %v645_v44  ;;  %v636_v46 = vmul.f32 %v3862_v40, %v626_v45 }
 0x218   : > { %784 = vmatprep.mubr.f32.mxu0 %v5259_v7 }
 0x219   : > { %v646_v35 = vadd.f32 %v3863_v41, %v636_v46 }
 0x21b   : > { %785 = vmatmul.mubr.f32.gmra.mrb[2].mxu0 %v646_v35  ;;  %4151 = vmatmul.mubr.f32.vlgmr.msra.gmra.mrb[0].mxu1 %v646_v35 }
 0x21c   : > { %790 = vmatprep.mubr.f32.mxu0 %v5259_v7 }
 0x220   : > { %v4825_v49 = vpop.eup %4824 }
 0x221   : > { %v627_v50 = vmul.f32 %v4825_v49, %v599_v24 }
 0x223   : > { %v637_v51 = vmul.f32 %v3862_v40, %v627_v50 }
 0x225   : > { %v647_v52 = vadd.f32 %v3863_v41, %v637_v51 }
 0x227   : > { %791 = vmatmul.mubr.f32.gmra.mrb[4].mxu0 %v647_v52  ;;  %4153 = vmatprep.mubr.f32.mxu1 %v647_v52 }
 0x228   : > { %796 = vmatprep.mubr.f32.mxu0 %v5259_v7 }
 0x29d   : > { %v612_v33 = vpop.xlane.xlu1 %611 }
 0x29e   : > { %v616_v53 = vmul.f32 0.0078125, %v612_v33 }
 0x2a0   : > { %v620_v54 = vadd.f32 1e-06, %v616_v53 }
 0x2a2   : > { %4826 = vrsqrt.f32 %v620_v54  ;;  %v5741_v54 = vld [vmem:[#allocation5 + $0x8] sm:$0xff] }
 0x2a3   : > { %vm581_vm2 = vcmp.eq.f32.partialorder %v5741_v54, 0.0 }
 0x2ac   : > { %v4827_v55 = vpop.eup %4826 }
 0x2ad   : > { %v628_v56 = vmul.f32 %v4827_v55, %v600_v37  ;;  %v5743_v55 = vld [vmem:[#allocation5] sm:$0xff] }
 0x2ae   : > { %vm580_vm4 = vcmp.eq.f32.partialorder %v5743_v55, 0.0 }
 0x2af   : > { %v638_v57 = vmul.f32 %v3862_v40, %v628_v56 }
 0x2b1   : > { %v648_v58 = vadd.f32 %v3863_v41, %v638_v57 }
 0x2b3   : > { %797 = vmatmul.mubr.f32.gmra.mrb[6].mxu0 %v648_v58  ;;  %4154 = vmatmul.mubr.f32.gmra.mrb[2].mxu1 %v648_v58 }
 0x2ea   : > { %v780_v3 = vpop.f32.mrb[0].mxu0 }
 0x2eb   : > { %v781_v4 = vadd.f32 %v780_v3, %v5666_v63  ;;  %v782_v5 = vpop.f32.mrb[1].mxu0 }
 0x2ec   : > { %v783_v14 = vadd.f32 %v782_v5, %v5677_v8 }
 0x2ed   : > { %892 = vrot.lane.b32.xlu1 %v781_v4, %s5260_s24  ;;  %4160 = vmatprep.mubr.msk.f32.mxu1 %vm984_vm0, %v781_v4 }
 0x2ee   : > { %v786_v9 = vpop.f32.mrb[2].mxu0  ;;  %v4152_v10 = vpop.f32.mrb[0].mxu1 }
 0x2ef   : > { %v875_v11 = vadd.f32 %v4152_v10, %v5673_v6  ;;  %v788_v12 = vpop.f32.mrb[3].mxu0  ;;  %v869_v13 = vpop.f32.mrb[1].mxu1  ;;  %v787_v22 = vadd.f32 %v786_v9, %v5666_v63 }
 0x2f0   : > { %v789_v15 = vadd.f32 %v788_v12, %v5677_v8  ;;  %v870_v16 = vadd.f32 %v869_v13, %v5673_v6 }
 0x2f2   : > { %v4370_v18 = vpack.c.bf16 %v789_v15, %v783_v14  ;;  %v4735_v19 = vpack.i.bf16 %v789_v15, %v783_v14  ;;  %v4394_v20 = vpack.c.bf16 %v875_v11, %v870_v16  ;;  %v5691_v21 = vpack.i.bf16 %v875_v11, %v870_v16 }
 0x2f4   : > { %4372 = vmatprep.subr.msk.bf16.mxu1 %vm5687_vm1, %v4370_v18  ;;  %4736 = vrot.lane.b32.xlu1 %v4735_v19, %s5261_s23 }
 0x2f5   : > { %4731 = vrot.lane.b32.xlu0 %v4735_v19, %s5260_s24  ;;  %4375 = vmatpush3.bf16.xpose.msk.msra.mxu1 %vm5687_vm1, %v4370_v18 }
 0x2f8   : > { %894 = vrot.lane.b32.xlu1 %v787_v22, %s5260_s24 }
 0x2f9   : > { %908 = vrot.lane.b32.xlu0 %v781_v4, %s5261_s23 }
 0x2fa   : > { %v5707_v23 = vpop.f32.mrb[4].mxu0 }
 0x2fb   : > { %v794_v24 = vpop.f32.mrb[5].mxu0 }
 0x2fc   : > { %910 = vrot.lane.b32.xlu1 %v787_v22, %s5261_s23  ;;  %4161 = vmatmul.mubr.msk.f32.vlgmr.msra.gmra.mrb[4].mxu1 %vm984_vm0, %v787_v22  ;;  %v795_v45 = vadd.f32 %v794_v24, %v5677_v8 }
 0x2fd   : > { %4741 = vrot.lane.b32.xlu0 %v4735_v19, %s5262_s25 }
 0x300   : > { %900 = vrot.lane.b32.xlu1 %v781_v4, %s5262_s25 }
 0x301   : > { %902 = vrot.lane.b32.xlu0 %v787_v22, %s5262_s25 }
 0x35f   : > { %v893_v25 = vpop.permute.xlu1 %892 }
 0x360   : > { %4167 = vmatprep.mubr.msk.f32.mxu1 %vm984_vm0, %v893_v25 }
 0x366   : > { %v4737_v26 = vpop.permute.xlu1 %4736 }
 0x367   : > { %v4739_v27 = vunpack.i.h.bf16 %v4737_v26  ;;  %v4738_v28 = vunpack.i.l.bf16 %v4737_v26  ;;  %v4732_v30 = vpop.permute.xlu0 %4731 }
 0x368   : > { %v4734_v31 = vunpack.i.h.bf16 %v4732_v30  ;;  %v4733_v32 = vunpack.i.l.bf16 %v4732_v30 }
 0x369   : > { %v4388_v34 = vpack.c.bf16 %v4739_v27, %v4738_v28 }
 0x36a   : > { %v4376_v36 = vpack.c.bf16 %v4734_v31, %v4733_v32  ;;  %v895_v37 = vpop.permute.xlu1 %894 }
 0x36b   : > { %v909_v38 = vpop.permute.xlu0 %908  ;;  %4390 = vmatprep.subr.msk.bf16.mxu0 %vm5687_vm1, %v4388_v34 }
 0x36c   : > { %4378 = vmatprep.subr.msk.bf16.mxu1 %vm5687_vm1, %v4376_v36  ;;  %4181 = vmatprep.mubr.msk.f32.mxu0 %vm984_vm0, %v909_v38 }
 0x36d   : > { %4381 = vmatpush3.bf16.xpose.msk.msra.mxu1 %vm5687_vm1, %v4376_v36  ;;  %4393 = vmatpush3.bf16.xpose.msk.msra.mxu0 %vm5687_vm1, %v4388_v34 }
 0x36e   : > { %v911_v39 = vpop.permute.xlu1 %910 }
 0x36f   : > { %v4742_v40 = vpop.permute.xlu0 %4741 }
 0x370   : > { %v4744_v2 = vunpack.i.h.bf16 %v4742_v40  ;;  %v4743_v41 = vunpack.i.l.bf16 %v4742_v40 }
 0x372   : > { %v4382_v42 = vpack.c.bf16 %v4744_v2, %v4743_v41  ;;  %v901_v43 = vpop.permute.xlu1 %900 }
 0x373   : > { %v903_v44 = vpop.permute.xlu0 %902 }
 0x374   : > { %4168 = vmatmul.mubr.msk.f32.vlgmr.msra.gmra.mrb[6].mxu1 %vm984_vm0, %v895_v37  ;;  %4384 = vmatprep.subr.msk.bf16.mxu1 %vm5687_vm1, %v4382_v42 }
 0x375   : > { %4182 = vmatmul.mubr.msk.f32.vlgmr.msra.gmra.mrb[8].mxu0 %vm984_vm0, %v911_v39  ;;  %4387 = vmatpush3.bf16.xpose.msk.msra.mxu1 %vm5687_vm1, %v4382_v42 }
 0x376   : > { %4174 = vmatprep.mubr.msk.f32.mxu1 %vm984_vm0, %v901_v43  ;;  %4395 = vmatprep.subr.bf16.mxu1 %v4394_v20 }
 0x37c   : > { %4175 = vmatmul.mubr.msk.f32.vlgmr.msra.gmra.mrb[8].mxu1 %vm984_vm0, %v903_v44 }
 0x37d   : > { %4397 = vmatpush3.bf16.msra.mxu1 %v4394_v20 }
 0x386   : > { %v5728_v46 = vpop.f32.mrb[6].mxu0  ;;  %v4155_v35 = vpop.f32.mrb[2].mxu1 }
 0x387   : > { %v800_v29 = vpop.f32.mrb[7].mxu0  ;;  %v885_v47 = vadd.f32 %v4155_v35, %v5673_v6  ;;  %v879_v48 = vpop.f32.mrb[3].mxu1 }
 0x388   : > { %v801_v49 = vadd.f32 %v800_v29, %v5677_v8  ;;  %v880_v50 = vadd.f32 %v879_v48, %v5673_v6 }
 0x38a   : > { %v5733_v51 = vpack.i.bf16 %v801_v49, %v795_v45  ;;  %v5735_v52 = vpack.c.bf16 %v801_v49, %v795_v45  ;;  %v5737_v33 = vpack.c.bf16 %v885_v47, %v880_v50  ;;  %v5739_v53 = vpack.i.bf16 %v885_v47, %v880_v50 }
 0x3cf   : > { %v4162_v56 = vpop.f32.mrb[4].mxu1 }
 0x3d0   : > { %v1318_v57 = vmul.f32 0.17677669, %v4162_v56  ;;  %v1059_v58 = vpop.f32.mrb[5].mxu1 }
 0x3d1   : > { %v1317_v59 = vmul.f32 0.17677669, %v1059_v58 }
 0x3d2   : > { %v1330_v62 = vsel %vm581_vm2, -10000.0, %v1318_v57 }
 0x3d3   : > { %v1341_v3 = vsel %vm1337_vm3, %v1330_v62, -inf  ;;  %v1329_v4 = vsel %vm580_vm4, -10000.0, %v1317_v59 }
 0x3d4   : > { %1342 = vmax.xlane.f32.xlu0 %v1341_v3  ;;  %v1338_v5 = vsel %vm1337_vm3, %v1329_v4, -inf }
 0x3d5   : > { %1339 = vmax.xlane.f32.xlu1 %v1338_v5 }
 0x447   : > { %v4169_v6 = vpop.f32.mrb[6].mxu1 }
 0x448   : > { %v4183_v8 = vpop.f32.mrb[8].mxu0  ;;  %v1142_v9 = vpop.f32.mrb[7].mxu1  ;;  %v1320_v10 = vmul.f32 0.17677669, %v4169_v6 }
 0x449   : > { %v1319_v11 = vmul.f32 0.17677669, %v1142_v9  ;;  %v1308_v12 = vpop.f32.mrb[9].mxu0  ;;  %v1324_v18 = vmul.f32 0.17677669, %v4183_v8 }
 0x44a   : > { %v1323_v13 = vmul.f32 0.17677669, %v1308_v12  ;;  %v1332_v20 = vsel %vm581_vm2, -10000.0, %v1320_v10 }
 0x44b   : > { %v1331_v14 = vsel %vm580_vm4, -10000.0, %v1319_v11  ;;  %v1347_v25 = vsel %vm1337_vm3, %v1332_v20, -inf  ;;  %v1336_v28 = vsel %vm581_vm2, -10000.0, %v1324_v18 }
 0x44c   : > { %v1335_v15 = vsel %vm580_vm4, -10000.0, %v1323_v13  ;;  %v1344_v16 = vsel %vm1337_vm3, %v1331_v14, -inf  ;;  %v1359_v31 = vsel %vm1337_vm3, %v1336_v28, -inf }
 0x44d   : > { %v1356_v19 = vsel %vm1337_vm3, %v1335_v15, -inf  ;;  %1345 = vmax.xlane.f32.xlu0 %v1344_v16 }
 0x44e   : > { %1357 = vmax.xlane.f32.xlu1 %v1356_v19 }
 0x44f   : > { %v4176_v22 = vpop.f32.mrb[8].mxu1 }
 0x450   : > { %v1225_v24 = vpop.f32.mrb[9].mxu1  ;;  %v1322_v26 = vmul.f32 0.17677669, %v4176_v22 }
 0x451   : > { %v1321_v27 = vmul.f32 0.17677669, %v1225_v24  ;;  %1348 = vmax.xlane.f32.xlu0 %v1347_v25 }
 0x452   : > { %v1334_v34 = vsel %vm581_vm2, -10000.0, %v1322_v26  ;;  %v793_v26 = vadd.f32 %v5707_v23, %v5666_v63 }
 0x453   : > { %v5766_v30 = vsel %vm580_vm4, -10000.0, %v1321_v27  ;;  %v1353_v36 = vsel %vm1337_vm3, %v1334_v34, -inf }
 0x454   : > { %v1350_v32 = vsel %vm1337_vm3, %v5766_v30, -inf }
 0x455   : > { %1360 = vmax.xlane.f32.xlu0 %v1359_v31  ;;  %1351 = vmax.xlane.f32.xlu1 %v1350_v32 }
 0x459   : > { %1354 = vmax.xlane.f32.xlu0 %v1353_v36 }
 0x461   : > { %v1343_v37 = vpop.xlane.xlu0 %1342 }
 0x462   : > { %v1363_v38 = vsub.f32 %v1330_v62, %v1343_v37  ;;  %v1340_v39 = vpop.xlane.xlu1 %1339 }
 0x463   : > { %v1362_v40 = vsub.f32 %v1329_v4, %v1340_v39 }
 0x464   : > { %v1372_v2 = vmul.f32 1.442695, %v1363_v38 }
 0x465   : > { %v1370_v41 = vmul.f32 1.442695, %v1362_v40 }
 0x466   : > { %4828 = vpow2.f32 %v1372_v2 }
 0x467   : > { %4830 = vpow2.f32 %v1370_v41 }
 0x470   : > { %v4829_v42 = vpop.eup %4828 }
 0x471   : > { %v4831_v43 = vpop.eup %4830  ;;  %v1389_v44 = vsel %vm1337_vm3, %v4829_v42, 0.0 }
 0x472   : > { %1390 = vadd.xlane.f32.xlu0 %v1389_v44  ;;  %v1386_v45 = vsel %vm1337_vm3, %v4831_v43, 0.0 }
 0x473   : > { %1387 = vadd.xlane.f32.xlu1 %v1386_v45 }
 0x4da   : > { %v1346_v35 = vpop.xlane.xlu0 %1345 }
 0x4db   : > { %v1358_v29 = vpop.xlane.xlu1 %1357  ;;  %v1364_v47 = vsub.f32 %v1331_v14, %v1346_v35 }
 0x4dc   : > { %v1368_v48 = vsub.f32 %v1335_v15, %v1358_v29 }
 0x4dd   : > { %v1374_v49 = vmul.f32 1.442695, %v1364_v47 }
 0x4de   : > { %v1382_v50 = vmul.f32 1.442695, %v1368_v48  ;;  %v1349_v56 = vpop.xlane.xlu0 %1348 }
 0x4df   : > { %4832 = vpow2.f32 %v1374_v49  ;;  %v1365_v57 = vsub.f32 %v1332_v20, %v1349_v56 }
 0x4e0   : > { %4834 = vpow2.f32 %v1382_v50 }
 0x4e1   : > { %v1376_v58 = vmul.f32 1.442695, %v1365_v57 }
 0x4e2   : > { %v1361_v59 = vpop.xlane.xlu0 %1360  ;;  %v1352_v14 = vpop.xlane.xlu1 %1351 }
 0x4e3   : > { %4836 = vpow2.f32 %v1376_v58  ;;  %v1369_v62 = vsub.f32 %v1336_v28, %v1361_v59 }
 0x4e5   : > { %v1384_v3 = vmul.f32 1.442695, %v1369_v62 }
 0x4e6   : > { %v1355_v13 = vpop.xlane.xlu0 %1354 }
 0x4e7   : > { %4838 = vpow2.f32 %v1384_v3  ;;  %v1367_v24 = vsub.f32 %v1334_v34, %v1355_v13 }
 0x4e9   : > { %v5776_v4 = vpop.eup %4832  ;;  %v1380_v25 = vmul.f32 1.442695, %v1367_v24 }
 0x4ea   : > { %v1392_v5 = vsel %vm1337_vm3, %v5776_v4, 0.0  ;;  %v5780_v6 = vpop.eup %4834 }
 0x4eb   : > { %1393 = vadd.xlane.f32.xlu1 %v1392_v5  ;;  %v1404_v10 = vsel %vm1337_vm3, %v5780_v6, 0.0 }
 0x4ed   : > { %v5782_v8 = vpop.eup %4836 }
 0x4ee   : > { %v1395_v9 = vsel %vm1337_vm3, %v5782_v8, 0.0 }
 0x4ef   : > { %1396 = vadd.xlane.f32.xlu0 %v1395_v9  ;;  %1405 = vadd.xlane.f32.xlu1 %v1404_v10 }
 0x4f1   : > { %v5788_v11 = vpop.eup %4838 }
 0x4f2   : > { %v1407_v12 = vsel %vm1337_vm3, %v5788_v11, 0.0 }
 0x4f3   : > { %1408 = vadd.xlane.f32.xlu0 %v1407_v12 }
 0x4ff   : > { %v1391_v15 = vpop.xlane.xlu0 %1390 }
 0x500   : > { %4840 = vrcp.f32 %v1391_v15  ;;  %4746 = vrot.lane.b32.xlu1 %v5691_v21, %s5260_s24  ;;  %v1388_v16 = vpop.xlane.xlu1 %1387 }
 0x501   : > { %4842 = vrcp.f32 %v1388_v16 }
 0x502   : > { %4844 = vpow2.f32 %v1380_v25 }
 0x509   : > { %4751 = vrot.lane.b32.xlu0 %v5691_v21, %s5261_s23 }
 0x50a   : > { %v4841_v18 = vpop.eup %4840 }
 0x50b   : > { %v4843_v19 = vpop.eup %4842  ;;  %v1419_v22 = vmul.f32 %v4841_v18, %v4829_v42 }
 0x50c   : > { %v1418_v20 = vmul.f32 %v4843_v19, %v4831_v43  ;;  %v5813_v27 = vpop.eup %4844 }
 0x50d   : > { %4756 = vrot.lane.b32.xlu0 %v5691_v21, %s5262_s25  ;;  %v5811_v21 = vadd.f32 %v5728_v46, %v5666_v63  ;;  %v1401_v28 = vsel %vm1337_vm3, %v5813_v27, 0.0 }
 0x50e   : > { %4188 = vmatprep.mubr.msk.f32.mxu1 %vm1337_vm3, %v1418_v20 }
 0x50f   : > { %4189 = vmatmul.mubr.msk.f32.vlgmr.msra.gmra.mrb[10].mxu1 %vm1337_vm3, %v1419_v22 }
 0x511   : > { %4761 = vrot.lane.b32.xlu0 %v5733_v51, %s5260_s24 }
 0x515   : > { %4766 = vrot.lane.b32.xlu0 %v5733_v51, %s5262_s25 }
 0x519   : > { %4771 = vrot.lane.b32.xlu0 %v5733_v51, %s5261_s23  ;;  %v1366_v51 = vsub.f32 %v5766_v30, %v1352_v14 }
 0x51b   : > { %v1378_v31 = vmul.f32 1.442695, %v1366_v51 }
 0x51d   : > { %896 = vrot.lane.b32.xlu0 %v793_v26, %s5260_s24  ;;  %4846 = vpow2.f32 %v1378_v31 }
 0x521   : > { %898 = vrot.lane.b32.xlu0 %v5811_v21, %s5260_s24 }
 0x524   : > { %1402 = vadd.xlane.f32.xlu1 %v1401_v28 }
 0x527   : > { %v5821_v23 = vpop.eup %4846 }
 0x528   : > { %v1398_v63 = vsel %vm1337_vm3, %v5821_v23, 0.0 }
 0x535   : > { %904 = vrot.lane.b32.xlu1 %v793_v26, %s5262_s25 }
 0x540   : > { %1399 = vadd.xlane.f32.xlu0 %v1398_v63 }
 0x556   : > { %906 = vrot.lane.b32.xlu0 %v5811_v21, %s5262_s25 }
 0x55a   : > { %912 = vrot.lane.b32.xlu0 %v793_v26, %s5261_s23 }
 0x55e   : > { %914 = vrot.lane.b32.xlu0 %v5811_v21, %s5261_s23 }
 0x578   : > { %v1394_v46 = vpop.xlane.xlu1 %1393 }
 0x579   : > { %4848 = vrcp.f32 %v1394_v46 }
 0x57c   : > { %v1397_v30 = vpop.xlane.xlu0 %1396  ;;  %v1406_v32 = vpop.xlane.xlu1 %1405 }
 0x57d   : > { %4850 = vrcp.f32 %v1397_v30 }
 0x57e   : > { %4852 = vrcp.f32 %v1406_v32 }
 0x580   : > { %v1409_v34 = vpop.xlane.xlu0 %1408  ;;  %v4747_v36 = vpop.permute.xlu1 %4746 }
 0x581   : > { %4854 = vrcp.f32 %v1409_v34  ;;  %v4749_v37 = vunpack.i.h.bf16 %v4747_v36  ;;  %v4748_v38 = vunpack.i.l.bf16 %v4747_v36 }
 0x583   : > { %v4849_v39 = vpop.eup %4848  ;;  %v4398_v40 = vpack.c.bf16 %v4749_v37, %v4748_v38 }
 0x584   : > { %v4752_v2 = vpop.permute.xlu0 %4751  ;;  %v1420_v41 = vmul.f32 %v4849_v39, %v5776_v4 }
 0x585   : > { %v4754_v42 = vunpack.i.h.bf16 %v4752_v2  ;;  %v4753_v43 = vunpack.i.l.bf16 %v4752_v2  ;;  %4399 = vmatprep.subr.bf16.mxu1 %v4398_v40 }
 0x586   : > { %4401 = vmatpush3.bf16.msra.mxu1 %v4398_v40  ;;  %4195 = vmatprep.mubr.msk.f32.mxu1 %vm1337_vm3, %v1420_v41 }
 0x587   : > { %v4851_v44 = vpop.eup %4850  ;;  %v4406_v45 = vpack.c.bf16 %v4754_v42, %v4753_v43 }
 0x588   : > { %v4853_v35 = vpop.eup %4852  ;;  %v1421_v29 = vmul.f32 %v4851_v44, %v5782_v8  ;;  %v4757_v47 = vpop.permute.xlu0 %4756 }
 0x589   : > { %v4759_v48 = vunpack.i.h.bf16 %v4757_v47  ;;  %v4758_v49 = vunpack.i.l.bf16 %v4757_v47  ;;  %4407 = vmatprep.subr.bf16.mxu1 %v4406_v45  ;;  %v1424_v50 = vmul.f32 %v4853_v35, %v5780_v6 }
 0x58a   : > { %4196 = vmatmul.mubr.msk.f32.vlgmr.msra.gmra.mrb[12].mxu1 %vm1337_vm3, %v1421_v29 }
 0x58b   : > { %v4855_v56 = vpop.eup %4854  ;;  %v4402_v57 = vpack.c.bf16 %v4759_v48, %v4758_v49  ;;  %4409 = vmatpush3.bf16.msra.mxu1 %v4406_v45  ;;  %4209 = vmatprep.mubr.msk.f32.mxu1 %vm1337_vm3, %v1424_v50 }
 0x58c   : > { %v1425_v58 = vmul.f32 %v4855_v56, %v5788_v11  ;;  %4412 = vmatprep.subr.msk.bf16.mxu1 %vm5687_vm1, %v5735_v52  ;;  %v4762_v59 = vpop.permute.xlu0 %4761 }
 0x58d   : > { %4403 = vmatprep.subr.bf16.mxu0 %v4402_v57  ;;  %v4764_v62 = vunpack.i.h.bf16 %v4762_v59  ;;  %v4763_v3 = vunpack.i.l.bf16 %v4762_v59 }
 0x58e   : > { %4405 = vmatpush3.bf16.msra.mxu0 %v4402_v57  ;;  %4210 = vmatmul.mubr.msk.f32.vlgmr.msra.gmra.mrb[14].mxu1 %vm1337_vm3, %v1425_v58 }
 0x58f   : > { %4216 = vmatprep.mubr.msk.f32.mxu1 %vm984_vm0, %v793_v26  ;;  %v4416_v8 = vpack.c.bf16 %v4764_v62, %v4763_v3 }
 0x590   : > { %v4767_v4 = vpop.permute.xlu0 %4766 }
 0x591   : > { %v4769_v5 = vunpack.i.h.bf16 %v4767_v4  ;;  %v4768_v6 = vunpack.i.l.bf16 %v4767_v4 }
 0x593   : > { %v4422_v9 = vpack.c.bf16 %v4769_v5, %v4768_v6 }
 0x594   : > { %4415 = vmatpush3.bf16.xpose.msk.msra.mxu1 %vm5687_vm1, %v5735_v52  ;;  %v4772_v10 = vpop.permute.xlu0 %4771 }
 0x595   : > { %4418 = vmatprep.subr.msk.bf16.mxu1 %vm5687_vm1, %v4416_v8  ;;  %4424 = vmatprep.subr.msk.bf16.mxu0 %vm5687_vm1, %v4422_v9  ;;  %v4774_v11 = vunpack.i.h.bf16 %v4772_v10  ;;  %v4773_v12 = vunpack.i.l.bf16 %v4772_v10 }
 0x597   : > { %v4428_v13 = vpack.c.bf16 %v4774_v11, %v4773_v12 }
 0x598   : > { %v897_v14 = vpop.permute.xlu0 %896 }
 0x59b   : > { %4217 = vmatmul.mubr.msk.f32.vlgmr.msra.gmra.mrb[16].mxu1 %vm984_vm0, %v5811_v21 }
 0x59c   : > { %4421 = vmatpush3.bf16.xpose.msk.msra.mxu1 %vm5687_vm1, %v4416_v8  ;;  %4223 = vmatprep.mubr.msk.f32.mxu1 %vm984_vm0, %v897_v14  ;;  %v899_v52 = vpop.permute.xlu0 %898 }
 0x59d   : > { %4430 = vmatprep.subr.msk.bf16.mxu1 %vm5687_vm1, %v4428_v13 }
 0x5a3   : > { %4224 = vmatmul.mubr.msk.f32.vlgmr.msra.gmra.mrb[18].mxu1 %vm984_vm0, %v899_v52 }
 0x5a4   : > { %4433 = vmatpush3.bf16.xpose.msk.msra.mxu1 %vm5687_vm1, %v4428_v13 }
 0x5b1   : > { %v1403_v15 = vpop.xlane.xlu1 %1402 }
 0x5b2   : > { %4856 = vrcp.f32 %v1403_v15 }
 0x5b5   : > { %v905_v21 = vpop.permute.xlu1 %904 }
 0x5bc   : > { %v4857_v20 = vpop.eup %4856 }
 0x5bd   : > { %v1423_v26 = vmul.f32 %v4857_v20, %v5813_v27 }
 0x5cd   : > { %v1400_v16 = vpop.xlane.xlu0 %1399 }
 0x5ce   : > { %4858 = vrcp.f32 %v1400_v16 }
 0x5d1   : > { %v907_v18 = vpop.permute.xlu0 %906 }
 0x5d5   : > { %v913_v19 = vpop.permute.xlu0 %912 }
 0x5d6   : > { %4237 = vmatprep.mubr.msk.f32.mxu1 %vm984_vm0, %v913_v19 }
 0x5d8   : > { %v4859_v22 = vpop.eup %4858 }
 0x5d9   : > { %v915_v24 = vpop.permute.xlu0 %914  ;;  %v1422_v25 = vmul.f32 %v4859_v22, %v5821_v23 }
 0x5da   : > { %4238 = vmatmul.mubr.msk.f32.vlgmr.msra.gmra.mrb[20].mxu1 %vm984_vm0, %v915_v24 }
 0x5db   : > { %4202 = vmatprep.mubr.msk.f32.mxu0 %vm1337_vm3, %v1422_v25 }
 0x5dc   : > { %4203 = vmatmul.mubr.msk.f32.vlgmr.msra.gmra.mrb[10].mxu0 %vm1337_vm3, %v1423_v26 }
 0x5dd   : > { %4427 = vmatpush3.bf16.xpose.msk.msra.mxu0 %vm5687_vm1, %v4422_v9  ;;  %4230 = vmatprep.mubr.msk.f32.mxu0 %vm984_vm0, %v905_v21 }
 0x5de   : > { %4435 = vmatprep.subr.bf16.mxu0 %v5737_v33 }
 0x5e2   : > { %v5869_v28 = vpop.f32.mrb[10].mxu1 }
 0x5e3   : > { %v5871_v51 = vpop.f32.mrb[11].mxu1 }
 0x5e4   : > { %4231 = vmatmul.mubr.msk.f32.vlgmr.msra.gmra.mrb[12].mxu0 %vm984_vm0, %v907_v18 }
 0x5e5   : > { %4437 = vmatpush3.bf16.msra.mxu0 %v5737_v33 }
 0x65d   : > { %v5875_v27 = vpop.f32.mrb[12].mxu1 }
 0x65e   : > { %v5877_v31 = vpop.f32.mrb[13].mxu1 }
 0x65f   : > { %v4790_v17 = vpack.i.bf16 %v5875_v27, %v5877_v31 }
 0x661   : > { %v5881_v23 = vpop.f32.mrb[14].mxu1 }
 0x662   : > { %v5883_v63 = vpop.f32.mrb[15].mxu1 }
 0x663   : > { %v4800_v46 = vpack.i.bf16 %v5881_v23, %v5883_v63  ;;  %v2572_v63 = vld [vmem:[#allocation10] sm:$0xff] }
 0x66e   : > { %v4218_v30 = vpop.f32.mrb[16].mxu1 }
 0x66f   : > { %v2115_v32 = vmul.f32 0.17677669, %v4218_v30  ;;  %v1856_v34 = vpop.f32.mrb[17].mxu1 }
 0x670   : > { %v2114_v29 = vmul.f32 0.17677669, %v1856_v34 }
 0x671   : > { %v2123_v33 = vsel %vm581_vm2, -10000.0, %v2115_v32 }
 0x672   : > { %v2133_v36 = vsel %vm1337_vm3, %v2123_v33, -inf  ;;  %v2122_v59 = vsel %vm580_vm4, -10000.0, %v2114_v29 }
 0x673   : > { %2134 = vmax.xlane.f32.xlu1 %v2133_v36  ;;  %v2130_v3 = vsel %vm1337_vm3, %v2122_v59, -inf }
 0x676   : > { %v4225_v37 = vpop.f32.mrb[18].mxu1 }
 0x677   : > { %v1939_v38 = vpop.f32.mrb[19].mxu1  ;;  %v2117_v58 = vmul.f32 0.17677669, %v4225_v37 }
 0x678   : > { %v2116_v4 = vmul.f32 0.17677669, %v1939_v38 }
 0x679   : > { %v2125_v5 = vsel %vm581_vm2, -10000.0, %v2117_v58 }
 0x67a   : > { %v2139_v6 = vsel %vm1337_vm3, %v2125_v5, -inf  ;;  %v2124_v9 = vsel %vm580_vm4, -10000.0, %v2116_v4 }
 0x67b   : > { %v2136_v10 = vsel %vm1337_vm3, %v2124_v9, -inf }
 0x6ad   : > { %v4239_v39 = vpop.f32.mrb[20].mxu1 }
 0x6ae   : > { %v2105_v40 = vpop.f32.mrb[21].mxu1  ;;  %v2121_v44 = vmul.f32 0.17677669, %v4239_v39 }
 0x6af   : > { %v5890_v2 = vpop.f32.mrb[10].mxu0  ;;  %v2120_v8 = vmul.f32 0.17677669, %v2105_v40 }
 0x6b0   : > { %v5892_v41 = vpop.f32.mrb[11].mxu0  ;;  %v2129_v57 = vsel %vm581_vm2, -10000.0, %v2121_v44 }
 0x6b1   : > { %v4795_v42 = vpack.i.bf16 %v5890_v2, %v5892_v41  ;;  %v2151_v62 = vsel %vm1337_vm3, %v2129_v57, -inf  ;;  %v2128_v11 = vsel %vm580_vm4, -10000.0, %v2120_v8 }
 0x6b2   : > { %v2148_v12 = vsel %vm1337_vm3, %v2128_v11, -inf }
 0x6b7   : > { %v4232_v43 = vpop.f32.mrb[12].mxu0 }
 0x6b8   : > { %v2119_v45 = vmul.f32 0.17677669, %v4232_v43  ;;  %v2022_v35 = vpop.f32.mrb[13].mxu0 }
 0x6b9   : > { %v2118_v47 = vmul.f32 0.17677669, %v2022_v35 }
 0x6ba   : > { %v2127_v48 = vsel %vm581_vm2, -10000.0, %v2119_v45 }
 0x6bb   : > { %v2145_v49 = vsel %vm1337_vm3, %v2127_v48, -inf  ;;  %v2126_v50 = vsel %vm580_vm4, -10000.0, %v2118_v47 }
 0x6bc   : > { %2146 = vmax.xlane.f32.xlu1 %v2145_v49  ;;  %v2142_v56 = vsel %vm1337_vm3, %v2126_v50, -inf }
 0x6bd   : > { %2143 = vmax.xlane.f32.xlu0 %v2142_v56 }
 0x6c0   : > { %2152 = vmax.xlane.f32.xlu1 %v2151_v62 }
 0x6c1   : > { %2131 = vmax.xlane.f32.xlu0 %v2130_v3 }
 0x6c5   : > { %2140 = vmax.xlane.f32.xlu0 %v2139_v6 }
 0x6c9   : > { %2137 = vmax.xlane.f32.xlu0 %v2136_v10 }
 0x6cd   : > { %2149 = vmax.xlane.f32.xlu0 %v2148_v12 }
 0x700   : > { %v2135_v13 = vpop.xlane.xlu1 %2134 }
 0x701   : > { %v2155_v14 = vsub.f32 %v2123_v33, %v2135_v13 }
 0x703   : > { %v2164_v18 = vmul.f32 1.442695, %v2155_v14 }
 0x749   : > { %v2147_v54 = vpop.xlane.xlu1 %2146 }
 0x74a   : > { %v2159_v52 = vsub.f32 %v2127_v48, %v2147_v54  ;;  %v2144_v15 = vpop.xlane.xlu0 %2143 }
 0x74b   : > { %v2158_v16 = vsub.f32 %v2126_v50, %v2144_v15 }
 0x74c   : > { %v2172_v19 = vmul.f32 1.442695, %v2159_v52 }
 0x74d   : > { %v2170_v20 = vmul.f32 1.442695, %v2158_v16  ;;  %v2153_v22 = vpop.xlane.xlu1 %2152 }
 0x74e   : > { %4860 = vpow2.f32 %v2172_v19  ;;  %v2132_v24 = vpop.xlane.xlu0 %2131  ;;  %v2161_v55 = vsub.f32 %v2129_v57, %v2153_v22  ;;  %v2574_v19 = vld [vmem:[#allocation10 + $0x10] sm:$0xff] }
 0x74f   : > { %4862 = vpow2.f32 %v2170_v20  ;;  %v2154_v25 = vsub.f32 %v2122_v59, %v2132_v24  ;;  %v2575_v20 = vld [vmem:[#allocation10 + $0x18] sm:$0xff] }
 0x750   : > { %4864 = vpow2.f32 %v2164_v18  ;;  %v2176_v32 = vmul.f32 1.442695, %v2161_v55 }
 0x751   : > { %v2162_v26 = vmul.f32 1.442695, %v2154_v25 }
 0x752   : > { %v2141_v21 = vpop.xlane.xlu0 %2140 }
 0x753   : > { %4866 = vpow2.f32 %v2162_v26  ;;  %v2157_v30 = vsub.f32 %v2125_v5, %v2141_v21 }
 0x755   : > { %v2168_v34 = vmul.f32 1.442695, %v2157_v30 }
 0x756   : > { %v2138_v33 = vpop.xlane.xlu0 %2137 }
 0x757   : > { %4868 = vpow2.f32 %v2168_v34  ;;  %v2156_v36 = vsub.f32 %v2124_v9, %v2138_v33 }
 0x758   : > { %v5917_v37 = vpop.eup %4860  ;;  %4870 = vpow2.f32 %v2176_v32  ;;  %v4454_v32 = vpack.c.bf16 %v2575_v20, %v2574_v19 }
 0x759   : > { %v5919_v38 = vpop.eup %4862  ;;  %v2166_v39 = vmul.f32 1.442695, %v2156_v36  ;;  %v2193_v40 = vsel %vm1337_vm3, %v5917_v37, 0.0 }
 0x75a   : > { %v4865_v43 = vpop.eup %4864  ;;  %2194 = vadd.xlane.f32.xlu1 %v2193_v40  ;;  %v2150_v44 = vpop.xlane.xlu0 %2149  ;;  %v2190_v45 = vsel %vm1337_vm3, %v5919_v38, 0.0  ;;  %v2576_v40 = vld [vmem:[#allocation10 + $0x20] sm:$0xff] }
 0x75b   : > { %4872 = vpow2.f32 %v2166_v39  ;;  %v2160_v35 = vsub.f32 %v2128_v11, %v2150_v44  ;;  %2191 = vadd.xlane.f32.xlu0 %v2190_v45  ;;  %v2181_v48 = vsel %vm1337_vm3, %v4865_v43, 0.0 }
 0x75d   : > { %v4867_v29 = vpop.eup %4866  ;;  %v2174_v47 = vmul.f32 1.442695, %v2160_v35 }
 0x75e   : > { %2182 = vadd.xlane.f32.xlu1 %v2181_v48  ;;  %v2178_v49 = vsel %vm1337_vm3, %v4867_v29, 0.0 }
 0x75f   : > { %4874 = vpow2.f32 %v2174_v47  ;;  %2179 = vadd.xlane.f32.xlu0 %v2178_v49 }
 0x761   : > { %v5927_v50 = vpop.eup %4868 }
 0x762   : > { %v2187_v56 = vsel %vm1337_vm3, %v5927_v50, 0.0  ;;  %v5931_v57 = vpop.eup %4870 }
 0x763   : > { %2188 = vadd.xlane.f32.xlu1 %v2187_v56  ;;  %v2199_v59 = vsel %vm1337_vm3, %v5931_v57, 0.0 }
 0x765   : > { %v5933_v58 = vpop.eup %4872 }
 0x766   : > { %v2184_v62 = vsel %vm1337_vm3, %v5933_v58, 0.0 }
 0x767   : > { %2200 = vadd.xlane.f32.xlu1 %v2199_v59  ;;  %2185 = vadd.xlane.f32.xlu0 %v2184_v62  ;;  %v2579_v62 = vld [vmem:[#allocation10 + $0x38] sm:$0xff] }
 0x769   : > { %v5939_v3 = vpop.eup %4874 }
 0x76a   : > { %v2196_v4 = vsel %vm1337_vm3, %v5939_v3, 0.0 }
 0x76b   : > { %2197 = vadd.xlane.f32.xlu0 %v2196_v4 }
 0x778   : > { %4781 = vrot.lane.b32.xlu1 %v5739_v53, %s5262_s25 }
 0x77c   : > { %4786 = vrot.lane.b32.xlu1 %v5739_v53, %s5261_s23 }
 0x780   : > { %4796 = vrot.lane.b32.xlu1 %v4795_v42, %s5262_s25 }
 0x781   : > { %4776 = vrot.lane.b32.xlu0 %v5739_v53, %s5260_s24 }
 0x785   : > { %4791 = vrot.lane.b32.xlu0 %v4790_v17, %s5261_s23 }
 0x789   : > { %4801 = vrot.lane.b32.xlu0 %v4800_v46, %s5260_s24  ;;  %v2573_v46 = vld [vmem:[#allocation10 + $0x8] sm:$0xff] }
 0x78a   : > { %v4450_v52 = vpack.c.bf16 %v2573_v46, %v2572_v63 }
 0x7e7   : > { %v2195_v5 = vpop.xlane.xlu1 %2194 }
 0x7e8   : > { %v2192_v6 = vpop.xlane.xlu0 %2191 }
 0x7e9   : > { %4876 = vrcp.f32 %v2192_v6  ;;  %v2581_v6 = vld [vmem:[#allocation10 + $0x48] sm:$0xff] }
 0x7eb   : > { %v2183_v8 = vpop.xlane.xlu1 %2182 }
 0x7ec   : > { %4878 = vrcp.f32 %v2183_v8  ;;  %v2180_v2 = vpop.xlane.xlu0 %2179 }
 0x7ed   : > { %4880 = vrcp.f32 %v2180_v2  ;;  %v2582_v2 = vld [vmem:[#allocation10 + $0x50] sm:$0xff] }
 0x7ee   : > { %4882 = vrcp.f32 %v2195_v5  ;;  %v2580_v5 = vld [vmem:[#allocation10 + $0x40] sm:$0xff] }
 0x7ef   : > { %v4466_v8 = vpack.c.bf16 %v2581_v6, %v2580_v5  ;;  %v2764_v6 = vld [vmem:[#allocation11 + $0x70] sm:$0xff] }
 0x7f0   : > { %v2189_v41 = vpop.xlane.xlu1 %2188 }
 0x7f1   : > { %4884 = vrcp.f32 %v2189_v41  ;;  %v2583_v41 = vld [vmem:[#allocation10 + $0x58] sm:$0xff] }
 0x7f3   : > { %v4877_v9 = vpop.eup %4876 }
 0x7f4   : > { %v2201_v53 = vpop.xlane.xlu1 %2200  ;;  %v2186_v42 = vpop.xlane.xlu0 %2185  ;;  %v2214_v14 = vmul.f32 %v4877_v9, %v5919_v38 }
 0x7f5   : > { %4886 = vrcp.f32 %v2186_v42  ;;  %v2585_v42 = vld [vmem:[#allocation10 + $0x68] sm:$0xff] }
 0x7f6   : > { %v4879_v27 = vpop.eup %4878 }
 0x7f7   : > { %v4881_v31 = vpop.eup %4880  ;;  %v2211_v11 = vmul.f32 %v4879_v27, %v4865_v43  ;;  %v2577_v43 = vld [vmem:[#allocation10 + $0x28] sm:$0xff]  ;;  %v2586_v27 = vld [vmem:[#allocation10 + $0x70] sm:$0xff] }
 0x7f8   : > { %v4782_v17 = vpop.permute.xlu1 %4781  ;;  %v2198_v10 = vpop.xlane.xlu0 %2197  ;;  %v2210_v23 = vmul.f32 %v4881_v31, %v4867_v29  ;;  %v4458_v56 = vpack.c.bf16 %v2577_v43, %v2576_v40  ;;  %v2587_v31 = vld [vmem:[#allocation10 + $0x78] sm:$0xff] }
 0x7f9   : > { %v4784_v12 = vunpack.i.h.bf16 %v4782_v17  ;;  %v4783_v13 = vunpack.i.l.bf16 %v4782_v17  ;;  %4888 = vrcp.f32 %v2198_v10  ;;  %v4883_v15 = vpop.eup %4882  ;;  %v4478_v17 = vpack.c.bf16 %v2587_v31, %v2586_v27  ;;  %v2757_v43 = vld [vmem:[#allocation11 + $0x38] sm:$0xff]  ;;  %v2770_v31 = vld [vmem:[#allocation11 + $0xa0] sm:$0xff] }
 0x7fa   : > { %4890 = vrcp.f32 %v2201_v53  ;;  %4244 = vmatprep.mubr.msk.f32.mxu0 %vm1337_vm3, %v2210_v23  ;;  %v2215_v21 = vmul.f32 %v4883_v15, %v5917_v37  ;;  %v2584_v53 = vld [vmem:[#allocation10 + $0x60] sm:$0xff] }
 0x7fb   : > { %v4442_v54 = vpack.c.bf16 %v4784_v12, %v4783_v13  ;;  %4245 = vmatmul.mubr.msk.f32.vlgmr.msra.gmra.mrb[14].mxu0 %vm1337_vm3, %v2211_v11  ;;  %v4885_v26 = vpop.eup %4884  ;;  %v4474_v9 = vpack.c.bf16 %v2585_v42, %v2584_v53  ;;  %v2769_v53 = vld [vmem:[#allocation11 + $0x98] sm:$0xff] }
 0x7fc   : > { %v4787_v16 = vpop.permute.xlu1 %4786  ;;  %4258 = vmatprep.mubr.msk.f32.mxu0 %vm1337_vm3, %v2214_v14  ;;  %v4777_v18 = vpop.permute.xlu0 %4776  ;;  %v2213_v35 = vmul.f32 %v4885_v26, %v5927_v50  ;;  %v2773_v42 = vld [vmem:[#allocation11 + $0xb8] sm:$0xff] }
 0x7fd   : > { %v4789_v22 = vunpack.i.h.bf16 %v4787_v16  ;;  %v4788_v24 = vunpack.i.l.bf16 %v4787_v16  ;;  %v4779_v25 = vunpack.i.h.bf16 %v4777_v18  ;;  %v4778_v55 = vunpack.i.l.bf16 %v4777_v18  ;;  %4443 = vmatprep.subr.bf16.mxu0 %v4442_v54 }
 0x7fe   : > { %4445 = vmatpush3.bf16.msra.mxu0 %v4442_v54  ;;  %v4522_v27 = vpack.c.bf16 %v2773_v42, %v2769_v53 }
 0x7ff   : > { %v4438_v30 = vpack.c.bf16 %v4779_v25, %v4778_v55  ;;  %4451 = vmatprep.subr.bf16.mxu0 %v4450_v52  ;;  %v4887_v34 = vpop.eup %4886  ;;  %v4446_v38 = vpack.c.bf16 %v4789_v22, %v4788_v24  ;;  %v6002_v24 = vld [vmem:[%s6432_s11] ss:$0 sm:$0xff]  ;;  %s6256_s11 = scalar_lea.vmem [#allocation14], %s3854_s9 }
 0x800   : > { %v5966_v33 = vpop.permute.xlu1 %4796  ;;  %v5968_v36 = vpop.permute.xlu0 %4791  ;;  %v2212_v37 = vmul.f32 %v4887_v34, %v5933_v58  ;;  %v2578_v58 = vld [vmem:[#allocation10 + $0x30] sm:$0xff]  ;;  %s3710_s9 = sshll.u32 %s6256_s11, 4  ;;  %s6328_s9 = int_to_ptr.vmem [resolvable:$true] %s3710_s9 }
 0x801   : > { %v4793_v39 = vunpack.i.l.bf16 %v5968_v36  ;;  %4439 = vmatprep.subr.bf16.mxu1 %v4438_v30  ;;  %4259 = vmatmul.mubr.msk.f32.vlgmr.msra.gmra.mrb[16].mxu0 %vm1337_vm3, %v2215_v21  ;;  %v4798_v44 = vunpack.i.l.bf16 %v5966_v33  ;;  %v4794_v10 = vunpack.i.h.bf16 %v5968_v36  ;;  %v4799_v23 = vunpack.i.h.bf16 %v5966_v33  ;;  %v4964_v21 = vld [vmem:[%s5611_s8] sm:$0xff]  ;;  %v4965_v34 = vld [vmem:[%s5611_s8 + $0x8] sm:$0xff] }
 0x802   : > { %4441 = vmatpush3.bf16.msra.mxu1 %v4438_v30  ;;  %4453 = vmatpush3.bf16.msra.mxu0 %v4450_v52  ;;  %v2751_v36 = vld [vmem:[#allocation11 + $0x8] sm:$0xff] }
 0x803   : > { %v4889_v45 = vpop.eup %4888  ;;  %4447 = vmatprep.subr.bf16.mxu1 %v4446_v38  ;;  %4455 = vmatprep.subr.bf16.mxu0 %v4454_v32  ;;  %v1774_v29 = vsel %vm984_vm0, %v5871_v51, %v4793_v39  ;;  %v1775_v63 = vsel %vm984_vm0, %v5869_v28, %v4794_v10  ;;  %v2753_v39 = vld [vmem:[#allocation11 + $0x18] sm:$0xff]  ;;  %v2772_v10 = vld [vmem:[#allocation11 + $0xb0] sm:$0xff] }
 0x804   : > { %v4891_v47 = vpop.eup %4890  ;;  %4251 = vmatprep.mubr.msk.f32.mxu1 %vm1337_vm3, %v2212_v37  ;;  %v4802_v48 = vpop.permute.xlu0 %4801  ;;  %v2216_v49 = vmul.f32 %v4889_v45, %v5939_v3  ;;  %v1777_v50 = vsel %vm1776_vm5, %v1774_v29, %v4798_v44  ;;  %v4462_v3 = vpack.c.bf16 %v2579_v62, %v2578_v58  ;;  %v1778_v11 = vsel %vm1776_vm5, %v1775_v63, %v4799_v23  ;;  %v2750_v44 = vld [vmem:[#allocation11] sm:$0xff]  ;;  %v2752_v29 = vld [vmem:[#allocation11 + $0x10] sm:$0xff]  ;;  %v2765_v58 = vld [vmem:[#allocation11 + $0x78] sm:$0xff] }
 0x805   : > { %v4803_v59 = vunpack.i.l.bf16 %v4802_v48  ;;  %4252 = vmatmul.mubr.msk.f32.vlgmr.msra.gmra.mrb[22].mxu1 %vm1337_vm3, %v2213_v35  ;;  %v2217_v51 = vmul.f32 %v4891_v47, %v5931_v57  ;;  %v4470_v57 = vpack.c.bf16 %v2583_v41, %v2582_v2  ;;  %v4804_v46 = vunpack.i.h.bf16 %v4802_v48  ;;  %v2754_v37 = vld [vmem:[#allocation11 + $0x20] sm:$0xff]  ;;  %v2756_v47 = vld [vmem:[#allocation11 + $0x30] sm:$0xff]  ;;  %v2759_v48 = vld [vmem:[#allocation11 + $0x48] sm:$0xff] }
 0x806   : > { %4449 = vmatpush3.bf16.msra.mxu1 %v4446_v38  ;;  %4265 = vmatprep.mubr.msk.f32.mxu1 %vm1337_vm3, %v2216_v49  ;;  %v2755_v38 = vld [vmem:[#allocation11 + $0x28] sm:$0xff]  ;;  %v4514_v45 = vpack.c.bf16 %v2757_v43, %v2753_v39  ;;  %v4484_v35 = vpack.c.bf16 %v2754_v37, %v2750_v44  ;;  %v4516_v49 = vpack.c.bf16 %v2756_v47, %v2752_v29  ;;  %v2774_v43 = vld [vmem:[#allocation11 + $0xc0] sm:$0xff]  ;;  %v2780_v29 = vld [vmem:[#allocation11 + $0xf0] sm:$0xff] }
 0x807   : > { %4457 = vmatpush3.bf16.msra.mxu0 %v4454_v32  ;;  %v1780_v4 = vsel %vm1779_vm6, %v1777_v50, %v4803_v59  ;;  %v1781_v12 = vsel %vm1779_vm6, %v1778_v11, %v4804_v46  ;;  %v4482_v40 = vpack.c.bf16 %v2755_v38, %v2751_v36  ;;  %v2761_v59 = vld [vmem:[#allocation11 + $0x58] sm:$0xff]  ;;  %v2771_v2 = vld [vmem:[#allocation11 + $0xa8] sm:$0xff]  ;;  %v2778_v44 = vld [vmem:[#allocation11 + $0xe0] sm:$0xff] }
 0x808   : > { %4300 = vmatprep.mubr.f32.mxu0 %v1780_v4  ;;  %4459 = vmatprep.subr.bf16.mxu0 %v4458_v56  ;;  %v4518_v50 = vpack.c.bf16 %v2765_v58, %v2761_v59  ;;  %v2762_v4 = vld [vmem:[#allocation11 + $0x60] sm:$0xff]  ;;  %v2779_v36 = vld [vmem:[#allocation11 + $0xe8] sm:$0xff]  ;;  %v2777_v38 = vld [vmem:[#allocation11 + $0xd8] sm:$0xff] }
 0x809   : > { %4266 = vmatmul.mubr.msk.f32.vlgmr.msra.gmra.mrb[24].mxu1 %vm1337_vm3, %v2217_v51  ;;  %4483 = vmatprep.subr.bf16.mxu1 %v4482_v40  ;;  %v2758_v51 = vld [vmem:[#allocation11 + $0x40] sm:$0xff]  ;;  %v2781_v40 = vld [vmem:[#allocation11 + $0xf8] sm:$0xff] }
 0x80a   : > { %2900 = vmatprep.mubr.f32.mxu1 %v5259_v7  ;;  %4485 = vmatpush1.bf16.msra.mxu1 %v4484_v35  ;;  %v4488_v5 = vpack.c.bf16 %v2762_v4, %v2758_v51  ;;  %v4526_v37 = vpack.c.bf16 %v2781_v40, %v2777_v38  ;;  %v2776_v35 = vld [vmem:[#allocation11 + $0xd0] sm:$0xff]  ;;  %v2789_v58 = vld [vmem:[#allocation11 + $0x138] sm:$0xff] }
 0x80b   : > { %4461 = vmatpush3.bf16.msra.mxu0 %v4458_v56  ;;  %v2763_v56 = vld [vmem:[#allocation11 + $0x68] sm:$0xff]  ;;  %v4528_v47 = vpack.c.bf16 %v2780_v29, %v2776_v35  ;;  %v2808_v38 = vld [vmem:[#allocation11 + $0x1d0] sm:$0xff] }
 0x80c   : > { %4463 = vmatprep.subr.bf16.mxu0 %v4462_v3  ;;  %v4486_v62 = vpack.c.bf16 %v2763_v56, %v2759_v48  ;;  %v2783_v48 = vld [vmem:[#allocation11 + $0x108] sm:$0xff]  ;;  %v2785_v56 = vld [vmem:[#allocation11 + $0x118] sm:$0xff] }
 0x80d   : > { %v4530_v51 = vpack.c.bf16 %v2789_v58, %v2785_v56 }
 0x80e   : > { %4487 = vmatprep.subr.bf16.mxu1 %v4486_v62  ;;  %v2782_v62 = vld [vmem:[#allocation11 + $0x100] sm:$0xff] }
 0x80f   : > { %4465 = vmatpush3.bf16.msra.mxu0 %v4462_v3  ;;  %v2760_v3 = vld [vmem:[#allocation11 + $0x50] sm:$0xff]  ;;  %4489 = vmatpush1.bf16.msra.mxu1 %v4488_v5 }
 0x810   : > { %4467 = vmatprep.subr.bf16.mxu0 %v4466_v8  ;;  %v4520_v41 = vpack.c.bf16 %v2764_v6, %v2760_v3  ;;  %v2784_v3 = vld [vmem:[#allocation11 + $0x110] sm:$0xff]  ;;  %v2791_v6 = vld [vmem:[#allocation11 + $0x148] sm:$0xff] }
 0x811   : > { %v2788_v5 = vld [vmem:[#allocation11 + $0x130] sm:$0xff] }
 0x813   : > { %4469 = vmatpush3.bf16.msra.mxu0 %v4466_v8  ;;  %v2767_v8 = vld [vmem:[#allocation11 + $0x88] sm:$0xff] }
 0x814   : > { %4471 = vmatprep.subr.bf16.mxu0 %v4470_v57 }
 0x817   : > { %4473 = vmatpush3.bf16.msra.mxu0 %v4470_v57  ;;  %v4490_v57 = vpack.c.bf16 %v2771_v2, %v2767_v8  ;;  %v4532_v8 = vpack.c.bf16 %v2788_v5, %v2784_v3  ;;  %v2795_v2 = vld [vmem:[#allocation11 + $0x168] sm:$0xff] }
 0x818   : > { %4475 = vmatprep.subr.bf16.mxu0 %v4474_v9  ;;  %v4502_v53 = vpack.c.bf16 %v2795_v2, %v2791_v6  ;;  %v3463_v2 = vld [vmem:[#allocation13 + $0x88] sm:$0xff] }
 0x819   : > { %4491 = vmatprep.subr.bf16.mxu1 %v4490_v57  ;;  %v2797_v57 = vld [vmem:[#allocation11 + $0x178] sm:$0xff] }
 0x81b   : > { %4477 = vmatpush3.bf16.msra.mxu0 %v4474_v9  ;;  %v2766_v9 = vld [vmem:[#allocation11 + $0x80] sm:$0xff] }
 0x81c   : > { %4479 = vmatprep.subr.bf16.mxu0 %v4478_v17  ;;  %v4492_v23 = vpack.c.bf16 %v2770_v31, %v2766_v9  ;;  %v2790_v9 = vld [vmem:[#allocation11 + $0x140] sm:$0xff]  ;;  %v2792_v31 = vld [vmem:[#allocation11 + $0x150] sm:$0xff] }
 0x81e   : > { %4493 = vmatpush1.bf16.msra.mxu1 %v4492_v23  ;;  %v2799_v23 = vld [vmem:[#allocation11 + $0x188] sm:$0xff] }
 0x81f   : > { %4481 = vmatpush3.bf16.msra.mxu0 %v4478_v17  ;;  %v2768_v17 = vld [vmem:[#allocation11 + $0x90] sm:$0xff] }
 0x820   : > { %4515 = vmatprep.subr.bf16.mxu0 %v4514_v45  ;;  %v4524_v63 = vpack.c.bf16 %v2772_v10, %v2768_v17  ;;  %v4496_v45 = vpack.c.bf16 %v2778_v44, %v2774_v43  ;;  %v2796_v10 = vld [vmem:[#allocation11 + $0x170] sm:$0xff] }
 0x822   : > { %4301 = vmatmul.mubr.f32.vlgmr.msra.gmra.mrb[18].mxu0 %v1781_v12 }
 0x823   : > { %4517 = vmatpush1.bf16.msra.mxu0 %v4516_v49  ;;  %v2787_v49 = vld [vmem:[#allocation11 + $0x128] sm:$0xff] }
 0x824   : > { %4519 = vmatprep.subr.bf16.mxu0 %v4518_v50  ;;  %v4498_v59 = vpack.c.bf16 %v2787_v49, %v2783_v48  ;;  %v2786_v50 = vld [vmem:[#allocation11 + $0x120] sm:$0xff]  ;;  %v6031_v48 = vld [vmem:[%s6433_s20] ss:$0 sm:$0xff] }
 0x825   : > { %v4500_v4 = vpack.c.bf16 %v2786_v50, %v2782_v62  ;;  %v4966_v50 = vld [vmem:[%s5611_s8 + $0x10] sm:$0xff] }
 0x827   : > { %4521 = vmatpush1.bf16.msra.mxu0 %v4520_v41  ;;  %v2793_v41 = vld [vmem:[#allocation11 + $0x158] sm:$0xff] }
 0x828   : > { %4523 = vmatprep.subr.bf16.mxu0 %v4522_v27  ;;  %v4534_v42 = vpack.c.bf16 %v2797_v57, %v2793_v41  ;;  %v2794_v27 = vld [vmem:[#allocation11 + $0x160] sm:$0xff] }
 0x829   : > { %v4504_v17 = vpack.c.bf16 %v2794_v27, %v2790_v9  ;;  %v3494_v41 = vld [vmem:[#allocation13 + $0x180] sm:$0xff]  ;;  %v3447_v9 = vld [vmem:[#allocation13 + $0x8] sm:$0xff] }
 0x82b   : > { %4525 = vmatpush1.bf16.msra.mxu0 %v4524_v63  ;;  %v2803_v63 = vld [vmem:[#allocation11 + $0x1a8] sm:$0xff] }
 0x82c   : > { %4527 = vmatprep.subr.bf16.mxu0 %v4526_v37 }
 0x82f   : > { %4529 = vmatpush1.bf16.msra.mxu0 %v4528_v47 }
 0x830   : > { %4531 = vmatprep.subr.bf16.mxu0 %v4530_v51 }
 0x833   : > { %4533 = vmatpush1.bf16.msra.mxu0 %v4532_v8  ;;  %v3462_v8 = vld [vmem:[#allocation13 + $0x80] sm:$0xff] }
 0x834   : > { %4535 = vmatprep.subr.bf16.mxu0 %v4534_v42  ;;  %v4546_v57 = vpack.c.bf16 %v3463_v2, %v3462_v8  ;;  %v3446_v42 = vld [vmem:[#allocation13] sm:$0xff]  ;;  %v3500_v8 = vld [vmem:[#allocation13 + $0x1b0] sm:$0xff]  ;;  %v3501_v2 = vld [vmem:[#allocation13 + $0x1b8] sm:$0xff] }
 0x8ce   : > { %v5992_v13 = vpop.f32.mrb[14].mxu0 }
 0x8cf   : > { %v5994_v14 = vpop.f32.mrb[15].mxu0 }
 0x8d4   : > { %v4260_v54 = vpop.f32.mrb[16].mxu0 }
 0x8d5   : > { %v2452_v52 = vpop.f32.mrb[17].mxu0 }
 0x8d6   : > { %v4805_v15 = vpack.i.bf16 %v4260_v54, %v2452_v52 }
 0x8d8   : > { %4806 = vrot.lane.b32.xlu0 %v4805_v15, %s5262_s25  ;;  %v4253_v16 = vpop.f32.mrb[22].mxu1 }
 0x8d9   : > { %v2371_v28 = vpop.f32.mrb[23].mxu1 }
 0x8da   : > { %v4810_v18 = vpack.i.bf16 %v4253_v16, %v2371_v28 }
 0x8dc   : > { %4811 = vrot.lane.b32.xlu1 %v4810_v18, %s5261_s23  ;;  %v4267_v19 = vpop.f32.mrb[24].mxu1  ;;  %s6435_s23 = sld [smem:[#allocation25_spill]] }
 0x8dd   : > { %v2533_v20 = vpop.f32.mrb[25].mxu1 }
 0x8de   : > { %v4815_v22 = vpack.i.bf16 %v4267_v19, %v2533_v20 }
 0x8e0   : > { %4816 = vrot.lane.b32.xlu1 %v4815_v22, %s5260_s24  ;;  %s5170_s24 = sshll.u32 %s5264_s19, 4  ;;  %s5171_s24 = int_to_ptr.vmem [resolvable:$false] %s5170_s24 }
 0x8e1   : > { %p5173_p11 = scmp.lt.s32.totalorder %s6328_s9, %s5171_s24 }
 0x8f5   : > { %v4302_v25 = vpop.f32.mrb[18].mxu0 }
 0x8f6   : > { %v2661_v55 = vpop.f32.mrb[19].mxu0  ;;  %v2667_v32 = vadd.f32 %v4302_v25, %v6002_v24 }
 0x8f7   : > { %v2662_v26 = vadd.f32 %v6002_v24, %v2661_v55 }
 0x8f8   : > { %v6011_v33 = vadd.f32 %v4965_v34, %v2667_v32  ;;  %v2775_v34 = vld [vmem:[#allocation11 + $0xc8] sm:$0xff] }
 0x8f9   : > { %v6006_v30 = vadd.f32 %v4964_v21, %v2662_v26  ;;  %v4494_v39 = vpack.c.bf16 %v2779_v36, %v2775_v34 }
 0x8fb   : > { %2686 = vadd.xlane.f32.xlu0 %v6006_v30  ;;  %4495 = vmatprep.subr.bf16.mxu1 %v4494_v39  ;;  %v2812_v39 = vld [vmem:[#allocation11 + $0x1f0] sm:$0xff] }
 0x8fc   : > { %4497 = vmatpush1.bf16.msra.mxu1 %v4496_v45  ;;  %v4544_v40 = vpack.c.bf16 %v2812_v39, %v2808_v38 }
 0x8fd   : > { %4499 = vmatprep.subr.bf16.mxu1 %v4498_v59  ;;  %v6038_v59 = vld [vmem:[%s6434_s13] ss:$0 sm:$0xff]  ;;  %s3696_s13 = scalar_lea.sflag [#allocation4], %s5605_s28 }
 0x900   : > { %4501 = vmatpush1.bf16.msra.mxu1 %v4500_v4 }
 0x901   : > { %4503 = vmatprep.subr.bf16.mxu1 %v4502_v53  ;;  %v3495_v53 = vld [vmem:[#allocation13 + $0x188] sm:$0xff] }
 0x902   : > { %v4578_v27 = vpack.c.bf16 %v3495_v53, %v3494_v41  ;;  %v3452_v53 = vld [vmem:[#allocation13 + $0x30] sm:$0xff] }
 0x904   : > { %2688 = vadd.xlane.f32.xlu1 %v6011_v33  ;;  %4505 = vmatpush1.bf16.msra.mxu1 %v4504_v17  ;;  %v3478_v17 = vld [vmem:[#allocation13 + $0x100] sm:$0xff] }
 0x94a   : > { %v4807_v11 = vpop.permute.xlu0 %4806 }
 0x94b   : > { %v4809_v16 = vunpack.i.h.bf16 %v4807_v11  ;;  %v4808_v28 = vunpack.i.l.bf16 %v4807_v11  ;;  %v4506_v11 = vpack.c.bf16 %v2803_v63, %v2799_v23 }
 0x94d   : > { %4507 = vmatprep.subr.bf16.mxu1 %v4506_v11 }
 0x94e   : > { %v4812_v46 = vpop.permute.xlu1 %4811 }
 0x94f   : > { %v4814_v12 = vunpack.i.h.bf16 %v4812_v46  ;;  %v4813_v54 = vunpack.i.l.bf16 %v4812_v46  ;;  %v4536_v46 = vpack.c.bf16 %v2796_v10, %v2792_v31  ;;  %v4548_v31 = vpack.c.bf16 %v3447_v9, %v3446_v42  ;;  %v3479_v10 = vld [vmem:[#allocation13 + $0x108] sm:$0xff]  ;;  %v3453_v42 = vld [vmem:[#allocation13 + $0x38] sm:$0xff]  ;;  %v3484_v9 = vld [vmem:[#allocation13 + $0x130] sm:$0xff] }
 0x950   : > { %v4580_v23 = vpack.c.bf16 %v3479_v10, %v3478_v17  ;;  %v3470_v17 = vld [vmem:[#allocation13 + $0xc0] sm:$0xff]  ;;  %v3471_v10 = vld [vmem:[#allocation13 + $0xc8] sm:$0xff] }
 0x951   : > { %v2566_v52 = vsel %vm984_vm0, %v5994_v14, %v4813_v54  ;;  %v2567_v15 = vsel %vm984_vm0, %v5992_v13, %v4814_v12  ;;  %v2801_v12 = vld [vmem:[#allocation11 + $0x198] sm:$0xff]  ;;  %4537 = vmatpush1.bf16.msra.mxu0 %v4536_v46 }
 0x952   : > { %v4817_v18 = vpop.permute.xlu1 %4816  ;;  %v2568_v22 = vsel %vm1776_vm5, %v2566_v52, %v4808_v28  ;;  %v2569_v25 = vsel %vm1776_vm5, %v2567_v15, %v4809_v16  ;;  %v2805_v54 = vld [vmem:[#allocation11 + $0x1b8] sm:$0xff]  ;;  %v2798_v15 = vld [vmem:[#allocation11 + $0x180] sm:$0xff]  ;;  %v2800_v28 = vld [vmem:[#allocation11 + $0x190] sm:$0xff] }
 0x953   : > { %v4819_v19 = vunpack.i.h.bf16 %v4817_v18  ;;  %v4818_v20 = vunpack.i.l.bf16 %v4817_v18  ;;  %v4538_v52 = vpack.c.bf16 %v2805_v54, %v2801_v12  ;;  %v2802_v16 = vld [vmem:[#allocation11 + $0x1a0] sm:$0xff] }
 0x954   : > { %v4508_v18 = vpack.c.bf16 %v2802_v16, %v2798_v15 }
 0x955   : > { %v2570_v55 = vsel %vm1779_vm6, %v2568_v22, %v4818_v20  ;;  %v2571_v26 = vsel %vm1779_vm6, %v2569_v25, %v4819_v19  ;;  %4539 = vmatprep.subr.bf16.mxu0 %v4538_v52  ;;  %v2804_v19 = vld [vmem:[#allocation11 + $0x1b0] sm:$0xff]  ;;  %v2807_v22 = vld [vmem:[#allocation11 + $0x1c8] sm:$0xff] }
 0x956   : > { %4303 = vmatprep.mubr.f32.mxu0 %v2570_v55  ;;  %v4540_v20 = vpack.c.bf16 %v2804_v19, %v2800_v28  ;;  %4509 = vmatpush1.bf16.msra.mxu1 %v4508_v18  ;;  %v2811_v25 = vld [vmem:[#allocation11 + $0x1e8] sm:$0xff]  ;;  %v2809_v55 = vld [vmem:[#allocation11 + $0x1d8] sm:$0xff] }
 0x957   : > { %4304 = vmatmul.mubr.f32.gmra.mrb[20].mxu0 %v2571_v26  ;;  %v4510_v26 = vpack.c.bf16 %v2811_v25, %v2807_v22  ;;  %v3464_v25 = vld [vmem:[#allocation13 + $0x90] sm:$0xff] }
 0x958   : > { %2989 = vmatprep.mubr.f32.mxu0 %v5259_v7  ;;  %4541 = vmatpush1.bf16.msra.mxu0 %v4540_v20 }
 0x959   : > { %4511 = vmatprep.subr.bf16.mxu1 %v4510_v26  ;;  %v3496_v26 = vld [vmem:[#allocation13 + $0x190] sm:$0xff] }
 0x988   : > { %v2687_v14 = vpop.xlane.xlu0 %2686 }
 0x989   : > { %v2694_v21 = vmul.f32 0.0078125, %v2687_v14  ;;  %v2813_v14 = vld [vmem:[#allocation11 + $0x1f8] sm:$0xff] }
 0x98a   : > { %v4542_v34 = vpack.c.bf16 %v2813_v14, %v2809_v55  ;;  %v3465_v55 = vld [vmem:[#allocation13 + $0x98] sm:$0xff] }
 0x98b   : > { %v6024_v13 = vsub.f32 %v6006_v30, %v2694_v21  ;;  %v2806_v21 = vld [vmem:[#allocation11 + $0x1c0] sm:$0xff] }
 0x98c   : > { %4543 = vmatprep.subr.bf16.mxu0 %v4542_v34  ;;  %v3448_v34 = vld [vmem:[#allocation13 + $0x10] sm:$0xff] }
 0x98d   : > { %v2702_v32 = vmul.f32 %v6024_v13, %v6024_v13  ;;  %4545 = vmatpush1.bf16.msra.mxu0 %v4544_v40  ;;  %v3480_v40 = vld [vmem:[#allocation13 + $0x110] sm:$0xff] }
 0x98e   : > { %4579 = vmatprep.subr.bf16.mxu0 %v4578_v27  ;;  %v4560_v27 = vpack.c.bf16 %v3453_v42, %v3452_v53  ;;  %v3493_v53 = vld [vmem:[#allocation13 + $0x178] sm:$0xff] }
 0x98f   : > { %2706 = vadd.xlane.f32.xlu1 %v2702_v32  ;;  %v2810_v32 = vld [vmem:[#allocation11 + $0x1e0] sm:$0xff] }
 0x990   : > { %v4512_v36 = vpack.c.bf16 %v2810_v32, %v2806_v21  ;;  %v4550_v21 = vpack.c.bf16 %v3465_v55, %v3464_v25  ;;  %v3497_v32 = vld [vmem:[#allocation13 + $0x198] sm:$0xff]  ;;  %v3504_v25 = vld [vmem:[#allocation13 + $0x1d0] sm:$0xff] }
 0x991   : > { %v2689_v43 = vpop.xlane.xlu1 %2688  ;;  %v4582_v38 = vpack.c.bf16 %v3497_v32, %v3496_v26  ;;  %v3505_v26 = vld [vmem:[#allocation13 + $0x1d8] sm:$0xff] }
 0x992   : > { %4513 = vmatpush1.bf16.msra.mxu1 %v4512_v36  ;;  %v2695_v58 = vmul.f32 0.0078125, %v2689_v43  ;;  %v3449_v36 = vld [vmem:[#allocation13 + $0x18] sm:$0xff] }
 0x993   : > { %4547 = vmatprep.subr.bf16.mxu1 %v4546_v57  ;;  %v4552_v39 = vpack.c.bf16 %v3449_v36, %v3448_v34  ;;  %v3481_v43 = vld [vmem:[#allocation13 + $0x118] sm:$0xff]  ;;  %v4590_v57 = vpack.c.bf16 %v3501_v2, %v3500_v8  ;;  %v4598_v34 = vpack.c.bf16 %v3505_v26, %v3504_v25  ;;  %v3488_v36 = vld [vmem:[#allocation13 + $0x150] sm:$0xff] }
 0x994   : > { %v2699_v5 = vsub.f32 %v6011_v33, %v2695_v58  ;;  %v3451_v58 = vld [vmem:[#allocation13 + $0x28] sm:$0xff]  ;;  %v3460_v8 = vld [vmem:[#allocation13 + $0x70] sm:$0xff]  ;;  %v3461_v2 = vld [vmem:[#allocation13 + $0x78] sm:$0xff] }
 0x995   : > { %v4576_v42 = vpack.c.bf16 %v3461_v2, %v3460_v8 }
 0xa1c   : > { %v2707_v44 = vpop.xlane.xlu1 %2706 }
 0xa1d   : > { %v2714_v37 = vmul.f32 0.0078125, %v2707_v44 }
 0xa1f   : > { %v2718_v45 = vadd.f32 1e-06, %v2714_v37  ;;  %v4584_v37 = vpack.c.bf16 %v3481_v43, %v3480_v40  ;;  %v3474_v40 = vld [vmem:[#allocation13 + $0xe0] sm:$0xff]  ;;  %v3475_v43 = vld [vmem:[#allocation13 + $0xe8] sm:$0xff] }
 0xa21   : > { %4892 = vrsqrt.f32 %v2718_v45  ;;  %v3466_v45 = vld [vmem:[#allocation13 + $0xa0] sm:$0xff] }
 0xa2a   : > { %v4305_v35 = vpop.f32.mrb[20].mxu0 }
 0xa2b   : > { %v4893_v29 = vpop.eup %4892  ;;  %v2671_v47 = vpop.f32.mrb[21].mxu0  ;;  %v2677_v62 = vadd.f32 %v4305_v35, %v6002_v24  ;;  %v3467_v35 = vld [vmem:[#allocation13 + $0xa8] sm:$0xff] }
 0xa2c   : > { %v2672_v49 = vadd.f32 %v6002_v24, %v2671_v47  ;;  %v2726_v56 = vmul.f32 %v4893_v29, %v6024_v13  ;;  %v4967_v13 = vld [vmem:[%s5611_s8 + $0x18] sm:$0xff]  ;;  %v2703_v24 = vmul.f32 %v2699_v5, %v2699_v5  ;;  %v4554_v47 = vpack.c.bf16 %v3467_v35, %v3466_v45  ;;  %s5166_s8 = scalar_lea.vmem %s6328_s9, 512 }
 0xa2d   : > { %v6049_v6 = vadd.f32 %v4967_v13, %v2677_v62  ;;  %v3498_v29 = vld [vmem:[#allocation13 + $0x1a0] sm:$0xff]  ;;  %v4570_v45 = vpack.c.bf16 %v3475_v43, %v3474_v40  ;;  %v3507_v35 = vld [vmem:[#allocation13 + $0x1e8] sm:$0xff]  ;;  %p5167_p6 = scmp.ne.s32.totalorder %s6328_s9, %s5166_s8 }
 0xa2e   : > { %v6042_v51 = vadd.f32 %v4966_v50, %v2672_v49  ;;  %v2736_v4 = vmul.f32 %v6031_v48, %v2726_v56  ;;  %v3499_v49 = vld [vmem:[#allocation13 + $0x1a8] sm:$0xff]  ;;  %v3450_v56 = vld [vmem:[#allocation13 + $0x20] sm:$0xff] }
 0xa2f   : > { %v4586_v62 = vpack.c.bf16 %v3499_v49, %v3498_v29  ;;  %v4556_v50 = vpack.c.bf16 %v3451_v58, %v3450_v56  ;;  %v3458_v29 = vld [vmem:[#allocation13 + $0x60] sm:$0xff]  ;;  %v3491_v58 = vld [vmem:[#allocation13 + $0x168] sm:$0xff]  ;;  %p5168_p10 = pnand %p5167_p6, %p6438_p5 }
 0xa30   : > { %2690 = vadd.xlane.f32.xlu0 %v6042_v51  ;;  %v2746_v3 = vadd.f32 %v6038_v59, %v2736_v4  ;;  %v3482_v4 = vld [vmem:[#allocation13 + $0x120] sm:$0xff] }
 0xa31   : > { %v3490_v56 = vld [vmem:[#allocation13 + $0x160] sm:$0xff]  ;;  %p5169_p1 = pneg %p5168_p10 }
 0xa32   : > { %2901 = vmatmul.mubr.f32.vlgmr.msra.gmra.mrb[26].mxu1 %v2746_v3  ;;  %2990 = vmatmul.mubr.f32.vlgmr.msra.gmra.mrb[22].mxu0 %v2746_v3  ;;  %v3483_v3 = vld [vmem:[#allocation13 + $0x128] sm:$0xff] }
 0xa33   : > { %2906 = vmatprep.mubr.f32.mxu1 %v5259_v7  ;;  %2995 = vmatprep.mubr.f32.mxu0 %v5259_v7  ;;  %v4588_v13 = vpack.c.bf16 %v3483_v3, %v3482_v4  ;;  %v3477_v4 = vld [vmem:[#allocation13 + $0xf8] sm:$0xff]  ;;  %v3508_v3 = vld [vmem:[#allocation13 + $0x1f0] sm:$0xff] }
 0xa34   : > { %2692 = vadd.xlane.f32.xlu0 %v6049_v6  ;;  %4549 = vmatpush3.bf16.msra.mxu1 %v4548_v31  ;;  %v3485_v31 = vld [vmem:[#allocation13 + $0x138] sm:$0xff] }
 0xa35   : > { %4581 = vmatpush3.bf16.msra.mxu0 %v4580_v23  ;;  %4551 = vmatprep.subr.bf16.mxu1 %v4550_v21  ;;  %v4592_v23 = vpack.c.bf16 %v3485_v31, %v3484_v9  ;;  %v3457_v21 = vld [vmem:[#allocation13 + $0x58] sm:$0xff] }
 0xa36   : > { %4583 = vmatprep.subr.bf16.mxu0 %v4582_v38  ;;  %v3489_v38 = vld [vmem:[#allocation13 + $0x158] sm:$0xff] }
 0xa38   : > { %2708 = vadd.xlane.f32.xlu0 %v2703_v24  ;;  %4553 = vmatpush3.bf16.msra.mxu1 %v4552_v39  ;;  %v3469_v24 = vld [vmem:[#allocation13 + $0xb8] sm:$0xff] }
 0xa39   : > { %4585 = vmatpush3.bf16.msra.mxu0 %v4584_v37  ;;  %4555 = vmatprep.subr.bf16.mxu1 %v4554_v47  ;;  %v4600_v37 = vpack.c.bf16 %v3489_v38, %v3488_v36  ;;  %v3459_v47 = vld [vmem:[#allocation13 + $0x68] sm:$0xff] }
 0xa3a   : > { %4587 = vmatprep.subr.bf16.mxu0 %v4586_v62  ;;  %v4572_v62 = vpack.c.bf16 %v3459_v47, %v3458_v29 }
 0xa3c   : > { %4557 = vmatpush3.bf16.msra.mxu1 %v4556_v50  ;;  %v3476_v50 = vld [vmem:[#allocation13 + $0xf0] sm:$0xff] }
 0xa3d   : > { %4589 = vmatpush3.bf16.msra.mxu0 %v4588_v13  ;;  %v4574_v13 = vpack.c.bf16 %v3477_v4, %v3476_v50 }
 0xa3e   : > { %4591 = vmatprep.subr.bf16.mxu0 %v4590_v57  ;;  %v3492_v57 = vld [vmem:[#allocation13 + $0x170] sm:$0xff] }
 0xa3f   : > { %v4608_v9 = vpack.c.bf16 %v3493_v53, %v3492_v57 }
 0xa41   : > { %4593 = vmatpush3.bf16.msra.mxu0 %v4592_v23  ;;  %v2814_v23 = vld [vmem:[%s6435_s23] sm:$0xf]  ;;  %s5172_s23 = scalar_lea.vmem %s5171_s24, 1024 }
 0xa42   : > { %p5174_p12 = scmp.lt.s32.totalorder %s5172_s23, %s5166_s8 }
 0xa44   : > { %p5175_p13 = por %p5174_p12, %p5173_p11 }
 0xa46   : > { %p5176_p8 = pnand %p5175_p13, %p5169_p1 }
 0xabd   : > { %v2691_v63 = vpop.xlane.xlu0 %2690 }
 0xabe   : > { %v2696_v46 = vmul.f32 0.0078125, %v2691_v63  ;;  %v4562_v63 = vpack.c.bf16 %v3471_v10, %v3470_v17 }
 0xac0   : > { %v6055_v11 = vsub.f32 %v6042_v51, %v2696_v46  ;;  %v3502_v46 = vld [vmem:[#allocation13 + $0x1c0] sm:$0xff] }
 0xac1   : > { %v2693_v12 = vpop.xlane.xlu0 %2692 }
 0xac2   : > { %v2697_v54 = vmul.f32 0.0078125, %v2693_v12  ;;  %v2704_v52 = vmul.f32 %v6055_v11, %v6055_v11  ;;  %v3503_v12 = vld [vmem:[#allocation13 + $0x1c8] sm:$0xff] }
 0xac4   : > { %v6060_v15 = vsub.f32 %v6049_v6, %v2697_v54  ;;  %2710 = vadd.xlane.f32.xlu1 %v2704_v52  ;;  %v3454_v54 = vld [vmem:[#allocation13 + $0x40] sm:$0xff]  ;;  %v4594_v52 = vpack.c.bf16 %v3503_v12, %v3502_v46  ;;  %v6074_v46 = vrot.slane %v2814_v23, %v705_v1 }
 0xac5   : > { %v2709_v16 = vpop.xlane.xlu0 %2708 }
 0xac6   : > { %v2715_v28 = vmul.f32 0.0078125, %v2709_v16  ;;  %v2705_v18 = vmul.f32 %v6060_v15, %v6060_v15  ;;  %v3455_v16 = vld [vmem:[#allocation13 + $0x48] sm:$0xff]  ;;  %4595 = vmatprep.subr.bf16.mxu0 %v4594_v52  ;;  %v6084_v52 = vrot.slane %v2814_v23, %v709_v0 }
 0xac8   : > { %v2719_v19 = vadd.f32 1e-06, %v2715_v28  ;;  %2712 = vadd.xlane.f32.xlu0 %v2705_v18  ;;  %v3486_v28 = vld [vmem:[#allocation13 + $0x140] sm:$0xff]  ;;  %v3487_v18 = vld [vmem:[#allocation13 + $0x148] sm:$0xff] }
 0xac9   : > { %v4596_v32 = vpack.c.bf16 %v3487_v18, %v3486_v28 }
 0xaca   : > { %4894 = vrsqrt.f32 %v2719_v19  ;;  %v4564_v19 = vpack.c.bf16 %v3455_v16, %v3454_v54  ;;  %v6080_v54 = vrot.slane %v2814_v23, %v701_v61 }
 0xacb   : > { %4597 = vmatpush3.bf16.msra.mxu0 %v4596_v32 }
 0xacc   : > { %4599 = vmatprep.subr.bf16.mxu0 %v4598_v34 }
 0xacf   : > { %4601 = vmatpush3.bf16.msra.mxu0 %v4600_v37 }
 0xad4   : > { %v4895_v20 = vpop.eup %4894 }
 0xad5   : > { %v2727_v22 = vmul.f32 %v4895_v20, %v2699_v5  ;;  %v3468_v5 = vld [vmem:[#allocation13 + $0xb0] sm:$0xff] }
 0xad6   : > { %v4558_v41 = vpack.c.bf16 %v3469_v24, %v3468_v5  ;;  %v3472_v20 = vld [vmem:[#allocation13 + $0xd0] sm:$0xff]  ;;  %v4604_v5 = vpack.c.bf16 %v3491_v58, %v3490_v56  ;;  %v3509_v24 = vld [vmem:[#allocation13 + $0x1f8] sm:$0xff] }
 0xad7   : > { %v2737_v14 = vmul.f32 %v6031_v48, %v2727_v22  ;;  %v3473_v22 = vld [vmem:[#allocation13 + $0xd8] sm:$0xff] }
 0xad8   : > { %4559 = vmatprep.subr.bf16.mxu1 %v4558_v41  ;;  %v4566_v55 = vpack.c.bf16 %v3473_v22, %v3472_v20  ;;  %v4606_v41 = vpack.c.bf16 %v3509_v24, %v3508_v3 }
 0xad9   : > { %v2747_v44 = vadd.f32 %v6038_v59, %v2737_v14  ;;  %4561 = vmatpush3.bf16.msra.mxu1 %v4560_v27  ;;  %v3456_v14 = vld [vmem:[#allocation13 + $0x50] sm:$0xff] }
 0xada   : > { %4563 = vmatprep.subr.bf16.mxu1 %v4562_v63  ;;  %v4568_v39 = vpack.c.bf16 %v3457_v21, %v3456_v14  ;;  %v2830_v63 = vsub.s32 3, %v5658_v60 }
 0xadb   : > { %2907 = vmatmul.mubr.f32.gmra.mrb[28].mxu1 %v2747_v44  ;;  %2996 = vmatmul.mubr.f32.gmra.mrb[24].mxu0 %v2747_v44  ;;  %v3506_v44 = vld [vmem:[#allocation13 + $0x1e0] sm:$0xff] }
 0xadc   : > { %2912 = vmatprep.mubr.f32.mxu1 %v5259_v7  ;;  %3001 = vmatprep.mubr.f32.mxu0 %v5259_v7  ;;  %v4602_v49 = vpack.c.bf16 %v3507_v35, %v3506_v44  ;;  %v6076_v12 = vrot.slane %v2814_v23, %v2830_v63 }
 0xadd   : > { %4565 = vmatpush3.bf16.msra.mxu1 %v4564_v19 }
 0xade   : > { %4567 = vmatprep.subr.bf16.mxu1 %v4566_v55  ;;  %4603 = vmatprep.subr.bf16.mxu0 %v4602_v49 }
 0xadf   : > { %4605 = vmatpush3.bf16.msra.mxu0 %v4604_v5 }
 0xae0   : > { %4607 = vmatprep.subr.bf16.mxu0 %v4606_v41 }
 0xae1   : > { %4569 = vmatpush3.bf16.msra.mxu1 %v4568_v39 }
 0xae2   : > { %4571 = vmatprep.subr.bf16.mxu1 %v4570_v45 }
 0xae3   : > { %4609 = vmatpush3.bf16.msra.mxu0 %v4608_v9 }
 0xae5   : > { %4573 = vmatpush3.bf16.msra.mxu1 %v4572_v62 }
 0xae6   : > { %4575 = vmatprep.subr.bf16.mxu1 %v4574_v13 }
 0xae9   : > { %4577 = vmatpush3.bf16.msra.mxu1 %v4576_v42 }
 0xb05   : > { %v2902_v27 = vpop.f32.mrb[26].mxu1  ;;  %v2991_v31 = vpop.f32.mrb[22].mxu0 }
 0xb06   : > { %v2904_v17 = vpop.f32.mrb[27].mxu1  ;;  %v2993_v10 = vpop.f32.mrb[23].mxu0  ;;  %v6093_v18 = vadd.f32 %v2902_v27, %v6080_v54  ;;  %v6096_v1 = vadd.f32 %v2991_v31, %v6084_v52 }
 0xb07   : > { %v6087_v16 = vadd.f32 %v2904_v17, %v6074_v46  ;;  %v6090_v28 = vadd.f32 %v2993_v10, %v6076_v12 }
 0xb08   : > { %v6105_v60 = vmul.f32 0.70710677, %v6093_v18  ;;  %v6108_v0 = vmul.f32 0.70710677, %v6096_v1 }
 0xb09   : > { %v6099_v19 = vmul.f32 0.70710677, %v6087_v16  ;;  %v6102_v61 = vmul.f32 0.70710677, %v6090_v28 }
 0xb0a   : > { %v3078_v25 = vand.u32 2147483647, %v6105_v60  ;;  %v3080_v55 = vand.u32 2147483647, %v6108_v0  ;;  %vm3046_vm9 = vcmp.ge.f32.partialorder %v6105_v60, 0.0  ;;  %vm3048_vm10 = vcmp.ge.f32.partialorder %v6108_v0, 0.0 }
 0xb0b   : > { %v3079_v20 = vand.u32 2147483647, %v6099_v19  ;;  %v3081_v22 = vand.u32 2147483647, %v6102_v61  ;;  %vm3047_vm7 = vcmp.ge.f32.partialorder %v6099_v19, 0.0  ;;  %vm3049_vm8 = vcmp.ge.f32.partialorder %v6102_v61, 0.0 }
 0xb0c   : > { %v3094_v21 = vmul.f32 0.3275911, %v3078_v25  ;;  %v3096_v32 = vmul.f32 0.3275911, %v3080_v55  ;;  %v3302_v57 = vsub.f32 0.0, %v3078_v25  ;;  %v3304_v42 = vsub.f32 0.0, %v3080_v55 }
 0xb0d   : > { %v3095_v26 = vmul.f32 0.3275911, %v3079_v20  ;;  %v3097_v14 = vmul.f32 0.3275911, %v3081_v22  ;;  %v3303_v13 = vsub.f32 0.0, %v3079_v20  ;;  %v3305_v2 = vsub.f32 0.0, %v3081_v22 }
 0xb0e   : > { %v3110_v38 = vadd.f32 1.0, %v3094_v21  ;;  %v3112_v39 = vadd.f32 1.0, %v3096_v32  ;;  %v3318_v23 = vmul.f32 %v3302_v57, %v3078_v25 }
 0xb0f   : > { %v3111_v34 = vadd.f32 1.0, %v3095_v26  ;;  %v3113_v36 = vadd.f32 1.0, %v3097_v14  ;;  %v3319_v9 = vmul.f32 %v3303_v13, %v3079_v20  ;;  %v3321_v17 = vmul.f32 %v3305_v2, %v3081_v22 }
 0xb10   : > { %v3320_v26 = vmul.f32 %v3304_v42, %v3080_v55 }
 0xb11   : > { %4896 = vrcp.f32 %v3111_v34  ;;  %v3336_v14 = vmul.f32 1.442695, %v3319_v9  ;;  %v3340_v34 = vmul.f32 1.442695, %v3321_v17 }
 0xb12   : > { %4898 = vrcp.f32 %v3113_v36 }
 0xb13   : > { %4900 = vrcp.f32 %v3110_v38  ;;  %v3334_v38 = vmul.f32 1.442695, %v3318_v23 }
 0xb14   : > { %4902 = vrcp.f32 %v3112_v39 }
 0xb15   : > { %4904 = vpow2.f32 %v3336_v14 }
 0xb16   : > { %4906 = vpow2.f32 %v3340_v34 }
 0xb17   : > { %4908 = vpow2.f32 %v3334_v38 }
 0xb1b   : > { %v4897_v40 = vpop.eup %4896 }
 0xb1c   : > { %v4899_v43 = vpop.eup %4898  ;;  %v3159_v45 = vmul.f32 1.0614054, %v4897_v40 }
 0xb1d   : > { %v4901_v44 = vpop.eup %4900  ;;  %v3161_v35 = vmul.f32 1.0614054, %v4899_v43 }
 0xb1e   : > { %v4903_v37 = vpop.eup %4902  ;;  %v3158_v29 = vmul.f32 1.0614054, %v4901_v44  ;;  %v3175_v49 = vadd.f32 -1.4531521, %v3159_v45  ;;  %v3338_v45 = vmul.f32 1.442695, %v3320_v26 }
 0xb1f   : > { %v3160_v47 = vmul.f32 1.0614054, %v4903_v37  ;;  %v3177_v56 = vadd.f32 -1.4531521, %v3161_v35  ;;  %v4905_v13 = vpop.eup %4904 }
 0xb20   : > { %v3174_v58 = vadd.f32 -1.4531521, %v3158_v29  ;;  %v3191_v50 = vmul.f32 %v4897_v40, %v3175_v49  ;;  %4910 = vpow2.f32 %v3338_v45 }
 0xb21   : > { %v3176_v62 = vadd.f32 -1.4531521, %v3160_v47  ;;  %v3193_v4 = vmul.f32 %v4899_v43, %v3177_v56 }
 0xb22   : > { %v3190_v3 = vmul.f32 %v4901_v44, %v3174_v58  ;;  %v3207_v24 = vadd.f32 1.4214138, %v3191_v50 }
 0xb23   : > { %v3192_v5 = vmul.f32 %v4903_v37, %v3176_v62  ;;  %v3209_v8 = vadd.f32 1.4214138, %v3193_v4 }
 0xb24   : > { %v3206_v41 = vadd.f32 1.4214138, %v3190_v3  ;;  %v3223_v27 = vmul.f32 %v4897_v40, %v3207_v24 }
 0xb25   : > { %v3208_v53 = vadd.f32 1.4214138, %v3192_v5  ;;  %v3225_v31 = vmul.f32 %v4899_v43, %v3209_v8  ;;  %v4907_v8 = vpop.eup %4906 }
 0xb26   : > { %v3222_v10 = vmul.f32 %v4901_v44, %v3206_v41  ;;  %v3239_v21 = vadd.f32 -0.28449672, %v3223_v27  ;;  %v4909_v42 = vpop.eup %4908 }
 0xb27   : > { %v3224_v63 = vmul.f32 %v4903_v37, %v3208_v53  ;;  %v3241_v32 = vadd.f32 -0.28449672, %v3225_v31 }
 0xb28   : > { %v3238_v36 = vadd.f32 -0.28449672, %v3222_v10  ;;  %v3255_v35 = vmul.f32 %v4897_v40, %v3239_v21 }
 0xb29   : > { %v3240_v39 = vadd.f32 -0.28449672, %v3224_v63  ;;  %v3257_v29 = vmul.f32 %v4899_v43, %v3241_v32 }
 0xb2a   : > { %v3254_v20 = vmul.f32 %v4901_v44, %v3238_v36  ;;  %v3271_v49 = vadd.f32 0.2548296, %v3255_v35  ;;  %v4911_v9 = vpop.eup %4910  ;;  %v3015_v35 = vmul.f32 0.5, %v6087_v16 }
 0xb2b   : > { %v3256_v47 = vmul.f32 %v4903_v37, %v3240_v39  ;;  %v3273_v55 = vadd.f32 0.2548296, %v3257_v29  ;;  %v3017_v29 = vmul.f32 0.5, %v6090_v28 }
 0xb2c   : > { %v3270_v58 = vadd.f32 0.2548296, %v3254_v20  ;;  %v3287_v3 = vmul.f32 %v4897_v40, %v3271_v49  ;;  %v3014_v49 = vmul.f32 0.5, %v6093_v18 }
 0xb2d   : > { %v3272_v62 = vadd.f32 0.2548296, %v3256_v47  ;;  %v3289_v5 = vmul.f32 %v4899_v43, %v3273_v55  ;;  %v5263_v43 = vmov -1.0   ;;  %v3016_v55 = vmul.f32 0.5, %v6096_v1 }
 0xb2e   : > { %v3286_v2 = vmul.f32 %v4901_v44, %v3270_v58  ;;  %v3367_v57 = vmul.f32 %v4905_v13, %v3287_v3  ;;  %v3063_v44 = vsel %vm3047_vm7, 1.0, %v5263_v43  ;;  %v3065_v63 = vsel %vm3049_vm8, 1.0, %v5263_v43 }
 0xb2f   : > { %v3288_v41 = vmul.f32 %v4903_v37, %v3272_v62  ;;  %v3369_v53 = vmul.f32 %v4907_v8, %v3289_v5  ;;  %v3062_v32 = vsel %vm3046_vm9, 1.0, %v5263_v43  ;;  %v3064_v60 = vsel %vm3048_vm10, 1.0, %v5263_v43 }
 0xb30   : > { %v3366_v27 = vmul.f32 %v4909_v42, %v3286_v2  ;;  %v3383_v17 = vsub.f32 1.0, %v3367_v57 }
 0xb31   : > { %v3368_v31 = vmul.f32 %v4911_v9, %v3288_v41  ;;  %v3385_v10 = vsub.f32 1.0, %v3369_v53 }
 0xb32   : > { %v3382_v37 = vsub.f32 1.0, %v3366_v27  ;;  %v3399_v14 = vmul.f32 %v3383_v17, %v3063_v44 }
 0xb33   : > { %v3384_v23 = vsub.f32 1.0, %v3368_v31  ;;  %v3401_v19 = vmul.f32 %v3385_v10, %v3065_v63 }
 0xb34   : > { %v3398_v34 = vmul.f32 %v3382_v37, %v3062_v32  ;;  %v3415_v39 = vadd.f32 1.0, %v3399_v14 }
 0xb35   : > { %v3400_v0 = vmul.f32 %v3384_v23, %v3064_v60  ;;  %v3417_v45 = vadd.f32 1.0, %v3401_v19 }
 0xb36   : > { %v3414_v20 = vadd.f32 1.0, %v3398_v34 }
 0xb37   : > { %v3416_v47 = vadd.f32 1.0, %v3400_v0 }
 0xb39   : > { %v3432_v16 = vmul.f32 %v3416_v47, %v3016_v55 }
 0xb51   : > { %v2711_v22 = vpop.xlane.xlu1 %2710 }
 0xb52   : > { %v2716_v25 = vmul.f32 0.0078125, %v2711_v22 }
 0xb54   : > { %v2720_v56 = vadd.f32 1e-06, %v2716_v25  ;;  %v3431_v25 = vmul.f32 %v3415_v39, %v3015_v35 }
 0xb55   : > { %v2713_v50 = vpop.xlane.xlu0 %2712 }
 0xb56   : > { %4912 = vrsqrt.f32 %v2720_v56  ;;  %v2717_v4 = vmul.f32 0.0078125, %v2713_v50 }
 0xb58   : > { %v2721_v24 = vadd.f32 1e-06, %v2717_v4 }
 0xb5a   : > { %4914 = vrsqrt.f32 %v2721_v24 }
 0xb60   : > { %v4913_v40 = vpop.eup %4912 }
 0xb61   : > { %v2728_v26 = vmul.f32 %v4913_v40, %v6055_v11 }
 0xb63   : > { %v2738_v61 = vmul.f32 %v6031_v48, %v2728_v26 }
 0xb64   : > { %v4915_v21 = vpop.eup %4914 }
 0xb65   : > { %v2748_v36 = vadd.f32 %v6038_v59, %v2738_v61  ;;  %v2729_v38 = vmul.f32 %v4915_v21, %v6060_v15  ;;  %v3433_v15 = vmul.f32 %v3417_v45, %v3017_v29 }
 0xb67   : > { %2913 = vmatmul.mubr.f32.gmra.mrb[30].mxu1 %v2748_v36  ;;  %3002 = vmatmul.mubr.f32.gmra.mrb[26].mxu0 %v2748_v36  ;;  %v2739_v11 = vmul.f32 %v6031_v48, %v2729_v38  ;;  %v3430_v48 = vmul.f32 %v3414_v20, %v3014_v49 }
 0xb68   : > { %2918 = vmatprep.mubr.f32.mxu1 %v5259_v7  ;;  %3007 = vmatprep.mubr.f32.mxu0 %v5259_v7 }
 0xb69   : > { %v2749_v22 = vadd.f32 %v6038_v59, %v2739_v11 }
 0xb6b   : > { %2919 = vmatmul.mubr.f32.gmra.mrb[32].mxu1 %v2749_v22  ;;  %3008 = vmatmul.mubr.f32.gmra.mrb[28].mxu0 %v2749_v22 }
 0xb6c   : > { %3581 = vmatprep.mubr.f32.mxu1 %v3431_v25  ;;  %3666 = vmatprep.mubr.f32.mxu0 %v3433_v15 }
 0xb6f   : > { %3582 = vmatmul.mubr.f32.vlgmr.msra.gmra.mrb[34].mxu1 %v3430_v48  ;;  %3667 = vmatmul.mubr.f32.vlgmr.msra.gmra.mrb[30].mxu0 %v3432_v16 }
 0xbae   : > { %v2908_v28 = vpop.f32.mrb[28].mxu1  ;;  %v2997_v7 = vpop.f32.mrb[24].mxu0 }
 0xbaf   : > { %v6135_v56 = vadd.f32 %v2908_v28, %v6080_v54  ;;  %v6138_v59 = vadd.f32 %v2997_v7, %v6084_v52  ;;  %v2910_v58 = vpop.f32.mrb[29].mxu1  ;;  %v2999_v18 = vpop.f32.mrb[25].mxu0 }
 0xbb0   : > { %v6141_v1 = vadd.f32 %v2910_v58, %v6074_v46  ;;  %v6144_v62 = vadd.f32 %v2999_v18, %v6076_v12 }
 0xbb1   : > { %v6147_v50 = vmul.f32 0.70710677, %v6135_v56  ;;  %v6150_v4 = vmul.f32 0.70710677, %v6138_v59 }
 0xbb2   : > { %v6153_v3 = vmul.f32 0.70710677, %v6141_v1  ;;  %v6159_v8 = vmul.f32 0.70710677, %v6144_v62 }
 0xbb3   : > { %v3082_v5 = vand.u32 2147483647, %v6147_v50  ;;  %v3084_v13 = vand.u32 2147483647, %v6150_v4  ;;  %vm3050_vm11 = vcmp.ge.f32.partialorder %v6147_v50, 0.0  ;;  %vm3052_vm12 = vcmp.ge.f32.partialorder %v6150_v4, 0.0 }
 0xbb4   : > { %v3083_v24 = vand.u32 2147483647, %v6153_v3  ;;  %v3085_v9 = vand.u32 2147483647, %v6159_v8  ;;  %vm3051_vm13 = vcmp.ge.f32.partialorder %v6153_v3, 0.0  ;;  %vm3053_vm14 = vcmp.ge.f32.partialorder %v6159_v8, 0.0 }
 0xbb5   : > { %v3098_v2 = vmul.f32 0.3275911, %v3082_v5  ;;  %v3100_v41 = vmul.f32 0.3275911, %v3084_v13  ;;  %v3306_v10 = vsub.f32 0.0, %v3082_v5  ;;  %v3308_v40 = vsub.f32 0.0, %v3084_v13 }
 0xbb6   : > { %v3099_v57 = vmul.f32 0.3275911, %v3083_v24  ;;  %v3101_v31 = vmul.f32 0.3275911, %v3085_v9  ;;  %v3307_v23 = vsub.f32 0.0, %v3083_v24  ;;  %v3309_v19 = vsub.f32 0.0, %v3085_v9 }
 0xbb7   : > { %v3114_v53 = vadd.f32 1.0, %v3098_v2  ;;  %v3116_v42 = vadd.f32 1.0, %v3100_v41  ;;  %v3322_v37 = vmul.f32 %v3306_v10, %v3082_v5  ;;  %v3324_v26 = vmul.f32 %v3308_v40, %v3084_v13 }
 0xbb8   : > { %v3115_v27 = vadd.f32 1.0, %v3099_v57  ;;  %v3117_v17 = vadd.f32 1.0, %v3101_v31  ;;  %v3323_v34 = vmul.f32 %v3307_v23, %v3083_v24  ;;  %v3325_v11 = vmul.f32 %v3309_v19, %v3085_v9 }
 0xbb9   : > { %4916 = vrcp.f32 %v3114_v53  ;;  %v3342_v60 = vmul.f32 1.442695, %v3322_v37  ;;  %v3346_v36 = vmul.f32 1.442695, %v3324_v26  ;;  %v3019_v3 = vmul.f32 0.5, %v6141_v1 }
 0xbba   : > { %4918 = vrcp.f32 %v3116_v42  ;;  %v3344_v22 = vmul.f32 1.442695, %v3323_v34  ;;  %v3348_v48 = vmul.f32 1.442695, %v3325_v11  ;;  %v3067_v11 = vsel %vm3051_vm13, 1.0, %v5263_v43 }
 0xbbb   : > { %4920 = vrcp.f32 %v3115_v27 }
 0xbbc   : > { %4922 = vrcp.f32 %v3117_v17 }
 0xbbd   : > { %4924 = vpow2.f32 %v3342_v60 }
 0xbbe   : > { %4926 = vpow2.f32 %v3346_v36 }
 0xbbf   : > { %4928 = vpow2.f32 %v3344_v22 }
 0xbc0   : > { %4930 = vpow2.f32 %v3348_v48  ;;  %v3020_v48 = vmul.f32 0.5, %v6138_v59 }
 0xbc3   : > { %v4917_v44 = vpop.eup %4916 }
 0xbc4   : > { %v4919_v63 = vpop.eup %4918  ;;  %v3162_v14 = vmul.f32 1.0614054, %v4917_v44 }
 0xbc5   : > { %v3164_v61 = vmul.f32 1.0614054, %v4919_v63  ;;  %v4921_v32 = vpop.eup %4920 }
 0xbc6   : > { %v3178_v21 = vadd.f32 -1.4531521, %v3162_v14  ;;  %v3163_v38 = vmul.f32 1.0614054, %v4921_v32  ;;  %v4923_v45 = vpop.eup %4922 }
 0xbc7   : > { %v3180_v0 = vadd.f32 -1.4531521, %v3164_v61  ;;  %v3165_v20 = vmul.f32 1.0614054, %v4923_v45  ;;  %v4925_v17 = vpop.eup %4924 }
 0xbc8   : > { %v3194_v39 = vmul.f32 %v4917_v44, %v3178_v21  ;;  %v3179_v29 = vadd.f32 -1.4531521, %v3163_v38  ;;  %v4927_v40 = vpop.eup %4926 }
 0xbc9   : > { %v3196_v35 = vmul.f32 %v4919_v63, %v3180_v0  ;;  %v3181_v49 = vadd.f32 -1.4531521, %v3165_v20  ;;  %v4929_v60 = vpop.eup %4928  ;;  %v3066_v0 = vsel %vm3050_vm11, 1.0, %v5263_v43  ;;  %v3069_v20 = vsel %vm3053_vm14, 1.0, %v5263_v43 }
 0xbca   : > { %v3210_v47 = vadd.f32 1.4214138, %v3194_v39  ;;  %v3195_v15 = vmul.f32 %v4921_v32, %v3179_v29  ;;  %v4931_v36 = vpop.eup %4930  ;;  %v3068_v39 = vsel %vm3052_vm12, 1.0, %v5263_v43 }
 0xbcb   : > { %v3212_v25 = vadd.f32 1.4214138, %v3196_v35  ;;  %v3197_v7 = vmul.f32 %v4923_v45, %v3181_v49  ;;  %v3021_v49 = vmul.f32 0.5, %v6144_v62 }
 0xbcc   : > { %v3226_v55 = vmul.f32 %v4917_v44, %v3210_v47  ;;  %v3211_v28 = vadd.f32 1.4214138, %v3195_v15 }
 0xbcd   : > { %v3228_v16 = vmul.f32 %v4919_v63, %v3212_v25  ;;  %v3213_v13 = vadd.f32 1.4214138, %v3197_v7  ;;  %v3018_v25 = vmul.f32 0.5, %v6135_v56 }
 0xbce   : > { %v3242_v58 = vadd.f32 -0.28449672, %v3226_v55  ;;  %v3227_v5 = vmul.f32 %v4921_v32, %v3211_v28 }
 0xbcf   : > { %v3244_v18 = vadd.f32 -0.28449672, %v3228_v16  ;;  %v3229_v57 = vmul.f32 %v4923_v45, %v3213_v13 }
 0xbd0   : > { %v3258_v24 = vmul.f32 %v4917_v44, %v3242_v58  ;;  %v3243_v41 = vadd.f32 -0.28449672, %v3227_v5 }
 0xbd1   : > { %v3260_v2 = vmul.f32 %v4919_v63, %v3244_v18  ;;  %v3245_v27 = vadd.f32 -0.28449672, %v3229_v57 }
 0xbd2   : > { %v3274_v53 = vadd.f32 0.2548296, %v3258_v24  ;;  %v3259_v9 = vmul.f32 %v4921_v32, %v3243_v41 }
 0xbd3   : > { %v3276_v42 = vadd.f32 0.2548296, %v3260_v2  ;;  %v3261_v23 = vmul.f32 %v4923_v45, %v3245_v27 }
 0xbd4   : > { %v3290_v31 = vmul.f32 %v4917_v44, %v3274_v53  ;;  %v3275_v37 = vadd.f32 0.2548296, %v3259_v9 }
 0xbd5   : > { %v3292_v10 = vmul.f32 %v4919_v63, %v3276_v42  ;;  %v3277_v61 = vadd.f32 0.2548296, %v3261_v23 }
 0xbd6   : > { %v3370_v26 = vmul.f32 %v4925_v17, %v3290_v31  ;;  %v3291_v19 = vmul.f32 %v4921_v32, %v3275_v37 }
 0xbd7   : > { %v3372_v14 = vmul.f32 %v4927_v40, %v3292_v10  ;;  %v3293_v63 = vmul.f32 %v4923_v45, %v3277_v61 }
 0xbd8   : > { %v3386_v21 = vsub.f32 1.0, %v3370_v26  ;;  %v3371_v44 = vmul.f32 %v4929_v60, %v3291_v19 }
 0xbd9   : > { %v3388_v34 = vsub.f32 1.0, %v3372_v14  ;;  %v3373_v32 = vmul.f32 %v4931_v36, %v3293_v63 }
 0xbda   : > { %v3402_v38 = vmul.f32 %v3386_v21, %v3066_v0  ;;  %v3387_v50 = vsub.f32 1.0, %v3371_v44 }
 0xbdb   : > { %v3404_v35 = vmul.f32 %v3388_v34, %v3068_v39  ;;  %v3389_v4 = vsub.f32 1.0, %v3373_v32 }
 0xbdc   : > { %v3403_v29 = vmul.f32 %v3387_v50, %v3067_v11  ;;  %v3418_v47 = vadd.f32 1.0, %v3402_v38 }
 0xbdd   : > { %v3405_v45 = vmul.f32 %v3389_v4, %v3069_v20  ;;  %v3420_v15 = vadd.f32 1.0, %v3404_v35 }
 0xbde   : > { %v3419_v22 = vadd.f32 1.0, %v3403_v29  ;;  %v3434_v16 = vmul.f32 %v3418_v47, %v3018_v25 }
 0xbdf   : > { %v3421_v55 = vadd.f32 1.0, %v3405_v45  ;;  %v3436_v7 = vmul.f32 %v3420_v15, %v3020_v48 }
 0xbe0   : > { %v3435_v8 = vmul.f32 %v3419_v22, %v3019_v3 }
 0xbe1   : > { %v3437_v28 = vmul.f32 %v3421_v55, %v3021_v49 }
 0xbe2   : > { %3586 = vmatprep.mubr.f32.mxu1 %v3435_v8 }
 0xbe3   : > { %3587 = vmatmul.mubr.f32.gmra.mrb[36].mxu1 %v3434_v16  ;;  %3671 = vmatprep.mubr.f32.mxu0 %v3437_v28 }
 0xbe4   : > { %3672 = vmatmul.mubr.f32.gmra.mrb[32].mxu0 %v3436_v7 }
 0xc3a   : > { %v2914_v58 = vpop.f32.mrb[30].mxu1  ;;  %v3003_v1 = vpop.f32.mrb[26].mxu0 }
 0xc3b   : > { %v2915_v18 = vadd.f32 %v2914_v58, %v6080_v54  ;;  %v3004_v56 = vadd.f32 %v3003_v1, %v6084_v52  ;;  %v2916_v5 = vpop.f32.mrb[31].mxu1  ;;  %v3005_v13 = vpop.f32.mrb[27].mxu0 }
 0xc3c   : > { %v2917_v62 = vadd.f32 %v2916_v5, %v6074_v46  ;;  %v3006_v24 = vadd.f32 %v3005_v13, %v6076_v12 }
 0xc3d   : > { %v3038_v59 = vmul.f32 0.70710677, %v2915_v18  ;;  %v3040_v2 = vmul.f32 0.70710677, %v3004_v56  ;;  %v6184_v44 = vmul.f32 0.5, %v2915_v18  ;;  %v6192_v11 = vmul.f32 0.5, %v3004_v56 }
 0xc3e   : > { %v3039_v41 = vmul.f32 0.70710677, %v2917_v62  ;;  %v6178_v9 = vmul.f32 0.70710677, %v3006_v24  ;;  %v2920_v27 = vpop.f32.mrb[32].mxu1  ;;  %v3009_v40 = vpop.f32.mrb[28].mxu0 }
 0xc3f   : > { %v3086_v57 = vand.u32 2147483647, %v3038_v59  ;;  %v3088_v53 = vand.u32 2147483647, %v3040_v2  ;;  %v2922_v23 = vpop.f32.mrb[33].mxu1  ;;  %v3011_v26 = vpop.f32.mrb[29].mxu0  ;;  %v6182_v60 = vadd.f32 %v2920_v27, %v6080_v54  ;;  %v6190_v32 = vadd.f32 %v3009_v40, %v6084_v52 }
 0xc40   : > { %v3087_v42 = vand.u32 2147483647, %v3039_v41  ;;  %v3089_v14 = vand.u32 2147483647, %v6178_v9  ;;  %v6194_v35 = vmul.f32 0.5, %v2917_v62  ;;  %v6197_v29 = vadd.f32 %v2922_v23, %v6074_v46 }
 0xc41   : > { %v3102_v31 = vmul.f32 0.3275911, %v3086_v57  ;;  %v3104_v17 = vmul.f32 0.3275911, %v3088_v53  ;;  %v3310_v38 = vsub.f32 0.0, %v3086_v57  ;;  %v3312_v39 = vsub.f32 0.0, %v3088_v53 }
 0xc42   : > { %v3103_v10 = vmul.f32 0.3275911, %v3087_v42  ;;  %v4062_v19 = vpop.f32.mrb[34].mxu1  ;;  %v4106_v61 = vpop.f32.mrb[30].mxu0  ;;  %v3105_v36 = vmul.f32 0.3275911, %v3089_v14  ;;  %v6217_v48 = vadd.f32 %v3011_v26, %v6076_v12 }
 0xc43   : > { %v3118_v37 = vadd.f32 1.0, %v3102_v31  ;;  %v4063_v34 = vpop.f32.mrb[35].mxu1  ;;  %v4107_v0 = vpop.f32.mrb[31].mxu0  ;;  %v3120_v63 = vadd.f32 1.0, %v3104_v17  ;;  %v6187_v50 = vmul.f32 0.70710677, %v6182_v60  ;;  %v3326_v3 = vmul.f32 %v3310_v38, %v3086_v57 }
 0xc44   : > { %v3119_v21 = vadd.f32 1.0, %v3103_v10  ;;  %v3121_v54 = vadd.f32 1.0, %v3105_v36  ;;  %vm3054_vm15 = vcmp.ge.f32.partialorder %v3038_v59, 0.0  ;;  %v6199_v4 = vmul.f32 0.5, %v3006_v24  ;;  %v6229_v12 = vld [vmem:[%s6436_s7] ss:$0 sm:$0xff] }
 0xc45   : > { %4932 = vrcp.f32 %v3118_v37  ;;  %v3090_v20 = vand.u32 2147483647, %v6187_v50  ;;  %vm3056_vm0 = vcmp.ge.f32.partialorder %v3040_v2, 0.0  ;;  %v3311_v47 = vsub.f32 0.0, %v3087_v42 }
 0xc46   : > { %4934 = vrcp.f32 %v3119_v21  ;;  %v6203_v52 = vmul.f32 0.70710677, %v6190_v32  ;;  %v3328_v22 = vmul.f32 %v3312_v39, %v3088_v53  ;;  %vm3055_vm1 = vcmp.ge.f32.partialorder %v3039_v41, 0.0 }
 0xc47   : > { %4936 = vrcp.f32 %v3120_v63  ;;  %v3106_v45 = vmul.f32 0.3275911, %v3090_v20  ;;  %v3313_v25 = vsub.f32 0.0, %v3089_v14  ;;  %v6207_v15 = vmul.f32 0.70710677, %v6197_v29 }
 0xc48   : > { %4938 = vrcp.f32 %v3121_v54  ;;  %v3092_v46 = vand.u32 2147483647, %v6203_v52  ;;  %v6211_v49 = vsel %vm3054_vm15, 1.0, %v5263_v43  ;;  %v6214_v8 = vsel %vm3056_vm0, 1.0, %v5263_v43 }
 0xc49   : > { %v3122_v55 = vadd.f32 1.0, %v3106_v45  ;;  %v3327_v16 = vmul.f32 %v3311_v47, %v3087_v42  ;;  %vm3057_vm2 = vcmp.ge.f32.partialorder %v6178_v9, 0.0  ;;  %v3091_v7 = vand.u32 2147483647, %v6207_v15 }
 0xc4a   : > { %v3108_v28 = vmul.f32 0.3275911, %v3092_v46  ;;  %v3350_v58 = vmul.f32 1.442695, %v3326_v3  ;;  %v3354_v1 = vmul.f32 1.442695, %v3328_v22  ;;  %v3329_v5 = vmul.f32 %v3313_v25, %v3089_v14 }
 0xc4b   : > { %v6222_v18 = vsel %vm3055_vm1, 1.0, %v5263_v43  ;;  %4940 = vrcp.f32 %v3122_v55  ;;  %v3314_v13 = vsub.f32 0.0, %v3090_v20  ;;  %v3107_v24 = vmul.f32 0.3275911, %v3091_v7 }
 0xc4c   : > { %v3124_v62 = vadd.f32 1.0, %v3108_v28  ;;  %v6232_v59 = vsel %vm3057_vm2, 1.0, %v5263_v43  ;;  %v6235_v2 = vmul.f32 0.70710677, %v6217_v48  ;;  %v4064_v41 = vadd.f32 %v4063_v34, %v4062_v19 }
 0xc4d   : > { %v4108_v57 = vadd.f32 %v4107_v0, %v4106_v61  ;;  %v3352_v53 = vmul.f32 1.442695, %v3327_v16  ;;  %v3316_v42 = vsub.f32 0.0, %v3092_v46  ;;  %v3123_v9 = vadd.f32 1.0, %v3107_v24 }
 0xc4e   : > { %4942 = vrcp.f32 %v3124_v62  ;;  %v3093_v31 = vand.u32 2147483647, %v6235_v2  ;;  %v3584_v17 = vadd.f32 %v4064_v41, %v6229_v12  ;;  %v3356_v37 = vmul.f32 1.442695, %v3329_v5 }
 0xc4f   : > { %v6224_v56 = vpop.eup %4932  ;;  %4944 = vpow2.f32 %v3350_v58  ;;  %v3330_v23 = vmul.f32 %v3314_v13, %v3090_v20  ;;  %v3315_v19 = vsub.f32 0.0, %v3091_v7  ;;  %v3332_v34 = vmul.f32 %v3316_v42, %v3092_v46 }
 0xc50   : > { %v6237_v27 = vpop.eup %4934  ;;  %v3166_v10 = vmul.f32 1.0614054, %v6224_v56  ;;  %4946 = vpow2.f32 %v3354_v1  ;;  %v3109_v61 = vmul.f32 0.3275911, %v3093_v31  ;;  %v3669_v21 = vadd.f32 %v4108_v57, %v3584_v17 }
 0xc51   : > { %v6242_v40 = vpop.eup %4936  ;;  %v3167_v26 = vmul.f32 1.0614054, %v6237_v27  ;;  %4948 = vrcp.f32 %v3123_v9  ;;  %v3317_v39 = vsub.f32 0.0, %v3093_v31  ;;  %v3358_v25 = vmul.f32 1.442695, %v3330_v23 }
 0xc52   : > { %v6245_v14 = vpop.eup %4938  ;;  %v3182_v36 = vadd.f32 -1.4531521, %v3166_v10  ;;  %v3125_v38 = vadd.f32 1.0, %v3109_v61  ;;  %v3687_v54 = vadd.f32 %v3669_v21, %v6006_v30  ;;  %v3168_v20 = vmul.f32 1.0614054, %v6242_v40 }
 0xc53   : > { %v3183_v0 = vadd.f32 -1.4531521, %v3167_v26  ;;  %v3169_v63 = vmul.f32 1.0614054, %v6245_v14  ;;  %4950 = vpow2.f32 %v3352_v53  ;;  %v3331_v46 = vmul.f32 %v3315_v19, %v3091_v7 }
 0xc54   : > { %v3198_v22 = vmul.f32 %v6224_v56, %v3182_v36  ;;  %4952 = vrcp.f32 %v3125_v38  ;;  %3691 = vst [vmem:[%s6256_s11] sm:$0xff] %v3687_v54  ;;  %v3184_v55 = vadd.f32 -1.4531521, %v3168_v20  ;;  %v3362_v1 = vmul.f32 1.442695, %v3332_v34 }
 0xc55   : > { %v3199_v47 = vmul.f32 %v6237_v27, %v3183_v0  ;;  %v3185_v3 = vadd.f32 -1.4531521, %v3169_v63  ;;  %v6252_v45 = vpop.eup %4940  ;;  %4954 = vpow2.f32 %v3356_v37  ;;  %v3333_v5 = vmul.f32 %v3317_v39, %v3093_v31 }
 0xc56   : > { %v3214_v28 = vadd.f32 1.4214138, %v3198_v22  ;;  %v3170_v58 = vmul.f32 1.0614054, %v6252_v45  ;;  %v3200_v13 = vmul.f32 %v6242_v40, %v3184_v55  ;;  %4956 = vpow2.f32 %v3358_v25 }
 0xc57   : > { %v3215_v30 = vadd.f32 1.4214138, %v3199_v47  ;;  %v3201_v16 = vmul.f32 %v6245_v14, %v3185_v3  ;;  %v3360_v42 = vmul.f32 1.442695, %v3331_v46  ;;  %4958 = vpow2.f32 %v3362_v1 }
 0xc58   : > { %v6262_v62 = vpop.eup %4942  ;;  %v3230_v41 = vmul.f32 %v6224_v56, %v3214_v28  ;;  %v3186_v57 = vadd.f32 -1.4531521, %v3170_v58  ;;  %v3216_v9 = vadd.f32 1.4214138, %v3200_v13  ;;  %v3364_v61 = vmul.f32 1.442695, %v3333_v5 }
 0xc59   : > { %v3231_v7 = vmul.f32 %v6237_v27, %v3215_v30  ;;  %v3217_v24 = vadd.f32 1.4214138, %v3201_v16  ;;  %v4945_v53 = vpop.eup %4944  ;;  %v3172_v17 = vmul.f32 1.0614054, %v6262_v62  ;;  %4960 = vpow2.f32 %v3360_v42 }
 0xc5a   : > { %v4947_v10 = vpop.eup %4946  ;;  %v3246_v23 = vadd.f32 -0.28449672, %v3230_v41  ;;  %v3202_v26 = vmul.f32 %v6252_v45, %v3186_v57  ;;  %v3232_v21 = vmul.f32 %v6242_v40, %v3216_v9  ;;  %4962 = vpow2.f32 %v3364_v61 }
 0xc5b   : > { %v3247_v37 = vadd.f32 -0.28449672, %v3231_v7  ;;  %v3233_v31 = vmul.f32 %v6245_v14, %v3217_v24  ;;  %v6269_v19 = vpop.eup %4948  ;;  %v3188_v34 = vadd.f32 -1.4531521, %v3172_v17  ;;  %vm3058_vm3 = vcmp.ge.f32.partialorder %v6187_v50, 0.0 }
 0xc5c   : > { %v3262_v36 = vmul.f32 %v6224_v56, %v3246_v23  ;;  %v3171_v38 = vmul.f32 1.0614054, %v6269_v19  ;;  %v3248_v39 = vadd.f32 -0.28449672, %v3232_v21  ;;  %v3218_v54 = vadd.f32 1.4214138, %v3202_v26 }
 0xc5d   : > { %v3263_v0 = vmul.f32 %v6237_v27, %v3247_v37  ;;  %v3249_v63 = vadd.f32 -0.28449672, %v3233_v31  ;;  %v3204_v20 = vmul.f32 %v6262_v62, %v3188_v34  ;;  %v4951_v47 = vpop.eup %4950  ;;  %vm3059_vm4 = vcmp.ge.f32.partialorder %v6207_v15, 0.0 }
 0xc5e   : > { %v3278_v25 = vadd.f32 0.2548296, %v3262_v36  ;;  %v3187_v46 = vadd.f32 -1.4531521, %v3171_v38  ;;  %v6277_v55 = vpop.eup %4952  ;;  %v3264_v30 = vmul.f32 %v6242_v40, %v3248_v39  ;;  %v3234_v16 = vmul.f32 %v6252_v45, %v3218_v54 }
 0xc5f   : > { %v3279_v3 = vadd.f32 0.2548296, %v3263_v0  ;;  %v3265_v22 = vmul.f32 %v6245_v14, %v3249_v63  ;;  %v3220_v28 = vadd.f32 1.4214138, %v3204_v20  ;;  %v4955_v7 = vpop.eup %4954  ;;  %v3173_v41 = vmul.f32 1.0614054, %v6277_v55 }
 0xc60   : > { %v3294_v5 = vmul.f32 %v6224_v56, %v3278_v25  ;;  %v3203_v13 = vmul.f32 %v6269_v19, %v3187_v46  ;;  %v3280_v24 = vadd.f32 0.2548296, %v3264_v30  ;;  %v3250_v57 = vadd.f32 -0.28449672, %v3234_v16  ;;  %v4957_v23 = vpop.eup %4956 }
 0xc61   : > { %v3295_v58 = vmul.f32 %v6237_v27, %v3279_v3  ;;  %v3281_v1 = vadd.f32 0.2548296, %v3265_v22  ;;  %v3236_v42 = vmul.f32 %v6262_v62, %v3220_v28  ;;  %v3189_v26 = vadd.f32 -1.4531521, %v3173_v41  ;;  %v4959_v36 = vpop.eup %4958 }
 0xc62   : > { %v3374_v37 = vmul.f32 %v4945_v53, %v3294_v5  ;;  %v3219_v31 = vadd.f32 1.4214138, %v3203_v13  ;;  %v3296_v27 = vmul.f32 %v6242_v40, %v3280_v24  ;;  %v3266_v56 = vmul.f32 %v6252_v45, %v3250_v57 }
 0xc63   : > { %v3375_v9 = vmul.f32 %v4951_v47, %v3295_v58  ;;  %v3297_v17 = vmul.f32 %v6245_v14, %v3281_v1  ;;  %v3252_v61 = vadd.f32 -0.28449672, %v3236_v42  ;;  %v3205_v39 = vmul.f32 %v6277_v55, %v3189_v26  ;;  %v4961_v3 = vpop.eup %4960 }
 0xc64   : > { %v3390_v0 = vsub.f32 1.0, %v3374_v37  ;;  %v3235_v63 = vmul.f32 %v6269_v19, %v3219_v31  ;;  %v3376_v38 = vmul.f32 %v4947_v10, %v3296_v27  ;;  %v3282_v54 = vadd.f32 0.2548296, %v3266_v56  ;;  %v4963_v1 = vpop.eup %4962 }
 0xc65   : > { %v3391_v21 = vsub.f32 1.0, %v3375_v9  ;;  %v3377_v34 = vmul.f32 %v4955_v7, %v3297_v17  ;;  %v3268_v14 = vmul.f32 %v6262_v62, %v3252_v61  ;;  %v3221_v25 = vadd.f32 1.4214138, %v3205_v39 }
 0xc66   : > { %v3406_v40 = vmul.f32 %v3390_v0, %v6211_v49  ;;  %v3251_v47 = vadd.f32 -0.28449672, %v3235_v63  ;;  %v3392_v22 = vsub.f32 1.0, %v3376_v38  ;;  %v3298_v46 = vmul.f32 %v6252_v45, %v3282_v54 }
 0xc67   : > { %v3407_v53 = vmul.f32 %v3391_v21, %v6222_v18  ;;  %v3393_v20 = vsub.f32 1.0, %v3377_v34  ;;  %v3284_v30 = vadd.f32 0.2548296, %v3268_v14  ;;  %v3237_v18 = vmul.f32 %v6277_v55, %v3221_v25 }
 0xc68   : > { %v3422_v28 = vadd.f32 1.0, %v3406_v40  ;;  %v3267_v58 = vmul.f32 %v6269_v19, %v3251_v47  ;;  %v3408_v5 = vmul.f32 %v3392_v22, %v6214_v8  ;;  %v3378_v13 = vmul.f32 %v4957_v23, %v3298_v46 }
 0xc69   : > { %v3423_v16 = vadd.f32 1.0, %v3407_v53  ;;  %v3409_v10 = vmul.f32 %v3393_v20, %v6232_v59  ;;  %v3300_v49 = vmul.f32 %v6262_v62, %v3284_v30  ;;  %v3253_v57 = vadd.f32 -0.28449672, %v3237_v18 }
 0xc6a   : > { %v3283_v24 = vadd.f32 0.2548296, %v3267_v58  ;;  %v3438_v41 = vmul.f32 %v3422_v28, %v6184_v44  ;;  %v3424_v59 = vadd.f32 1.0, %v3408_v5  ;;  %v3394_v42 = vsub.f32 1.0, %v3378_v13 }
 0xc6b   : > { %v3439_v7 = vmul.f32 %v3423_v16, %v6194_v35  ;;  %v3425_v45 = vadd.f32 1.0, %v3409_v10  ;;  %v3380_v17 = vmul.f32 %v4959_v36, %v3300_v49  ;;  %v3269_v50 = vmul.f32 %v6277_v55, %v3253_v57 }
 0xc6c   : > { %v3299_v8 = vmul.f32 %v6269_v19, %v3283_v24  ;;  %v3440_v62 = vmul.f32 %v3424_v59, %v6192_v11  ;;  %v3074_v35 = vsel %vm3058_vm3, 1.0, %v5263_v43  ;;  %vm3060_vm5 = vcmp.ge.f32.partialorder %v6203_v52, 0.0 }
 0xc6d   : > { %3591 = vmatprep.mubr.f32.mxu1 %v3439_v7  ;;  %v3441_v9 = vmul.f32 %v3425_v45, %v6199_v4  ;;  %v3285_v37 = vadd.f32 0.2548296, %v3269_v50  ;;  %v3410_v31 = vmul.f32 %v3394_v42, %v3074_v35  ;;  %v3396_v23 = vsub.f32 1.0, %v3380_v17 }
 0xc6e   : > { %3592 = vmatmul.mubr.f32.gmra.mrb[38].mxu1 %v3438_v41  ;;  %v3379_v44 = vmul.f32 %v4961_v3, %v3299_v8  ;;  %v3075_v19 = vsel %vm3059_vm4, 1.0, %v5263_v43  ;;  %v3076_v26 = vsel %vm3060_vm5, 1.0, %v5263_v43  ;;  %vm3061_vm6 = vcmp.ge.f32.partialorder %v6235_v2, 0.0 }
 0xc6f   : > { %3676 = vmatprep.mubr.f32.mxu0 %v3441_v9  ;;  %v3301_v27 = vmul.f32 %v6277_v55, %v3285_v37  ;;  %v3426_v15 = vadd.f32 1.0, %v3410_v31  ;;  %v3027_v61 = vmul.f32 0.5, %v6197_v29  ;;  %v3412_v34 = vmul.f32 %v3396_v23, %v3076_v26 }
 0xc70   : > { %3677 = vmatmul.mubr.f32.gmra.mrb[34].mxu0 %v3440_v62  ;;  %v3395_v4 = vsub.f32 1.0, %v3379_v44  ;;  %v3026_v0 = vmul.f32 0.5, %v6182_v60  ;;  %v3077_v63 = vsel %vm3061_vm6, 1.0, %v5263_v43  ;;  %v3029_v54 = vmul.f32 0.5, %v6217_v48 }
 0xc71   : > { %v3381_v56 = vmul.f32 %v4963_v1, %v3301_v27  ;;  %v3428_v55 = vadd.f32 1.0, %v3412_v34  ;;  %v3028_v2 = vmul.f32 0.5, %v6190_v32 }
 0xc72   : > { %v3411_v11 = vmul.f32 %v3395_v4, %v3075_v19  ;;  %v3442_v39 = vmul.f32 %v3426_v15, %v3026_v0 }
 0xc73   : > { %v3397_v52 = vsub.f32 1.0, %v3381_v56  ;;  %v3444_v53 = vmul.f32 %v3428_v55, %v3028_v2 }
 0xc74   : > { %v3427_v21 = vadd.f32 1.0, %v3411_v11 }
 0xc75   : > { %v3413_v38 = vmul.f32 %v3397_v52, %v3077_v63 }
 0xc76   : > { %v3443_v36 = vmul.f32 %v3427_v21, %v3027_v61 }
 0xc77   : > { %v3429_v14 = vadd.f32 1.0, %v3413_v38 }
 0xc78   : > { %3596 = vmatprep.mubr.f32.mxu1 %v3443_v36 }
 0xc79   : > { %3597 = vmatmul.mubr.f32.gmra.mrb[40].mxu1 %v3442_v39  ;;  %v3445_v29 = vmul.f32 %v3429_v14, %v3029_v54 }
 0xc7b   : > { %3681 = vmatprep.mubr.f32.mxu0 %v3445_v29 }
 0xc7c   : > { %3682 = vmatmul.mubr.f32.gmra.mrb[36].mxu0 %v3444_v53 }
 0xcb6   : > { %v4065_v60 = vpop.f32.mrb[36].mxu1 }
 0xcb7   : > { %v4066_v20 = vpop.f32.mrb[37].mxu1  ;;  %v4109_v40 = vpop.f32.mrb[32].mxu0 }
 0xcb8   : > { %v4067_v43 = vadd.f32 %v4066_v20, %v4065_v60  ;;  %v4110_v47 = vpop.f32.mrb[33].mxu0 }
 0xcb9   : > { %v4111_v22 = vadd.f32 %v4110_v47, %v4109_v40 }
 0xcba   : > { %v3589_v3 = vadd.f32 %v4067_v43, %v6229_v12 }
 0xcbc   : > { %v3674_v25 = vadd.f32 %v4111_v22, %v3589_v3 }
 0xcbe   : > { %v3688_v48 = vadd.f32 %v3674_v25, %v6011_v33 }
 0xcc0   : > { %3692 = vst [vmem:[%s6256_s11 + $0x8] sm:$0xff] %v3688_v48 }
 0xd41   : > { %v4068_v46 = vpop.f32.mrb[38].mxu1 }
 0xd42   : > { %v4069_v32 = vpop.f32.mrb[39].mxu1 }
 0xd43   : > { %v4112_v30 = vpop.f32.mrb[34].mxu0  ;;  %v4070_v16 = vadd.f32 %v4069_v32, %v4068_v46 }
 0xd44   : > { %v4113_v10 = vpop.f32.mrb[35].mxu0 }
 0xd45   : > { %v3594_v28 = vadd.f32 %v4070_v16, %v6229_v12  ;;  %v4114_v58 = vadd.f32 %v4113_v10, %v4112_v30 }
 0xd47   : > { %v3679_v1 = vadd.f32 %v4114_v58, %v3594_v28 }
 0xd49   : > { %v3689_v5 = vadd.f32 %v3679_v1, %v6042_v51 }
 0xd4b   : > { %3693 = vst [vmem:[%s6256_s11 + $0x10] sm:$0xff] %v3689_v5 }
 0xd4c   : > { %v4071_v18 = vpop.f32.mrb[40].mxu1 }
 0xd4d   : > { %v4072_v13 = vpop.f32.mrb[41].mxu1 }
 0xd4e   : > { %v4073_v33 = vadd.f32 %v4072_v13, %v4071_v18 }
 0xd4f   : > { %v4115_v49 = vpop.f32.mrb[36].mxu0 }
 0xd50   : > { %v3599_v7 = vadd.f32 %v4073_v33, %v6229_v12  ;;  %v4116_v45 = vpop.f32.mrb[37].mxu0 }
 0xd51   : > { %v4117_v24 = vadd.f32 %v4116_v45, %v4115_v49 }
 0xd53   : > { %v3684_v41 = vadd.f32 %v4117_v24, %v3599_v7 }
 0xd55   : > { %v3690_v51 = vadd.f32 %v3684_v41, %v6049_v6 }
 0xd57   : > { %3694 = vst [vmem:[%s6256_s11 + $0x18] sm:$0xff] %v3690_v51 }
 0xd58   : > { %5179 = shalt.err (!%p5176_p8)
}
 0xd59   : > { %s5180_s25 = scalar_lea.hbm %s6333_s18, 512  ;;  %s5184_s11 = scalar_lea.hbm %s6437_s27, 1024 }
 0xd5a   : > { %p5181_p7 = scmp.ne.s32.totalorder %s6333_s18, %s5180_s25  ;;  %p5185_p3 = scmp.lt.u32.totalorder %s6333_s18, %s6437_s27 }
 0xd5b   : > { %p5186_p0 = scmp.lt.u32.totalorder %s5184_s11, %s5180_s25  ;;  %p5188_p6 = scmp.lt.u32.totalorder %s5180_s25, %s6333_s18 }
 0xd5c   : > { %p5182_p9 = pnand %p5181_p7, %p6438_p5 }
 0xd5d   : > { %p5187_p2 = por %p5186_p0, %p5185_p3 }
 0xd5e   : > { %p5183_p4 = pneg %p5182_p9 }
 0xd5f   : > { %p5189_p10 = por %p5188_p6, %p5187_p2 }
 0xd61   : > { %p5190_p1 = pnand %p5189_p10, %p5183_p4 }
 0xd63   : > { %5193 = shalt.err (!%p5190_p1)
}
 0xd64   : > { %s5265_s20 = smov 128   ;;  %s5266_s8 = smov 8  }
 0xd65   : > { %4636 = dma.vmem_to_hbm [thread:$0]  (%p6438_p5), %s6328_s9, 512, %s6333_s18, %s3696_s13, %s5265_s20, %s5265_s20, %s5266_s8  }
 0xd66 PF: > { %s3725_s19 = sand.u32 1, %s5232_s29   ;;  %p6439_p11 = scmp.ne.s32.totalorder %s6421_s26, 0 }
 0xd67   : > { %p6440_p12 = scmp.ge.s32.totalorder %s5244_s16, 2  ;;  %s3726_s24 = scalar_lea.sflag [#allocation4], %s3725_s19 }
 0xd69   : > { %p4662_p13 = pnand %p6440_p12, %p6439_p11 }
 0xd6b   : > { %5227 = dma.done.wait (!%p4662_p13), %s3726_s24, 512  }
 0xd6c   : > { %5229 = vsyncadd (!%p4662_p13), %s3726_s24, 4294966784  ;;  %p30_p8 = scmp.ge.s32.totalorder %s5523_s21, 4   ;;  %s6441_s29 = smov %s5236_s30 }
 0xd6d   : > { %s6442_s30 = smov %s5240_s15  ;;  %s6443_s15 = smov %s5534_s22 }
 0xd6e   : > { %s6444_s16 = smov %s5523_s21  ;;  %32 = sbr.rel (!%p30_p8) target bundleno = 17 (0x11), region = 145 }
 0xd75   :  { %3731 = vsyncpa [#allocation3], 1 }
 0xd76   :  { %3733 = vsyncpa [#allocation3 + $0x1], 1 }
 0xd77   :  { %3734 = vsyncpa [#allocation6], 1 }
 0xd78   :  { %3735 = vsyncpa [#allocation9], 1 }
 0xd79   :  { %3736 = vsyncpa [#allocation12], 1 }
 0xd7a   :  { %3737 = vsyncpa [#allocation4], 1 }
 0xd7b   :  { %3739 = vsyncpa [#allocation4 + $0x1], 1 }

</bundles_post_ra>
